<compile_context>
chip_gen: v5e
topology: v5e:2x2
jax: 0.10.0
libtpu: 0.0.40
codegen_flags: <defaults>
</compile_context>

<pallas_src>
import functools
import math

import jax
import jax.numpy as jnp
from jax.experimental import pallas as pl
from jax.experimental.pallas import tpu as pltpu


def encoder_block_kernel(x_ref,
                         ln1_g_ref, ln1_b_ref,
                         wq_ref, wk_ref, wv_ref,
                         bq_ref, bk_ref, bv_ref,
                         wo_ref, bo_ref,
                         ln2_g_ref, ln2_b_ref,
                         w1_ref, b1_ref,
                         w2_ref, b2_ref,
                         out_ref,
                         k_scratch, v_scratch,
                         *, num_heads, per_head_qkv):
    H = num_heads
    S, E = x_ref.shape
    hd = E // H
    TS = out_ref.shape[0]
    eps = 1e-5
    cdt = wq_ref.dtype                       # matmul compute dtype (bf16 or f32)

    def layernorm(v, gamma, beta):
        mu = jnp.mean(v, axis=-1, keepdims=True)
        var = jnp.mean((v - mu) ** 2, axis=-1, keepdims=True)
        return (v - mu) * jax.lax.rsqrt(var + eps) * gamma + beta

    def project_heads(xn_c, w_ref, b_ref):
        """QKV projection returning a list of H (rows, hd) f32 arrays."""
        if per_head_qkv:
            # Head-major straight from the matmul — no lane-dim slicing.
            return [jnp.dot(xn_c, w_ref[h], preferred_element_type=jnp.float32)
                    + b_ref[h] for h in range(H)]
        # Fused (rows, E) x (E, E) matmul (full MXU width), then per-head lane slice.
        y = jnp.dot(xn_c, w_ref[...], preferred_element_type=jnp.float32) + b_ref[...]
        return [y[:, h * hd:(h + 1) * hd] for h in range(H)]

    s_idx = pl.program_id(1)

    # ---- once per batch element: K / V for the full sequence into VMEM scratch ----
    @pl.when(s_idx == 0)
    def _():
        xn_full = layernorm(x_ref[...], ln1_g_ref[...], ln1_b_ref[...]).astype(cdt)
        k_heads = project_heads(xn_full, wk_ref, bk_ref)
        v_heads = project_heads(xn_full, wv_ref, bv_ref)
        for h in range(H):                    # leading-axis stores, head-major layout
            k_scratch[h] = k_heads[h].astype(k_scratch.dtype)
            v_scratch[h] = v_heads[h].astype(v_scratch.dtype)

    # ---- query tile ----
    row0 = pl.multiple_of(s_idx * TS, TS)
    x_t = x_ref[pl.ds(row0, TS), :]                               # (TS, E) f32

    xn = layernorm(x_t, ln1_g_ref[...], ln1_b_ref[...]).astype(cdt)
    # 1/sqrt(head_dim) already folded into wq / bq on the host.
    qh = jnp.stack(project_heads(xn, wq_ref, bq_ref), axis=0).astype(cdt)  # (H,TS,hd)

    # Batched attention over all heads at once (no per-head small matmuls).
    scores = jnp.einsum('hqd,hkd->hqk', qh, k_scratch[...],
                        preferred_element_type=jnp.float32)       # (H, TS, S)
    scores = scores - jnp.max(scores, axis=-1, keepdims=True)
    p = jnp.exp(scores)
    row_sum = jnp.sum(p, axis=-1, keepdims=True)                  # (H, TS, 1)
    # Un-normalized exp feeds the MXU; normalize post-PV (touches (H,TS,hd) only).
    attn = jnp.einsum('hqk,hkd->hqd', p.astype(cdt), v_scratch[...],
                      preferred_element_type=jnp.float32)         # (H, TS, hd)
    attn = attn * pl.reciprocal(row_sum, approx=True)

    # Output projection: per-head dots accumulated into one (TS, E) f32 value —
    # no (H, TS, E) intermediate, no explicit H-reduction.
    acc = jnp.dot(attn[0].astype(cdt), wo_ref[0],
                  preferred_element_type=jnp.float32)
    for h in range(1, H):
        acc = acc + jnp.dot(attn[h].astype(cdt), wo_ref[h],
                            preferred_element_type=jnp.float32)
    attn_out = acc + bo_ref[...]                                  # (TS, E)

    x1 = x_t + attn_out                                           # residual 1

    # ---- LayerNorm 2 + FFN ----
    xn2 = layernorm(x1, ln2_g_ref[...], ln2_b_ref[...])
    h1 = jnp.dot(xn2.astype(cdt), w1_ref[...],
                 preferred_element_type=jnp.float32) + b1_ref[...]
    h1 = jnp.maximum(h1, 0.0)
    ffn = jnp.dot(h1.astype(cdt), w2_ref[...],
                  preferred_element_type=jnp.float32) + b2_ref[...]

    out_ref[...] = (x1 + ffn).astype(out_ref.dtype)               # residual 2


def _padded_bytes(shape, itemsize):
    """VMEM footprint of a block padded to the (8, 128) register tiling."""
    shape = tuple(shape)
    if len(shape) == 1:
        shape = (1,) + shape
    lead = 1
    for d in shape[:-2]:
        lead *= d
    sub = -(-shape[-2] // 8) * 8
    lane = -(-shape[-1] // 128) * 128
    return lead * sub * lane * itemsize


def _vmem_capacity_bytes():
    """Physical VMEM of the local TPU generation (conservative fallback)."""
    try:
        cap = int(pltpu.get_tpu_info().vmem_capacity_bytes)
        if cap > 0:
            return cap
    except Exception:
        pass
    return 64 * 1024 * 1024   # v7x-sized fallback: safe ceiling on every generation


def transformer_encoder_block(x, params, num_heads, *,
                              compute_dtype=jnp.bfloat16, seq_tile=None,
                              per_head_qkv=None):
    """x: (B, S, E) float32. params: pre-transposed weights and (1, dim) biases."""
    B, S, E = x.shape
    ff_dim = params["w1"].shape[1]
    assert E % num_heads == 0, "embed_dim must be divisible by num_heads"
    head_dim = E // num_heads

    if per_head_qkv is None:
        # Head-major QKV weights remove all lane-dim head slicing, but the per-head
        # matmul has N = head_dim: only default to it when that still fills the MXU.
        per_head_qkv = (head_dim % 128 == 0)

    vmem_cap = _vmem_capacity_bytes()

    if seq_tile is None:
        default_tile = 128 if vmem_cap <= 96 * 1024 * 1024 else 256   # v7x vs v5e/v6e
        seq_tile = S if S <= default_tile else default_tile
    assert S % seq_tile == 0 and (seq_tile % 8 == 0 or seq_tile == S)
    num_s_tiles = S // seq_tile

    # Host-side weight prep (free at runtime):
    #   * fold the 1/sqrt(head_dim) scale into wq / bq,
    #   * optionally pre-split wq/wk/wv into per-head (H, E, hd) slabs,
    #   * split wo into per-head (H, hd, E) slabs,
    #   * cast matmul weights to compute_dtype (bf16 default); biases stay f32.
    scale = 1.0 / math.sqrt(head_dim)
    wq = (params["wq"] * scale).astype(compute_dtype)
    bq = params["bq"] * scale
    wk = params["wk"].astype(compute_dtype)
    wv = params["wv"].astype(compute_dtype)
    bk, bv = params["bk"], params["bv"]
    if per_head_qkv:
        wq = wq.reshape(E, num_heads, head_dim).transpose(1, 0, 2)     # (H, E, hd)
        wk = wk.reshape(E, num_heads, head_dim).transpose(1, 0, 2)
        wv = wv.reshape(E, num_heads, head_dim).transpose(1, 0, 2)
        bq = bq.reshape(num_heads, 1, head_dim)                        # (H, 1, hd)
        bk = bk.reshape(num_heads, 1, head_dim)
        bv = bv.reshape(num_heads, 1, head_dim)
        qkv_w_shape, qkv_b_shape = (num_heads, E, head_dim), (num_heads, 1, head_dim)
    else:
        qkv_w_shape, qkv_b_shape = (E, E), (1, E)
    wo = params["wo"].reshape(num_heads, head_dim, E).astype(compute_dtype)
    w1 = params["w1"].astype(compute_dtype)
    w2 = params["w2"].astype(compute_dtype)

    const_shapes = [
        (1, E), (1, E),                          # ln1 gamma / beta
        qkv_w_shape, qkv_w_shape, qkv_w_shape,   # wq, wk, wv
        qkv_b_shape, qkv_b_shape, qkv_b_shape,   # bq, bk, bv
        (num_heads, head_dim, E), (1, E),        # wo (per-head), bo
        (1, E), (1, E),                          # ln2 gamma / beta
        (E, ff_dim), (1, ff_dim),                # w1, b1
        (ff_dim, E), (1, E),                     # w2, b2
    ]

    def make_in_specs(single_buffer_consts):
        extra = {"pipeline_mode": pl.Buffered(1)} if single_buffer_consts else {}

        def const_spec(shape):
            if len(shape) == 2:
                return pl.BlockSpec(shape, lambda b, s: (0, 0), **extra)
            return pl.BlockSpec(shape, lambda b, s: (0, 0, 0), **extra)

        specs = [pl.BlockSpec((None, S, E), lambda b, s: (b, 0, 0))]   # x: full-seq slab
        specs.extend(const_spec(shape) for shape in const_shapes)
        return specs

    out_spec = pl.BlockSpec((None, seq_tile, E), lambda b, s: (b, s, 0))

    # Explicit VMEM budget: single-buffered resident weights, double-buffered
    # x slab + out tile, scratch, and live intermediates (counted once).
    wi = jnp.dtype(compute_dtype).itemsize
    if per_head_qkv:
        qkv_bytes = (3 * _padded_bytes((num_heads, E, head_dim), wi)
                     + 3 * _padded_bytes((num_heads, 1, head_dim), 4))
    else:
        qkv_bytes = 3 * _padded_bytes((E, E), wi) + 3 * _padded_bytes((1, E), 4)
    weight_bytes = (qkv_bytes
                    + _padded_bytes((num_heads, head_dim, E), wi)
                    + _padded_bytes((E, ff_dim), wi)
                    + _padded_bytes((ff_dim, E), wi)
                    + 6 * _padded_bytes((1, E), 4)
                    + _padded_bytes((1, ff_dim), 4))
    io_bytes = _padded_bytes((S, E), 4) + _padded_bytes((seq_tile, E), 4)
    scratch_bytes = 2 * _padded_bytes((num_heads, S, head_dim), wi)
    inter_bytes = (2 * _padded_bytes((num_heads, seq_tile, S), 4)
                   + 2 * _padded_bytes((num_heads, seq_tile, head_dim), 4)
                   + 2 * _padded_bytes((seq_tile, ff_dim), 4)
                   + 6 * _padded_bytes((seq_tile, E), 4)
                   + _padded_bytes((S, E), 4))
    est = int(1.2 * (weight_bytes + 2 * io_bytes + scratch_bytes + inter_bytes))
    ceiling = max(vmem_cap - 8 * 1024 * 1024, 16 * 1024 * 1024)
    vmem_limit = int(min(max(est, 16 * 1024 * 1024), ceiling))

    kernel = functools.partial(encoder_block_kernel,
                               num_heads=num_heads, per_head_qkv=per_head_qkv)

    def build(single_buffer_consts):
        return pl.pallas_call(
            kernel,
            out_shape=jax.ShapeDtypeStruct((B, S, E), jnp.float32),
            grid_spec=pltpu.PrefetchScalarGridSpec(
                num_scalar_prefetch=0,
                grid=(B, num_s_tiles),
                in_specs=make_in_specs(single_buffer_consts),
                out_specs=out_spec,
                scratch_shapes=[
                    pltpu.VMEM((num_heads, S, head_dim), compute_dtype),   # K, head-major
                    pltpu.VMEM((num_heads, S, head_dim), compute_dtype),   # V, head-major
                ]),
            compiler_params=pltpu.CompilerParams(
                dimension_semantics=("parallel", "arbitrary"),
                vmem_limit_bytes=vmem_limit),
        )

    args = (x,
            params["ln1_g"], params["ln1_b"],
            wq, wk, wv,
            bq, bk, bv,
            wo, params["bo"],
            params["ln2_g"], params["ln2_b"],
            w1, params["b1"],
            w2, params["b2"])

    try:
        return build(True)(*args)
    except Exception:
        # Fallback if pl.Buffered(1) single-buffering is unsupported on this
        # jax/libtpu version: default double-buffered constants (same semantics).
        return build(False)(*args)


def init_params(key, embed_dim, ff_dim):
    ks = jax.random.split(key, 12)
    sd = 0.02
    return {
        # attention in-projection (stored pre-transposed: y = x @ W + b)
        "wq": jax.random.normal(ks[0], (embed_dim, embed_dim), jnp.float32) * sd,
        "wk": jax.random.normal(ks[1], (embed_dim, embed_dim), jnp.float32) * sd,
        "wv": jax.random.normal(ks[2], (embed_dim, embed_dim), jnp.float32) * sd,
        "bq": jax.random.normal(ks[3], (1, embed_dim), jnp.float32) * sd,
        "bk": jax.random.normal(ks[4], (1, embed_dim), jnp.float32) * sd,
        "bv": jax.random.normal(ks[5], (1, embed_dim), jnp.float32) * sd,
        # attention out-projection
        "wo": jax.random.normal(ks[6], (embed_dim, embed_dim), jnp.float32) * sd,
        "bo": jax.random.normal(ks[7], (1, embed_dim), jnp.float32) * sd,
        # FFN
        "w1": jax.random.normal(ks[8], (embed_dim, ff_dim), jnp.float32) * sd,
        "b1": jax.random.normal(ks[9], (1, ff_dim), jnp.float32) * sd,
        "w2": jax.random.normal(ks[10], (ff_dim, embed_dim), jnp.float32) * sd,
        "b2": jax.random.normal(ks[11], (1, embed_dim), jnp.float32) * sd,
        # layer norms
        "ln1_g": jnp.ones((1, embed_dim), jnp.float32),
        "ln1_b": jnp.zeros((1, embed_dim), jnp.float32),
        "ln2_g": jnp.ones((1, embed_dim), jnp.float32),
        "ln2_b": jnp.zeros((1, embed_dim), jnp.float32),
    }


def reference_jax(x, params, num_heads):
    """Pure-JAX reference mirroring the PyTorch forward (eval mode)."""
    eps = 1e-5
    E = x.shape[-1]
    hd = E // num_heads

    def ln(v, g, b):
        mu = jnp.mean(v, axis=-1, keepdims=True)
        var = jnp.mean((v - mu) ** 2, axis=-1, keepdims=True)
        return (v - mu) / jnp.sqrt(var + eps) * g[0] + b[0]

    xn = ln(x, params["ln1_g"], params["ln1_b"])
    q = xn @ params["wq"] + params["bq"][0]
    k = xn @ params["wk"] + params["bk"][0]
    v = xn @ params["wv"] + params["bv"][0]
    B, S, _ = x.shape
    q = q.reshape(B, S, num_heads, hd).transpose(0, 2, 1, 3) / (hd ** 0.5)
    k = k.reshape(B, S, num_heads, hd).transpose(0, 2, 1, 3)
    v = v.reshape(B, S, num_heads, hd).transpose(0, 2, 1, 3)
    s = jnp.einsum("bhqd,bhkd->bhqk", q, k)
    p = jax.nn.softmax(s, axis=-1)
    a = jnp.einsum("bhqk,bhkd->bhqd", p, v).transpose(0, 2, 1, 3).reshape(B, S, E)
    attn_out = a @ params["wo"] + params["bo"][0]
    x1 = x + attn_out
    xn2 = ln(x1, params["ln2_g"], params["ln2_b"])
    ffn = jnp.maximum(xn2 @ params["w1"] + params["b1"][0], 0.0) @ params["w2"] + params["b2"][0]
    return x1 + ffn


if __name__ == "__main__":
    # Small shapes; seq_len=16 with seq_tile=8 exercises the multi-tile path
    # (grid = (batch, 2)) including the per-batch K/V scratch reuse.
    batch, seq_len, embed_dim, num_heads, ff_dim = 2, 16, 32, 4, 64

    key = jax.random.PRNGKey(0)
    kx, kp = jax.random.split(key)
    x = jax.random.normal(kx, (batch, seq_len, embed_dim), jnp.float32)
    params = init_params(kp, embed_dim, ff_dim)

    ref = reference_jax(x, params, num_heads)

    # f32 matmuls, fused-projection head split (head_dim=8 < 128 default path).
    out = transformer_encoder_block(x, params, num_heads, seq_tile=8,
                                    compute_dtype=jnp.float32)
    out = jax.block_until_ready(out)
    assert out.shape == (batch, seq_len, embed_dim)
    assert jnp.allclose(out, ref, atol=2e-3, rtol=2e-3), (
        f"f32 mismatch vs reference: max abs diff {jnp.max(jnp.abs(out - ref))}")

    # f32 matmuls with host pre-split per-head QKV weights (head-major projection path).
    out_ph = transformer_encoder_block(x, params, num_heads, seq_tile=8,
                                       compute_dtype=jnp.float32, per_head_qkv=True)
    out_ph = jax.block_until_ready(out_ph)
    assert jnp.allclose(out_ph, ref, atol=2e-3, rtol=2e-3), (
        f"per-head mismatch vs reference: max abs diff {jnp.max(jnp.abs(out_ph - ref))}")

    # Default bf16 matmul path (peak-rate MXU on v5e/v6e/v7x); looser tolerance.
    out_bf16 = transformer_encoder_block(x, params, num_heads, seq_tile=8)
    out_bf16 = jax.block_until_ready(out_bf16)
    assert jnp.allclose(out_bf16, ref, atol=3e-2, rtol=3e-2), (
        f"bf16 mismatch vs reference: max abs diff {jnp.max(jnp.abs(out_bf16 - ref))}")

    print("KERNEL_OK")
</pallas_src>

<mosaic_0001>
module attributes {stable_mosaic.version = 11 : i64} {
  func.func @encoder_block_kernel(%arg0: i32, %arg1: i32, %arg2: memref<1x16x32xf32, #tpu.memory_space<vmem>>, %arg3: memref<1x32xf32, #tpu.memory_space<vmem>>, %arg4: memref<1x32xf32, #tpu.memory_space<vmem>>, %arg5: memref<32x32xf32, #tpu.memory_space<vmem>>, %arg6: memref<32x32xf32, #tpu.memory_space<vmem>>, %arg7: memref<32x32xf32, #tpu.memory_space<vmem>>, %arg8: memref<1x32xf32, #tpu.memory_space<vmem>>, %arg9: memref<1x32xf32, #tpu.memory_space<vmem>>, %arg10: memref<1x32xf32, #tpu.memory_space<vmem>>, %arg11: memref<4x8x32xf32, #tpu.memory_space<vmem>>, %arg12: memref<1x32xf32, #tpu.memory_space<vmem>>, %arg13: memref<1x32xf32, #tpu.memory_space<vmem>>, %arg14: memref<1x32xf32, #tpu.memory_space<vmem>>, %arg15: memref<32x64xf32, #tpu.memory_space<vmem>>, %arg16: memref<1x64xf32, #tpu.memory_space<vmem>>, %arg17: memref<64x32xf32, #tpu.memory_space<vmem>>, %arg18: memref<1x32xf32, #tpu.memory_space<vmem>>, %arg19: memref<1x8x32xf32, #tpu.memory_space<vmem>>, %arg20: memref<4x16x8xf32, #tpu.memory_space<vmem>>, %arg21: memref<4x16x8xf32, #tpu.memory_space<vmem>>) attributes {dimension_semantics = [#tpu.dimension_semantics<parallel>, #tpu.dimension_semantics<arbitrary>], iteration_bounds = array<i64: 2, 2>, scalar_prefetch = 0 : i64, scratch_operands = 2 : i64, tpu.core_type = #tpu.core_type<tc>, window_params = [{transform_indices = @transform_0, window_bounds = array<i64: 1, 16, 32>}, {pipeline_mode = #tpu.pipeline_mode<synchronous>, transform_indices = @transform_1, window_bounds = array<i64: 1, 32>}, {pipeline_mode = #tpu.pipeline_mode<synchronous>, transform_indices = @transform_2, window_bounds = array<i64: 1, 32>}, {pipeline_mode = #tpu.pipeline_mode<synchronous>, transform_indices = @transform_3, window_bounds = array<i64: 32, 32>}, {pipeline_mode = #tpu.pipeline_mode<synchronous>, transform_indices = @transform_4, window_bounds = array<i64: 32, 32>}, {pipeline_mode = #tpu.pipeline_mode<synchronous>, transform_indices = @transform_5, window_bounds = array<i64: 32, 32>}, {pipeline_mode = #tpu.pipeline_mode<synchronous>, transform_indices = @transform_6, window_bounds = array<i64: 1, 32>}, {pipeline_mode = #tpu.pipeline_mode<synchronous>, transform_indices = @transform_7, window_bounds = array<i64: 1, 32>}, {pipeline_mode = #tpu.pipeline_mode<synchronous>, transform_indices = @transform_8, window_bounds = array<i64: 1, 32>}, {pipeline_mode = #tpu.pipeline_mode<synchronous>, transform_indices = @transform_9, window_bounds = array<i64: 4, 8, 32>}, {pipeline_mode = #tpu.pipeline_mode<synchronous>, transform_indices = @transform_10, window_bounds = array<i64: 1, 32>}, {pipeline_mode = #tpu.pipeline_mode<synchronous>, transform_indices = @transform_11, window_bounds = array<i64: 1, 32>}, {pipeline_mode = #tpu.pipeline_mode<synchronous>, transform_indices = @transform_12, window_bounds = array<i64: 1, 32>}, {pipeline_mode = #tpu.pipeline_mode<synchronous>, transform_indices = @transform_13, window_bounds = array<i64: 32, 64>}, {pipeline_mode = #tpu.pipeline_mode<synchronous>, transform_indices = @transform_14, window_bounds = array<i64: 1, 64>}, {pipeline_mode = #tpu.pipeline_mode<synchronous>, transform_indices = @transform_15, window_bounds = array<i64: 64, 32>}, {pipeline_mode = #tpu.pipeline_mode<synchronous>, transform_indices = @transform_16, window_bounds = array<i64: 1, 32>}, {transform_indices = @transform_17, window_bounds = array<i64: 1, 8, 32>}]} {
    %c0_i32 = arith.constant 0 : i32
    %0 = arith.cmpi eq, %arg1, %c0_i32 : i32
    %1 = arith.extui %0 : i1 to i32
    %c0_i32_0 = arith.constant 0 : i32
    %2 = arith.cmpi ne, %1, %c0_i32_0 : i32
    scf.if %2 {
      %c0_63 = arith.constant 0 : index
      %c0_64 = arith.constant 0 : index
      %c0_65 = arith.constant 0 : index
      %127 = vector.load %arg2[%c0_63, %c0_64, %c0_65] : memref<1x16x32xf32, #tpu.memory_space<vmem>>, vector<1x16x32xf32>
      %128 = vector.shape_cast %127 : vector<1x16x32xf32> to vector<16x32xf32>
      %c0_66 = arith.constant 0 : index
      %c0_67 = arith.constant 0 : index
      %129 = vector.load %arg3[%c0_66, %c0_67] : memref<1x32xf32, #tpu.memory_space<vmem>>, vector<1x32xf32>
      %c0_68 = arith.constant 0 : index
      %c0_69 = arith.constant 0 : index
      %130 = vector.load %arg4[%c0_68, %c0_69] : memref<1x32xf32, #tpu.memory_space<vmem>>, vector<1x32xf32>
      %cst_70 = arith.constant dense<0.000000e+00> : vector<16xf32>
      %131 = vector.multi_reduction <add>, %128, %cst_70 [1] : vector<16x32xf32> to vector<16xf32>
      %132 = vector.shape_cast %131 : vector<16xf32> to vector<16x1xf32>
      %cst_71 = arith.constant 3.200000e+01 : f32
      %133 = vector.broadcast %cst_71 : f32 to vector<16x1xf32>
      %134 = arith.divf %132, %133 : vector<16x1xf32>
      %135 = vector.broadcast %134 : vector<16x1xf32> to vector<16x32xf32>
      %136 = arith.subf %128, %135 : vector<16x32xf32>
      %137 = arith.mulf %136, %136 : vector<16x32xf32>
      %cst_72 = arith.constant dense<0.000000e+00> : vector<16xf32>
      %138 = vector.multi_reduction <add>, %137, %cst_72 [1] : vector<16x32xf32> to vector<16xf32>
      %139 = vector.shape_cast %138 : vector<16xf32> to vector<16x1xf32>
      %cst_73 = arith.constant 3.200000e+01 : f32
      %140 = vector.broadcast %cst_73 : f32 to vector<16x1xf32>
      %141 = arith.divf %139, %140 : vector<16x1xf32>
      %142 = vector.broadcast %134 : vector<16x1xf32> to vector<16x32xf32>
      %143 = arith.subf %128, %142 : vector<16x32xf32>
      %cst_74 = arith.constant 9.99999974E-6 : f32
      %144 = vector.broadcast %cst_74 : f32 to vector<16x1xf32>
      %145 = arith.addf %141, %144 : vector<16x1xf32>
      %146 = math.rsqrt %145 : vector<16x1xf32>
      %147 = vector.broadcast %146 : vector<16x1xf32> to vector<16x32xf32>
      %148 = arith.mulf %143, %147 : vector<16x32xf32>
      %149 = vector.broadcast %129 : vector<1x32xf32> to vector<16x32xf32>
      %150 = arith.mulf %148, %149 : vector<16x32xf32>
      %151 = vector.broadcast %130 : vector<1x32xf32> to vector<16x32xf32>
      %152 = arith.addf %150, %151 : vector<16x32xf32>
      %c0_75 = arith.constant 0 : index
      %c0_76 = arith.constant 0 : index
      %153 = vector.load %arg6[%c0_75, %c0_76] : memref<32x32xf32, #tpu.memory_space<vmem>>, vector<32x32xf32>
      %cst_77 = arith.constant dense<0.000000e+00> : vector<16x32xf32>
      %154 = tpu.matmul %152, %153, %cst_77 {dimension_numbers = #tpu.dot_dimension_numbers<[1], [0], [0], [1], [0, 0, 1, 1], [], []>} : vector<16x32xf32>, vector<32x32xf32>, vector<16x32xf32> -> vector<16x32xf32>
      %c0_78 = arith.constant 0 : index
      %c0_79 = arith.constant 0 : index
      %155 = vector.load %arg9[%c0_78, %c0_79] : memref<1x32xf32, #tpu.memory_space<vmem>>, vector<1x32xf32>
      %156 = vector.broadcast %155 : vector<1x32xf32> to vector<16x32xf32>
      %157 = arith.addf %154, %156 : vector<16x32xf32>
      %158 = vector.extract_strided_slice %157 {offsets = [0, 0], sizes = [16, 8], strides = [1, 1]} : vector<16x32xf32> to vector<16x8xf32>
      %159 = vector.extract_strided_slice %157 {offsets = [0, 8], sizes = [16, 8], strides = [1, 1]} : vector<16x32xf32> to vector<16x8xf32>
      %160 = vector.extract_strided_slice %157 {offsets = [0, 16], sizes = [16, 8], strides = [1, 1]} : vector<16x32xf32> to vector<16x8xf32>
      %161 = vector.extract_strided_slice %157 {offsets = [0, 24], sizes = [16, 8], strides = [1, 1]} : vector<16x32xf32> to vector<16x8xf32>
      %c0_80 = arith.constant 0 : index
      %c0_81 = arith.constant 0 : index
      %162 = vector.load %arg7[%c0_80, %c0_81] : memref<32x32xf32, #tpu.memory_space<vmem>>, vector<32x32xf32>
      %cst_82 = arith.constant dense<0.000000e+00> : vector<16x32xf32>
      %163 = tpu.matmul %152, %162, %cst_82 {dimension_numbers = #tpu.dot_dimension_numbers<[1], [0], [0], [1], [0, 0, 1, 1], [], []>} : vector<16x32xf32>, vector<32x32xf32>, vector<16x32xf32> -> vector<16x32xf32>
      %c0_83 = arith.constant 0 : index
      %c0_84 = arith.constant 0 : index
      %164 = vector.load %arg10[%c0_83, %c0_84] : memref<1x32xf32, #tpu.memory_space<vmem>>, vector<1x32xf32>
      %165 = vector.broadcast %164 : vector<1x32xf32> to vector<16x32xf32>
      %166 = arith.addf %163, %165 : vector<16x32xf32>
      %167 = vector.extract_strided_slice %166 {offsets = [0, 0], sizes = [16, 8], strides = [1, 1]} : vector<16x32xf32> to vector<16x8xf32>
      %168 = vector.extract_strided_slice %166 {offsets = [0, 8], sizes = [16, 8], strides = [1, 1]} : vector<16x32xf32> to vector<16x8xf32>
      %169 = vector.extract_strided_slice %166 {offsets = [0, 16], sizes = [16, 8], strides = [1, 1]} : vector<16x32xf32> to vector<16x8xf32>
      %170 = vector.extract_strided_slice %166 {offsets = [0, 24], sizes = [16, 8], strides = [1, 1]} : vector<16x32xf32> to vector<16x8xf32>
      %c0_85 = arith.constant 0 : index
      %c0_86 = arith.constant 0 : index
      %c0_87 = arith.constant 0 : index
      %171 = vector.load %arg20[%c0_85, %c0_86, %c0_87] : memref<4x16x8xf32, #tpu.memory_space<vmem>>, vector<1x16x8xf32>
      %172 = vector.shape_cast %171 : vector<1x16x8xf32> to vector<16x8xf32>
      %173 = vector.shape_cast %158 : vector<16x8xf32> to vector<1x16x8xf32>
      tpu.vector_store %arg20[%c0_85, %c0_86, %c0_87], %173 {strides = array<i32>} : memref<4x16x8xf32, #tpu.memory_space<vmem>>, vector<1x16x8xf32>,
      %c0_88 = arith.constant 0 : index
      %c0_89 = arith.constant 0 : index
      %c0_90 = arith.constant 0 : index
      %174 = vector.load %arg21[%c0_88, %c0_89, %c0_90] : memref<4x16x8xf32, #tpu.memory_space<vmem>>, vector<1x16x8xf32>
      %175 = vector.shape_cast %174 : vector<1x16x8xf32> to vector<16x8xf32>
      %176 = vector.shape_cast %167 : vector<16x8xf32> to vector<1x16x8xf32>
      tpu.vector_store %arg21[%c0_88, %c0_89, %c0_90], %176 {strides = array<i32>} : memref<4x16x8xf32, #tpu.memory_space<vmem>>, vector<1x16x8xf32>,
      %c1_91 = arith.constant 1 : index
      %c0_92 = arith.constant 0 : index
      %c0_93 = arith.constant 0 : index
      %177 = vector.load %arg20[%c1_91, %c0_92, %c0_93] : memref<4x16x8xf32, #tpu.memory_space<vmem>>, vector<1x16x8xf32>
      %178 = vector.shape_cast %177 : vector<1x16x8xf32> to vector<16x8xf32>
      %179 = vector.shape_cast %159 : vector<16x8xf32> to vector<1x16x8xf32>
      tpu.vector_store %arg20[%c1_91, %c0_92, %c0_93], %179 {strides = array<i32>} : memref<4x16x8xf32, #tpu.memory_space<vmem>>, vector<1x16x8xf32>,
      %c1_94 = arith.constant 1 : index
      %c0_95 = arith.constant 0 : index
      %c0_96 = arith.constant 0 : index
      %180 = vector.load %arg21[%c1_94, %c0_95, %c0_96] : memref<4x16x8xf32, #tpu.memory_space<vmem>>, vector<1x16x8xf32>
      %181 = vector.shape_cast %180 : vector<1x16x8xf32> to vector<16x8xf32>
      %182 = vector.shape_cast %168 : vector<16x8xf32> to vector<1x16x8xf32>
      tpu.vector_store %arg21[%c1_94, %c0_95, %c0_96], %182 {strides = array<i32>} : memref<4x16x8xf32, #tpu.memory_space<vmem>>, vector<1x16x8xf32>,
      %c2_97 = arith.constant 2 : index
      %c0_98 = arith.constant 0 : index
      %c0_99 = arith.constant 0 : index
      %183 = vector.load %arg20[%c2_97, %c0_98, %c0_99] : memref<4x16x8xf32, #tpu.memory_space<vmem>>, vector<1x16x8xf32>
      %184 = vector.shape_cast %183 : vector<1x16x8xf32> to vector<16x8xf32>
      %185 = vector.shape_cast %160 : vector<16x8xf32> to vector<1x16x8xf32>
      tpu.vector_store %arg20[%c2_97, %c0_98, %c0_99], %185 {strides = array<i32>} : memref<4x16x8xf32, #tpu.memory_space<vmem>>, vector<1x16x8xf32>,
      %c2_100 = arith.constant 2 : index
      %c0_101 = arith.constant 0 : index
      %c0_102 = arith.constant 0 : index
      %186 = vector.load %arg21[%c2_100, %c0_101, %c0_102] : memref<4x16x8xf32, #tpu.memory_space<vmem>>, vector<1x16x8xf32>
      %187 = vector.shape_cast %186 : vector<1x16x8xf32> to vector<16x8xf32>
      %188 = vector.shape_cast %169 : vector<16x8xf32> to vector<1x16x8xf32>
      tpu.vector_store %arg21[%c2_100, %c0_101, %c0_102], %188 {strides = array<i32>} : memref<4x16x8xf32, #tpu.memory_space<vmem>>, vector<1x16x8xf32>,
      %c3_103 = arith.constant 3 : index
      %c0_104 = arith.constant 0 : index
      %c0_105 = arith.constant 0 : index
      %189 = vector.load %arg20[%c3_103, %c0_104, %c0_105] : memref<4x16x8xf32, #tpu.memory_space<vmem>>, vector<1x16x8xf32>
      %190 = vector.shape_cast %189 : vector<1x16x8xf32> to vector<16x8xf32>
      %191 = vector.shape_cast %161 : vector<16x8xf32> to vector<1x16x8xf32>
      tpu.vector_store %arg20[%c3_103, %c0_104, %c0_105], %191 {strides = array<i32>} : memref<4x16x8xf32, #tpu.memory_space<vmem>>, vector<1x16x8xf32>,
      %c3_106 = arith.constant 3 : index
      %c0_107 = arith.constant 0 : index
      %c0_108 = arith.constant 0 : index
      %192 = vector.load %arg21[%c3_106, %c0_107, %c0_108] : memref<4x16x8xf32, #tpu.memory_space<vmem>>, vector<1x16x8xf32>
      %193 = vector.shape_cast %192 : vector<1x16x8xf32> to vector<16x8xf32>
      %194 = vector.shape_cast %170 : vector<16x8xf32> to vector<1x16x8xf32>
      tpu.vector_store %arg21[%c3_106, %c0_107, %c0_108], %194 {strides = array<i32>} : memref<4x16x8xf32, #tpu.memory_space<vmem>>, vector<1x16x8xf32>,
    } else {
    }
    %c8_i32 = arith.constant 8 : i32
    %3 = arith.muli %arg1, %c8_i32 : i32
    %4 = tpu.assume_multiple %3, 8 : i32
    %c0 = arith.constant 0 : index
    %5 = arith.index_cast %4 : i32 to index
    %c0_1 = arith.constant 0 : index
    %6 = vector.load %arg2[%c0, %5, %c0_1] : memref<1x16x32xf32, #tpu.memory_space<vmem>>, vector<1x8x32xf32>
    %7 = vector.shape_cast %6 : vector<1x8x32xf32> to vector<8x32xf32>
    %c0_2 = arith.constant 0 : index
    %c0_3 = arith.constant 0 : index
    %8 = vector.load %arg3[%c0_2, %c0_3] : memref<1x32xf32, #tpu.memory_space<vmem>>, vector<1x32xf32>
    %c0_4 = arith.constant 0 : index
    %c0_5 = arith.constant 0 : index
    %9 = vector.load %arg4[%c0_4, %c0_5] : memref<1x32xf32, #tpu.memory_space<vmem>>, vector<1x32xf32>
    %cst = arith.constant dense<0.000000e+00> : vector<8xf32>
    %10 = vector.multi_reduction <add>, %7, %cst [1] : vector<8x32xf32> to vector<8xf32>
    %11 = vector.shape_cast %10 : vector<8xf32> to vector<8x1xf32>
    %cst_6 = arith.constant 3.200000e+01 : f32
    %12 = vector.broadcast %cst_6 : f32 to vector<8x1xf32>
    %13 = arith.divf %11, %12 : vector<8x1xf32>
    %14 = vector.broadcast %13 : vector<8x1xf32> to vector<8x32xf32>
    %15 = arith.subf %7, %14 : vector<8x32xf32>
    %16 = arith.mulf %15, %15 : vector<8x32xf32>
    %cst_7 = arith.constant dense<0.000000e+00> : vector<8xf32>
    %17 = vector.multi_reduction <add>, %16, %cst_7 [1] : vector<8x32xf32> to vector<8xf32>
    %18 = vector.shape_cast %17 : vector<8xf32> to vector<8x1xf32>
    %cst_8 = arith.constant 3.200000e+01 : f32
    %19 = vector.broadcast %cst_8 : f32 to vector<8x1xf32>
    %20 = arith.divf %18, %19 : vector<8x1xf32>
    %21 = vector.broadcast %13 : vector<8x1xf32> to vector<8x32xf32>
    %22 = arith.subf %7, %21 : vector<8x32xf32>
    %cst_9 = arith.constant 9.99999974E-6 : f32
    %23 = vector.broadcast %cst_9 : f32 to vector<8x1xf32>
    %24 = arith.addf %20, %23 : vector<8x1xf32>
    %25 = math.rsqrt %24 : vector<8x1xf32>
    %26 = vector.broadcast %25 : vector<8x1xf32> to vector<8x32xf32>
    %27 = arith.mulf %22, %26 : vector<8x32xf32>
    %28 = vector.broadcast %8 : vector<1x32xf32> to vector<8x32xf32>
    %29 = arith.mulf %27, %28 : vector<8x32xf32>
    %30 = vector.broadcast %9 : vector<1x32xf32> to vector<8x32xf32>
    %31 = arith.addf %29, %30 : vector<8x32xf32>
    %c0_10 = arith.constant 0 : index
    %c0_11 = arith.constant 0 : index
    %32 = vector.load %arg5[%c0_10, %c0_11] : memref<32x32xf32, #tpu.memory_space<vmem>>, vector<32x32xf32>
    %cst_12 = arith.constant dense<0.000000e+00> : vector<8x32xf32>
    %33 = tpu.matmul %31, %32, %cst_12 {dimension_numbers = #tpu.dot_dimension_numbers<[1], [0], [0], [1], [0, 0, 1, 1], [], []>} : vector<8x32xf32>, vector<32x32xf32>, vector<8x32xf32> -> vector<8x32xf32>
    %c0_13 = arith.constant 0 : index
    %c0_14 = arith.constant 0 : index
    %34 = vector.load %arg8[%c0_13, %c0_14] : memref<1x32xf32, #tpu.memory_space<vmem>>, vector<1x32xf32>
    %35 = vector.broadcast %34 : vector<1x32xf32> to vector<8x32xf32>
    %36 = arith.addf %33, %35 : vector<8x32xf32>
    %37 = vector.extract_strided_slice %36 {offsets = [0, 0], sizes = [8, 8], strides = [1, 1]} : vector<8x32xf32> to vector<8x8xf32>
    %38 = vector.extract_strided_slice %36 {offsets = [0, 8], sizes = [8, 8], strides = [1, 1]} : vector<8x32xf32> to vector<8x8xf32>
    %39 = vector.extract_strided_slice %36 {offsets = [0, 16], sizes = [8, 8], strides = [1, 1]} : vector<8x32xf32> to vector<8x8xf32>
    %40 = vector.extract_strided_slice %36 {offsets = [0, 24], sizes = [8, 8], strides = [1, 1]} : vector<8x32xf32> to vector<8x8xf32>
    %41 = vector.shape_cast %37 : vector<8x8xf32> to vector<1x8x8xf32>
    %42 = vector.shape_cast %38 : vector<8x8xf32> to vector<1x8x8xf32>
    %43 = vector.shape_cast %39 : vector<8x8xf32> to vector<1x8x8xf32>
    %44 = vector.shape_cast %40 : vector<8x8xf32> to vector<1x8x8xf32>
    %45 = tpu.concatenate %41, %42, %43, %44 in 0 : vector<1x8x8xf32>, vector<1x8x8xf32>, vector<1x8x8xf32>, vector<1x8x8xf32> -> vector<4x8x8xf32>
    %c0_15 = arith.constant 0 : index
    %c0_16 = arith.constant 0 : index
    %c0_17 = arith.constant 0 : index
    %46 = vector.load %arg20[%c0_15, %c0_16, %c0_17] : memref<4x16x8xf32, #tpu.memory_space<vmem>>, vector<4x16x8xf32>
    "tpu.trace_start"() <{level = 10 : i32, message = "hqd,hkd->hqk"}> : () -> ()
    %cst_18 = arith.constant dense<0.000000e+00> : vector<4x8x16xf32>
    %47 = tpu.matmul %45, %46, %cst_18 {dimension_numbers = #tpu.dot_dimension_numbers<[2], [2], [1], [1], [0, 0, 0, 1, 1, 1], [0], [0]>} : vector<4x8x8xf32>, vector<4x16x8xf32>, vector<4x8x16xf32> -> vector<4x8x16xf32>
    "tpu.trace_stop"() : () -> ()
    %cst_19 = arith.constant dense<0xFF800000> : vector<4x8xf32>
    %48 = vector.multi_reduction <maximumf>, %47, %cst_19 [2] : vector<4x8x16xf32> to vector<4x8xf32>
    %49 = vector.shape_cast %48 : vector<4x8xf32> to vector<4x8x1xf32>
    %50 = vector.broadcast %49 : vector<4x8x1xf32> to vector<4x8x16xf32>
    %51 = arith.subf %47, %50 : vector<4x8x16xf32>
    %52 = math.exp %51 : vector<4x8x16xf32>
    %cst_20 = arith.constant dense<0.000000e+00> : vector<4x8xf32>
    %53 = vector.multi_reduction <add>, %52, %cst_20 [2] : vector<4x8x16xf32> to vector<4x8xf32>
    %54 = vector.shape_cast %53 : vector<4x8xf32> to vector<4x8x1xf32>
    %c0_21 = arith.constant 0 : index
    %c0_22 = arith.constant 0 : index
    %c0_23 = arith.constant 0 : index
    %55 = vector.load %arg21[%c0_21, %c0_22, %c0_23] : memref<4x16x8xf32, #tpu.memory_space<vmem>>, vector<4x16x8xf32>
    "tpu.trace_start"() <{level = 10 : i32, message = "hqk,hkd->hqd"}> : () -> ()
    %cst_24 = arith.constant dense<0.000000e+00> : vector<4x8x8xf32>
    %56 = tpu.matmul %52, %55, %cst_24 {dimension_numbers = #tpu.dot_dimension_numbers<[2], [1], [1], [2], [0, 0, 0, 1, 1, 2], [0], [0]>} : vector<4x8x16xf32>, vector<4x16x8xf32>, vector<4x8x8xf32> -> vector<4x8x8xf32>
    "tpu.trace_stop"() : () -> ()
    %57 = tpu.reciprocal %54 {approx = true} : vector<4x8x1xf32> -> vector<4x8x1xf32>
    %58 = vector.broadcast %57 : vector<4x8x1xf32> to vector<4x8x8xf32>
    %59 = arith.mulf %56, %58 : vector<4x8x8xf32>
    %60 = vector.extract_strided_slice %59 {offsets = [0, 0, 0], sizes = [1, 8, 8], strides = [1, 1, 1]} : vector<4x8x8xf32> to vector<1x8x8xf32>
    %61 = vector.shape_cast %60 : vector<1x8x8xf32> to vector<8x8xf32>
    %c0_25 = arith.constant 0 : index
    %c0_26 = arith.constant 0 : index
    %c0_27 = arith.constant 0 : index
    %62 = vector.load %arg11[%c0_25, %c0_26, %c0_27] : memref<4x8x32xf32, #tpu.memory_space<vmem>>, vector<1x8x32xf32>
    %63 = vector.shape_cast %62 : vector<1x8x32xf32> to vector<8x32xf32>
    %cst_28 = arith.constant dense<0.000000e+00> : vector<8x32xf32>
    %64 = tpu.matmul %61, %63, %cst_28 {dimension_numbers = #tpu.dot_dimension_numbers<[1], [0], [0], [1], [0, 0, 1, 1], [], []>} : vector<8x8xf32>, vector<8x32xf32>, vector<8x32xf32> -> vector<8x32xf32>
    %65 = vector.extract_strided_slice %59 {offsets = [1, 0, 0], sizes = [1, 8, 8], strides = [1, 1, 1]} : vector<4x8x8xf32> to vector<1x8x8xf32>
    %66 = vector.shape_cast %65 : vector<1x8x8xf32> to vector<8x8xf32>
    %c1 = arith.constant 1 : index
    %c0_29 = arith.constant 0 : index
    %c0_30 = arith.constant 0 : index
    %67 = vector.load %arg11[%c1, %c0_29, %c0_30] : memref<4x8x32xf32, #tpu.memory_space<vmem>>, vector<1x8x32xf32>
    %68 = vector.shape_cast %67 : vector<1x8x32xf32> to vector<8x32xf32>
    %cst_31 = arith.constant dense<0.000000e+00> : vector<8x32xf32>
    %69 = tpu.matmul %66, %68, %cst_31 {dimension_numbers = #tpu.dot_dimension_numbers<[1], [0], [0], [1], [0, 0, 1, 1], [], []>} : vector<8x8xf32>, vector<8x32xf32>, vector<8x32xf32> -> vector<8x32xf32>
    %70 = arith.addf %64, %69 : vector<8x32xf32>
    %71 = vector.extract_strided_slice %59 {offsets = [2, 0, 0], sizes = [1, 8, 8], strides = [1, 1, 1]} : vector<4x8x8xf32> to vector<1x8x8xf32>
    %72 = vector.shape_cast %71 : vector<1x8x8xf32> to vector<8x8xf32>
    %c2 = arith.constant 2 : index
    %c0_32 = arith.constant 0 : index
    %c0_33 = arith.constant 0 : index
    %73 = vector.load %arg11[%c2, %c0_32, %c0_33] : memref<4x8x32xf32, #tpu.memory_space<vmem>>, vector<1x8x32xf32>
    %74 = vector.shape_cast %73 : vector<1x8x32xf32> to vector<8x32xf32>
    %cst_34 = arith.constant dense<0.000000e+00> : vector<8x32xf32>
    %75 = tpu.matmul %72, %74, %cst_34 {dimension_numbers = #tpu.dot_dimension_numbers<[1], [0], [0], [1], [0, 0, 1, 1], [], []>} : vector<8x8xf32>, vector<8x32xf32>, vector<8x32xf32> -> vector<8x32xf32>
    %76 = arith.addf %70, %75 : vector<8x32xf32>
    %77 = vector.extract_strided_slice %59 {offsets = [3, 0, 0], sizes = [1, 8, 8], strides = [1, 1, 1]} : vector<4x8x8xf32> to vector<1x8x8xf32>
    %78 = vector.shape_cast %77 : vector<1x8x8xf32> to vector<8x8xf32>
    %c3 = arith.constant 3 : index
    %c0_35 = arith.constant 0 : index
    %c0_36 = arith.constant 0 : index
    %79 = vector.load %arg11[%c3, %c0_35, %c0_36] : memref<4x8x32xf32, #tpu.memory_space<vmem>>, vector<1x8x32xf32>
    %80 = vector.shape_cast %79 : vector<1x8x32xf32> to vector<8x32xf32>
    %cst_37 = arith.constant dense<0.000000e+00> : vector<8x32xf32>
    %81 = tpu.matmul %78, %80, %cst_37 {dimension_numbers = #tpu.dot_dimension_numbers<[1], [0], [0], [1], [0, 0, 1, 1], [], []>} : vector<8x8xf32>, vector<8x32xf32>, vector<8x32xf32> -> vector<8x32xf32>
    %82 = arith.addf %76, %81 : vector<8x32xf32>
    %c0_38 = arith.constant 0 : index
    %c0_39 = arith.constant 0 : index
    %83 = vector.load %arg12[%c0_38, %c0_39] : memref<1x32xf32, #tpu.memory_space<vmem>>, vector<1x32xf32>
    %84 = vector.broadcast %83 : vector<1x32xf32> to vector<8x32xf32>
    %85 = arith.addf %82, %84 : vector<8x32xf32>
    %86 = arith.addf %7, %85 : vector<8x32xf32>
    %c0_40 = arith.constant 0 : index
    %c0_41 = arith.constant 0 : index
    %87 = vector.load %arg13[%c0_40, %c0_41] : memref<1x32xf32, #tpu.memory_space<vmem>>, vector<1x32xf32>
    %c0_42 = arith.constant 0 : index
    %c0_43 = arith.constant 0 : index
    %88 = vector.load %arg14[%c0_42, %c0_43] : memref<1x32xf32, #tpu.memory_space<vmem>>, vector<1x32xf32>
    %cst_44 = arith.constant dense<0.000000e+00> : vector<8xf32>
    %89 = vector.multi_reduction <add>, %86, %cst_44 [1] : vector<8x32xf32> to vector<8xf32>
    %90 = vector.shape_cast %89 : vector<8xf32> to vector<8x1xf32>
    %cst_45 = arith.constant 3.200000e+01 : f32
    %91 = vector.broadcast %cst_45 : f32 to vector<8x1xf32>
    %92 = arith.divf %90, %91 : vector<8x1xf32>
    %93 = vector.broadcast %92 : vector<8x1xf32> to vector<8x32xf32>
    %94 = arith.subf %86, %93 : vector<8x32xf32>
    %95 = arith.mulf %94, %94 : vector<8x32xf32>
    %cst_46 = arith.constant dense<0.000000e+00> : vector<8xf32>
    %96 = vector.multi_reduction <add>, %95, %cst_46 [1] : vector<8x32xf32> to vector<8xf32>
    %97 = vector.shape_cast %96 : vector<8xf32> to vector<8x1xf32>
    %cst_47 = arith.constant 3.200000e+01 : f32
    %98 = vector.broadcast %cst_47 : f32 to vector<8x1xf32>
    %99 = arith.divf %97, %98 : vector<8x1xf32>
    %100 = vector.broadcast %92 : vector<8x1xf32> to vector<8x32xf32>
    %101 = arith.subf %86, %100 : vector<8x32xf32>
    %cst_48 = arith.constant 9.99999974E-6 : f32
    %102 = vector.broadcast %cst_48 : f32 to vector<8x1xf32>
    %103 = arith.addf %99, %102 : vector<8x1xf32>
    %104 = math.rsqrt %103 : vector<8x1xf32>
    %105 = vector.broadcast %104 : vector<8x1xf32> to vector<8x32xf32>
    %106 = arith.mulf %101, %105 : vector<8x32xf32>
    %107 = vector.broadcast %87 : vector<1x32xf32> to vector<8x32xf32>
    %108 = arith.mulf %106, %107 : vector<8x32xf32>
    %109 = vector.broadcast %88 : vector<1x32xf32> to vector<8x32xf32>
    %110 = arith.addf %108, %109 : vector<8x32xf32>
    %c0_49 = arith.constant 0 : index
    %c0_50 = arith.constant 0 : index
    %111 = vector.load %arg15[%c0_49, %c0_50] : memref<32x64xf32, #tpu.memory_space<vmem>>, vector<32x64xf32>
    %cst_51 = arith.constant dense<0.000000e+00> : vector<8x64xf32>
    %112 = tpu.matmul %110, %111, %cst_51 {dimension_numbers = #tpu.dot_dimension_numbers<[1], [0], [0], [1], [0, 0, 1, 1], [], []>} : vector<8x32xf32>, vector<32x64xf32>, vector<8x64xf32> -> vector<8x64xf32>
    %c0_52 = arith.constant 0 : index
    %c0_53 = arith.constant 0 : index
    %113 = vector.load %arg16[%c0_52, %c0_53] : memref<1x64xf32, #tpu.memory_space<vmem>>, vector<1x64xf32>
    %114 = vector.broadcast %113 : vector<1x64xf32> to vector<8x64xf32>
    %115 = arith.addf %112, %114 : vector<8x64xf32>
    %cst_54 = arith.constant 0.000000e+00 : f32
    %116 = vector.broadcast %cst_54 : f32 to vector<8x64xf32>
    %117 = arith.maximumf %115, %116 : vector<8x64xf32>
    %c0_55 = arith.constant 0 : index
    %c0_56 = arith.constant 0 : index
    %118 = vector.load %arg17[%c0_55, %c0_56] : memref<64x32xf32, #tpu.memory_space<vmem>>, vector<64x32xf32>
    %cst_57 = arith.constant dense<0.000000e+00> : vector<8x32xf32>
    %119 = tpu.matmul %117, %118, %cst_57 {dimension_numbers = #tpu.dot_dimension_numbers<[1], [0], [0], [1], [0, 0, 1, 1], [], []>} : vector<8x64xf32>, vector<64x32xf32>, vector<8x32xf32> -> vector<8x32xf32>
    %c0_58 = arith.constant 0 : index
    %c0_59 = arith.constant 0 : index
    %120 = vector.load %arg18[%c0_58, %c0_59] : memref<1x32xf32, #tpu.memory_space<vmem>>, vector<1x32xf32>
    %121 = vector.broadcast %120 : vector<1x32xf32> to vector<8x32xf32>
    %122 = arith.addf %119, %121 : vector<8x32xf32>
    %123 = arith.addf %86, %122 : vector<8x32xf32>
    %c0_60 = arith.constant 0 : index
    %c0_61 = arith.constant 0 : index
    %c0_62 = arith.constant 0 : index
    %124 = vector.load %arg19[%c0_60, %c0_61, %c0_62] : memref<1x8x32xf32, #tpu.memory_space<vmem>>, vector<1x8x32xf32>
    %125 = vector.shape_cast %124 : vector<1x8x32xf32> to vector<8x32xf32>
    %126 = vector.shape_cast %123 : vector<8x32xf32> to vector<1x8x32xf32>
    tpu.vector_store %arg19[%c0_60, %c0_61, %c0_62], %126 {strides = array<i32>} : memref<1x8x32xf32, #tpu.memory_space<vmem>>, vector<1x8x32xf32>,
    return
  }
  func.func @transform_0(%arg0: i32, %arg1: i32) -> (i32, i32, i32) {
    %c0_i32 = arith.constant 0 : i32
    %c0_i32_0 = arith.constant 0 : i32
    %c0_i32_1 = arith.constant 0 : i32
    return %arg0, %c0_i32, %c0_i32_0 : i32, i32, i32
  }
  func.func @transform_1(%arg0: i32, %arg1: i32) -> (i32, i32) {
    %c0_i32 = arith.constant 0 : i32
    %c0_i32_0 = arith.constant 0 : i32
    %c0_i32_1 = arith.constant 0 : i32
    return %c0_i32, %c0_i32_0 : i32, i32
  }
  func.func @transform_2(%arg0: i32, %arg1: i32) -> (i32, i32) {
    %c0_i32 = arith.constant 0 : i32
    %c0_i32_0 = arith.constant 0 : i32
    %c0_i32_1 = arith.constant 0 : i32
    return %c0_i32, %c0_i32_0 : i32, i32
  }
  func.func @transform_3(%arg0: i32, %arg1: i32) -> (i32, i32) {
    %c0_i32 = arith.constant 0 : i32
    %c0_i32_0 = arith.constant 0 : i32
    %c0_i32_1 = arith.constant 0 : i32
    return %c0_i32, %c0_i32_0 : i32, i32
  }
  func.func @transform_4(%arg0: i32, %arg1: i32) -> (i32, i32) {
    %c0_i32 = arith.constant 0 : i32
    %c0_i32_0 = arith.constant 0 : i32
    %c0_i32_1 = arith.constant 0 : i32
    return %c0_i32, %c0_i32_0 : i32, i32
  }
  func.func @transform_5(%arg0: i32, %arg1: i32) -> (i32, i32) {
    %c0_i32 = arith.constant 0 : i32
    %c0_i32_0 = arith.constant 0 : i32
    %c0_i32_1 = arith.constant 0 : i32
    return %c0_i32, %c0_i32_0 : i32, i32
  }
  func.func @transform_6(%arg0: i32, %arg1: i32) -> (i32, i32) {
    %c0_i32 = arith.constant 0 : i32
    %c0_i32_0 = arith.constant 0 : i32
    %c0_i32_1 = arith.constant 0 : i32
    return %c0_i32, %c0_i32_0 : i32, i32
  }
  func.func @transform_7(%arg0: i32, %arg1: i32) -> (i32, i32) {
    %c0_i32 = arith.constant 0 : i32
    %c0_i32_0 = arith.constant 0 : i32
    %c0_i32_1 = arith.constant 0 : i32
    return %c0_i32, %c0_i32_0 : i32, i32
  }
  func.func @transform_8(%arg0: i32, %arg1: i32) -> (i32, i32) {
    %c0_i32 = arith.constant 0 : i32
    %c0_i32_0 = arith.constant 0 : i32
    %c0_i32_1 = arith.constant 0 : i32
    return %c0_i32, %c0_i32_0 : i32, i32
  }
  func.func @transform_9(%arg0: i32, %arg1: i32) -> (i32, i32, i32) {
    %c0_i32 = arith.constant 0 : i32
    %c0_i32_0 = arith.constant 0 : i32
    %c0_i32_1 = arith.constant 0 : i32
    %c0_i32_2 = arith.constant 0 : i32
    return %c0_i32, %c0_i32_0, %c0_i32_1 : i32, i32, i32
  }
  func.func @transform_10(%arg0: i32, %arg1: i32) -> (i32, i32) {
    %c0_i32 = arith.constant 0 : i32
    %c0_i32_0 = arith.constant 0 : i32
    %c0_i32_1 = arith.constant 0 : i32
    return %c0_i32, %c0_i32_0 : i32, i32
  }
  func.func @transform_11(%arg0: i32, %arg1: i32) -> (i32, i32) {
    %c0_i32 = arith.constant 0 : i32
    %c0_i32_0 = arith.constant 0 : i32
    %c0_i32_1 = arith.constant 0 : i32
    return %c0_i32, %c0_i32_0 : i32, i32
  }
  func.func @transform_12(%arg0: i32, %arg1: i32) -> (i32, i32) {
    %c0_i32 = arith.constant 0 : i32
    %c0_i32_0 = arith.constant 0 : i32
    %c0_i32_1 = arith.constant 0 : i32
    return %c0_i32, %c0_i32_0 : i32, i32
  }
  func.func @transform_13(%arg0: i32, %arg1: i32) -> (i32, i32) {
    %c0_i32 = arith.constant 0 : i32
    %c0_i32_0 = arith.constant 0 : i32
    %c0_i32_1 = arith.constant 0 : i32
    return %c0_i32, %c0_i32_0 : i32, i32
  }
  func.func @transform_14(%arg0: i32, %arg1: i32) -> (i32, i32) {
    %c0_i32 = arith.constant 0 : i32
    %c0_i32_0 = arith.constant 0 : i32
    %c0_i32_1 = arith.constant 0 : i32
    return %c0_i32, %c0_i32_0 : i32, i32
  }
  func.func @transform_15(%arg0: i32, %arg1: i32) -> (i32, i32) {
    %c0_i32 = arith.constant 0 : i32
    %c0_i32_0 = arith.constant 0 : i32
    %c0_i32_1 = arith.constant 0 : i32
    return %c0_i32, %c0_i32_0 : i32, i32
  }
  func.func @transform_16(%arg0: i32, %arg1: i32) -> (i32, i32) {
    %c0_i32 = arith.constant 0 : i32
    %c0_i32_0 = arith.constant 0 : i32
    %c0_i32_1 = arith.constant 0 : i32
    return %c0_i32, %c0_i32_0 : i32, i32
  }
  func.func @transform_17(%arg0: i32, %arg1: i32) -> (i32, i32, i32) {
    %c0_i32 = arith.constant 0 : i32
    %c0_i32_0 = arith.constant 0 : i32
    return %arg0, %arg1, %c0_i32 : i32, i32, i32
  }
}

module attributes {stable_mosaic.version = 11 : i64} {
  func.func @encoder_block_kernel(%arg0: i32, %arg1: i32, %arg2: memref<1x16x32xf32, #tpu.memory_space<vmem>>, %arg3: memref<1x32xf32, #tpu.memory_space<vmem>>, %arg4: memref<1x32xf32, #tpu.memory_space<vmem>>, %arg5: memref<32x32xf32, #tpu.memory_space<vmem>>, %arg6: memref<32x32xf32, #tpu.memory_space<vmem>>, %arg7: memref<32x32xf32, #tpu.memory_space<vmem>>, %arg8: memref<1x32xf32, #tpu.memory_space<vmem>>, %arg9: memref<1x32xf32, #tpu.memory_space<vmem>>, %arg10: memref<1x32xf32, #tpu.memory_space<vmem>>, %arg11: memref<4x8x32xf32, #tpu.memory_space<vmem>>, %arg12: memref<1x32xf32, #tpu.memory_space<vmem>>, %arg13: memref<1x32xf32, #tpu.memory_space<vmem>>, %arg14: memref<1x32xf32, #tpu.memory_space<vmem>>, %arg15: memref<32x64xf32, #tpu.memory_space<vmem>>, %arg16: memref<1x64xf32, #tpu.memory_space<vmem>>, %arg17: memref<64x32xf32, #tpu.memory_space<vmem>>, %arg18: memref<1x32xf32, #tpu.memory_space<vmem>>, %arg19: memref<1x8x32xf32, #tpu.memory_space<vmem>>, %arg20: memref<4x16x8xf32, #tpu.memory_space<vmem>>, %arg21: memref<4x16x8xf32, #tpu.memory_space<vmem>>) attributes {dimension_semantics = [#tpu.dimension_semantics<parallel>, #tpu.dimension_semantics<arbitrary>], iteration_bounds = array<i64: 2, 2>, scalar_prefetch = 0 : i64, scratch_operands = 2 : i64, tpu.core_type = #tpu.core_type<tc>, window_params = [{transform_indices = @transform_0, window_bounds = array<i64: 1, 16, 32>}, {pipeline_mode = #tpu.pipeline_mode<synchronous>, transform_indices = @transform_1, window_bounds = array<i64: 1, 32>}, {pipeline_mode = #tpu.pipeline_mode<synchronous>, transform_indices = @transform_2, window_bounds = array<i64: 1, 32>}, {pipeline_mode = #tpu.pipeline_mode<synchronous>, transform_indices = @transform_3, window_bounds = array<i64: 32, 32>}, {pipeline_mode = #tpu.pipeline_mode<synchronous>, transform_indices = @transform_4, window_bounds = array<i64: 32, 32>}, {pipeline_mode = #tpu.pipeline_mode<synchronous>, transform_indices = @transform_5, window_bounds = array<i64: 32, 32>}, {pipeline_mode = #tpu.pipeline_mode<synchronous>, transform_indices = @transform_6, window_bounds = array<i64: 1, 32>}, {pipeline_mode = #tpu.pipeline_mode<synchronous>, transform_indices = @transform_7, window_bounds = array<i64: 1, 32>}, {pipeline_mode = #tpu.pipeline_mode<synchronous>, transform_indices = @transform_8, window_bounds = array<i64: 1, 32>}, {pipeline_mode = #tpu.pipeline_mode<synchronous>, transform_indices = @transform_9, window_bounds = array<i64: 4, 8, 32>}, {pipeline_mode = #tpu.pipeline_mode<synchronous>, transform_indices = @transform_10, window_bounds = array<i64: 1, 32>}, {pipeline_mode = #tpu.pipeline_mode<synchronous>, transform_indices = @transform_11, window_bounds = array<i64: 1, 32>}, {pipeline_mode = #tpu.pipeline_mode<synchronous>, transform_indices = @transform_12, window_bounds = array<i64: 1, 32>}, {pipeline_mode = #tpu.pipeline_mode<synchronous>, transform_indices = @transform_13, window_bounds = array<i64: 32, 64>}, {pipeline_mode = #tpu.pipeline_mode<synchronous>, transform_indices = @transform_14, window_bounds = array<i64: 1, 64>}, {pipeline_mode = #tpu.pipeline_mode<synchronous>, transform_indices = @transform_15, window_bounds = array<i64: 64, 32>}, {pipeline_mode = #tpu.pipeline_mode<synchronous>, transform_indices = @transform_16, window_bounds = array<i64: 1, 32>}, {transform_indices = @transform_17, window_bounds = array<i64: 1, 8, 32>}]} {
    %c0_i32 = arith.constant 0 : i32
    %0 = arith.cmpi eq, %arg1, %c0_i32 : i32
    %1 = arith.extui %0 : i1 to i32
    %c0_i32_0 = arith.constant 0 : i32
    %2 = arith.cmpi ne, %1, %c0_i32_0 : i32
    scf.if %2 {
      %c0_63 = arith.constant 0 : index
      %c0_64 = arith.constant 0 : index
      %c0_65 = arith.constant 0 : index
      %127 = vector.load %arg2[%c0_63, %c0_64, %c0_65] : memref<1x16x32xf32, #tpu.memory_space<vmem>>, vector<1x16x32xf32>
      %128 = vector.shape_cast %127 : vector<1x16x32xf32> to vector<16x32xf32>
      %c0_66 = arith.constant 0 : index
      %c0_67 = arith.constant 0 : index
      %129 = vector.load %arg3[%c0_66, %c0_67] : memref<1x32xf32, #tpu.memory_space<vmem>>, vector<1x32xf32>
      %c0_68 = arith.constant 0 : index
      %c0_69 = arith.constant 0 : index
      %130 = vector.load %arg4[%c0_68, %c0_69] : memref<1x32xf32, #tpu.memory_space<vmem>>, vector<1x32xf32>
      %cst_70 = arith.constant dense<0.000000e+00> : vector<16xf32>
      %131 = vector.multi_reduction <add>, %128, %cst_70 [1] : vector<16x32xf32> to vector<16xf32>
      %132 = vector.shape_cast %131 : vector<16xf32> to vector<16x1xf32>
      %cst_71 = arith.constant 3.200000e+01 : f32
      %133 = vector.broadcast %cst_71 : f32 to vector<16x1xf32>
      %134 = arith.divf %132, %133 : vector<16x1xf32>
      %135 = vector.broadcast %134 : vector<16x1xf32> to vector<16x32xf32>
      %136 = arith.subf %128, %135 : vector<16x32xf32>
      %137 = arith.mulf %136, %136 : vector<16x32xf32>
      %cst_72 = arith.constant dense<0.000000e+00> : vector<16xf32>
      %138 = vector.multi_reduction <add>, %137, %cst_72 [1] : vector<16x32xf32> to vector<16xf32>
      %139 = vector.shape_cast %138 : vector<16xf32> to vector<16x1xf32>
      %cst_73 = arith.constant 3.200000e+01 : f32
      %140 = vector.broadcast %cst_73 : f32 to vector<16x1xf32>
      %141 = arith.divf %139, %140 : vector<16x1xf32>
      %142 = vector.broadcast %134 : vector<16x1xf32> to vector<16x32xf32>
      %143 = arith.subf %128, %142 : vector<16x32xf32>
      %cst_74 = arith.constant 9.99999974E-6 : f32
      %144 = vector.broadcast %cst_74 : f32 to vector<16x1xf32>
      %145 = arith.addf %141, %144 : vector<16x1xf32>
      %146 = math.rsqrt %145 : vector<16x1xf32>
      %147 = vector.broadcast %146 : vector<16x1xf32> to vector<16x32xf32>
      %148 = arith.mulf %143, %147 : vector<16x32xf32>
      %149 = vector.broadcast %129 : vector<1x32xf32> to vector<16x32xf32>
      %150 = arith.mulf %148, %149 : vector<16x32xf32>
      %151 = vector.broadcast %130 : vector<1x32xf32> to vector<16x32xf32>
      %152 = arith.addf %150, %151 : vector<16x32xf32>
      %c0_75 = arith.constant 0 : index
      %c0_76 = arith.constant 0 : index
      %153 = vector.load %arg6[%c0_75, %c0_76] : memref<32x32xf32, #tpu.memory_space<vmem>>, vector<32x32xf32>
      %cst_77 = arith.constant dense<0.000000e+00> : vector<16x32xf32>
      %154 = tpu.matmul %152, %153, %cst_77 {dimension_numbers = #tpu.dot_dimension_numbers<[1], [0], [0], [1], [0, 0, 1, 1], [], []>} : vector<16x32xf32>, vector<32x32xf32>, vector<16x32xf32> -> vector<16x32xf32>
      %c0_78 = arith.constant 0 : index
      %c0_79 = arith.constant 0 : index
      %155 = vector.load %arg9[%c0_78, %c0_79] : memref<1x32xf32, #tpu.memory_space<vmem>>, vector<1x32xf32>
      %156 = vector.broadcast %155 : vector<1x32xf32> to vector<16x32xf32>
      %157 = arith.addf %154, %156 : vector<16x32xf32>
      %158 = vector.extract_strided_slice %157 {offsets = [0, 0], sizes = [16, 8], strides = [1, 1]} : vector<16x32xf32> to vector<16x8xf32>
      %159 = vector.extract_strided_slice %157 {offsets = [0, 8], sizes = [16, 8], strides = [1, 1]} : vector<16x32xf32> to vector<16x8xf32>
      %160 = vector.extract_strided_slice %157 {offsets = [0, 16], sizes = [16, 8], strides = [1, 1]} : vector<16x32xf32> to vector<16x8xf32>
      %161 = vector.extract_strided_slice %157 {offsets = [0, 24], sizes = [16, 8], strides = [1, 1]} : vector<16x32xf32> to vector<16x8xf32>
      %c0_80 = arith.constant 0 : index
      %c0_81 = arith.constant 0 : index
      %162 = vector.load %arg7[%c0_80, %c0_81] : memref<32x32xf32, #tpu.memory_space<vmem>>, vector<32x32xf32>
      %cst_82 = arith.constant dense<0.000000e+00> : vector<16x32xf32>
      %163 = tpu.matmul %152, %162, %cst_82 {dimension_numbers = #tpu.dot_dimension_numbers<[1], [0], [0], [1], [0, 0, 1, 1], [], []>} : vector<16x32xf32>, vector<32x32xf32>, vector<16x32xf32> -> vector<16x32xf32>
      %c0_83 = arith.constant 0 : index
      %c0_84 = arith.constant 0 : index
      %164 = vector.load %arg10[%c0_83, %c0_84] : memref<1x32xf32, #tpu.memory_space<vmem>>, vector<1x32xf32>
      %165 = vector.broadcast %164 : vector<1x32xf32> to vector<16x32xf32>
      %166 = arith.addf %163, %165 : vector<16x32xf32>
      %167 = vector.extract_strided_slice %166 {offsets = [0, 0], sizes = [16, 8], strides = [1, 1]} : vector<16x32xf32> to vector<16x8xf32>
      %168 = vector.extract_strided_slice %166 {offsets = [0, 8], sizes = [16, 8], strides = [1, 1]} : vector<16x32xf32> to vector<16x8xf32>
      %169 = vector.extract_strided_slice %166 {offsets = [0, 16], sizes = [16, 8], strides = [1, 1]} : vector<16x32xf32> to vector<16x8xf32>
      %170 = vector.extract_strided_slice %166 {offsets = [0, 24], sizes = [16, 8], strides = [1, 1]} : vector<16x32xf32> to vector<16x8xf32>
      %c0_85 = arith.constant 0 : index
      %c0_86 = arith.constant 0 : index
      %c0_87 = arith.constant 0 : index
      %171 = vector.load %arg20[%c0_85, %c0_86, %c0_87] : memref<4x16x8xf32, #tpu.memory_space<vmem>>, vector<1x16x8xf32>
      %172 = vector.shape_cast %171 : vector<1x16x8xf32> to vector<16x8xf32>
      %173 = vector.shape_cast %158 : vector<16x8xf32> to vector<1x16x8xf32>
      tpu.vector_store %arg20[%c0_85, %c0_86, %c0_87], %173 {strides = array<i32>} : memref<4x16x8xf32, #tpu.memory_space<vmem>>, vector<1x16x8xf32>,
      %c0_88 = arith.constant 0 : index
      %c0_89 = arith.constant 0 : index
      %c0_90 = arith.constant 0 : index
      %174 = vector.load %arg21[%c0_88, %c0_89, %c0_90] : memref<4x16x8xf32, #tpu.memory_space<vmem>>, vector<1x16x8xf32>
      %175 = vector.shape_cast %174 : vector<1x16x8xf32> to vector<16x8xf32>
      %176 = vector.shape_cast %167 : vector<16x8xf32> to vector<1x16x8xf32>
      tpu.vector_store %arg21[%c0_88, %c0_89, %c0_90], %176 {strides = array<i32>} : memref<4x16x8xf32, #tpu.memory_space<vmem>>, vector<1x16x8xf32>,
      %c1_91 = arith.constant 1 : index
      %c0_92 = arith.constant 0 : index
      %c0_93 = arith.constant 0 : index
      %177 = vector.load %arg20[%c1_91, %c0_92, %c0_93] : memref<4x16x8xf32, #tpu.memory_space<vmem>>, vector<1x16x8xf32>
      %178 = vector.shape_cast %177 : vector<1x16x8xf32> to vector<16x8xf32>
      %179 = vector.shape_cast %159 : vector<16x8xf32> to vector<1x16x8xf32>
      tpu.vector_store %arg20[%c1_91, %c0_92, %c0_93], %179 {strides = array<i32>} : memref<4x16x8xf32, #tpu.memory_space<vmem>>, vector<1x16x8xf32>,
      %c1_94 = arith.constant 1 : index
      %c0_95 = arith.constant 0 : index
      %c0_96 = arith.constant 0 : index
      %180 = vector.load %arg21[%c1_94, %c0_95, %c0_96] : memref<4x16x8xf32, #tpu.memory_space<vmem>>, vector<1x16x8xf32>
      %181 = vector.shape_cast %180 : vector<1x16x8xf32> to vector<16x8xf32>
      %182 = vector.shape_cast %168 : vector<16x8xf32> to vector<1x16x8xf32>
      tpu.vector_store %arg21[%c1_94, %c0_95, %c0_96], %182 {strides = array<i32>} : memref<4x16x8xf32, #tpu.memory_space<vmem>>, vector<1x16x8xf32>,
      %c2_97 = arith.constant 2 : index
      %c0_98 = arith.constant 0 : index
      %c0_99 = arith.constant 0 : index
      %183 = vector.load %arg20[%c2_97, %c0_98, %c0_99] : memref<4x16x8xf32, #tpu.memory_space<vmem>>, vector<1x16x8xf32>
      %184 = vector.shape_cast %183 : vector<1x16x8xf32> to vector<16x8xf32>
      %185 = vector.shape_cast %160 : vector<16x8xf32> to vector<1x16x8xf32>
      tpu.vector_store %arg20[%c2_97, %c0_98, %c0_99], %185 {strides = array<i32>} : memref<4x16x8xf32, #tpu.memory_space<vmem>>, vector<1x16x8xf32>,
      %c2_100 = arith.constant 2 : index
      %c0_101 = arith.constant 0 : index
      %c0_102 = arith.constant 0 : index
      %186 = vector.load %arg21[%c2_100, %c0_101, %c0_102] : memref<4x16x8xf32, #tpu.memory_space<vmem>>, vector<1x16x8xf32>
      %187 = vector.shape_cast %186 : vector<1x16x8xf32> to vector<16x8xf32>
      %188 = vector.shape_cast %169 : vector<16x8xf32> to vector<1x16x8xf32>
      tpu.vector_store %arg21[%c2_100, %c0_101, %c0_102], %188 {strides = array<i32>} : memref<4x16x8xf32, #tpu.memory_space<vmem>>, vector<1x16x8xf32>,
      %c3_103 = arith.constant 3 : index
      %c0_104 = arith.constant 0 : index
      %c0_105 = arith.constant 0 : index
      %189 = vector.load %arg20[%c3_103, %c0_104, %c0_105] : memref<4x16x8xf32, #tpu.memory_space<vmem>>, vector<1x16x8xf32>
      %190 = vector.shape_cast %189 : vector<1x16x8xf32> to vector<16x8xf32>
      %191 = vector.shape_cast %161 : vector<16x8xf32> to vector<1x16x8xf32>
      tpu.vector_store %arg20[%c3_103, %c0_104, %c0_105], %191 {strides = array<i32>} : memref<4x16x8xf32, #tpu.memory_space<vmem>>, vector<1x16x8xf32>,
      %c3_106 = arith.constant 3 : index
      %c0_107 = arith.constant 0 : index
      %c0_108 = arith.constant 0 : index
      %192 = vector.load %arg21[%c3_106, %c0_107, %c0_108] : memref<4x16x8xf32, #tpu.memory_space<vmem>>, vector<1x16x8xf32>
      %193 = vector.shape_cast %192 : vector<1x16x8xf32> to vector<16x8xf32>
      %194 = vector.shape_cast %170 : vector<16x8xf32> to vector<1x16x8xf32>
      tpu.vector_store %arg21[%c3_106, %c0_107, %c0_108], %194 {strides = array<i32>} : memref<4x16x8xf32, #tpu.memory_space<vmem>>, vector<1x16x8xf32>,
    } else {
    }
    %c8_i32 = arith.constant 8 : i32
    %3 = arith.muli %arg1, %c8_i32 : i32
    %4 = tpu.assume_multiple %3, 8 : i32
    %c0 = arith.constant 0 : index
    %5 = arith.index_cast %4 : i32 to index
    %c0_1 = arith.constant 0 : index
    %6 = vector.load %arg2[%c0, %5, %c0_1] : memref<1x16x32xf32, #tpu.memory_space<vmem>>, vector<1x8x32xf32>
    %7 = vector.shape_cast %6 : vector<1x8x32xf32> to vector<8x32xf32>
    %c0_2 = arith.constant 0 : index
    %c0_3 = arith.constant 0 : index
    %8 = vector.load %arg3[%c0_2, %c0_3] : memref<1x32xf32, #tpu.memory_space<vmem>>, vector<1x32xf32>
    %c0_4 = arith.constant 0 : index
    %c0_5 = arith.constant 0 : index
    %9 = vector.load %arg4[%c0_4, %c0_5] : memref<1x32xf32, #tpu.memory_space<vmem>>, vector<1x32xf32>
    %cst = arith.constant dense<0.000000e+00> : vector<8xf32>
    %10 = vector.multi_reduction <add>, %7, %cst [1] : vector<8x32xf32> to vector<8xf32>
    %11 = vector.shape_cast %10 : vector<8xf32> to vector<8x1xf32>
    %cst_6 = arith.constant 3.200000e+01 : f32
    %12 = vector.broadcast %cst_6 : f32 to vector<8x1xf32>
    %13 = arith.divf %11, %12 : vector<8x1xf32>
    %14 = vector.broadcast %13 : vector<8x1xf32> to vector<8x32xf32>
    %15 = arith.subf %7, %14 : vector<8x32xf32>
    %16 = arith.mulf %15, %15 : vector<8x32xf32>
    %cst_7 = arith.constant dense<0.000000e+00> : vector<8xf32>
    %17 = vector.multi_reduction <add>, %16, %cst_7 [1] : vector<8x32xf32> to vector<8xf32>
    %18 = vector.shape_cast %17 : vector<8xf32> to vector<8x1xf32>
    %cst_8 = arith.constant 3.200000e+01 : f32
    %19 = vector.broadcast %cst_8 : f32 to vector<8x1xf32>
    %20 = arith.divf %18, %19 : vector<8x1xf32>
    %21 = vector.broadcast %13 : vector<8x1xf32> to vector<8x32xf32>
    %22 = arith.subf %7, %21 : vector<8x32xf32>
    %cst_9 = arith.constant 9.99999974E-6 : f32
    %23 = vector.broadcast %cst_9 : f32 to vector<8x1xf32>
    %24 = arith.addf %20, %23 : vector<8x1xf32>
    %25 = math.rsqrt %24 : vector<8x1xf32>
    %26 = vector.broadcast %25 : vector<8x1xf32> to vector<8x32xf32>
    %27 = arith.mulf %22, %26 : vector<8x32xf32>
    %28 = vector.broadcast %8 : vector<1x32xf32> to vector<8x32xf32>
    %29 = arith.mulf %27, %28 : vector<8x32xf32>
    %30 = vector.broadcast %9 : vector<1x32xf32> to vector<8x32xf32>
    %31 = arith.addf %29, %30 : vector<8x32xf32>
    %c0_10 = arith.constant 0 : index
    %c0_11 = arith.constant 0 : index
    %32 = vector.load %arg5[%c0_10, %c0_11] : memref<32x32xf32, #tpu.memory_space<vmem>>, vector<32x32xf32>
    %cst_12 = arith.constant dense<0.000000e+00> : vector<8x32xf32>
    %33 = tpu.matmul %31, %32, %cst_12 {dimension_numbers = #tpu.dot_dimension_numbers<[1], [0], [0], [1], [0, 0, 1, 1], [], []>} : vector<8x32xf32>, vector<32x32xf32>, vector<8x32xf32> -> vector<8x32xf32>
    %c0_13 = arith.constant 0 : index
    %c0_14 = arith.constant 0 : index
    %34 = vector.load %arg8[%c0_13, %c0_14] : memref<1x32xf32, #tpu.memory_space<vmem>>, vector<1x32xf32>
    %35 = vector.broadcast %34 : vector<1x32xf32> to vector<8x32xf32>
    %36 = arith.addf %33, %35 : vector<8x32xf32>
    %37 = vector.extract_strided_slice %36 {offsets = [0, 0], sizes = [8, 8], strides = [1, 1]} : vector<8x32xf32> to vector<8x8xf32>
    %38 = vector.extract_strided_slice %36 {offsets = [0, 8], sizes = [8, 8], strides = [1, 1]} : vector<8x32xf32> to vector<8x8xf32>
    %39 = vector.extract_strided_slice %36 {offsets = [0, 16], sizes = [8, 8], strides = [1, 1]} : vector<8x32xf32> to vector<8x8xf32>
    %40 = vector.extract_strided_slice %36 {offsets = [0, 24], sizes = [8, 8], strides = [1, 1]} : vector<8x32xf32> to vector<8x8xf32>
    %41 = vector.shape_cast %37 : vector<8x8xf32> to vector<1x8x8xf32>
    %42 = vector.shape_cast %38 : vector<8x8xf32> to vector<1x8x8xf32>
    %43 = vector.shape_cast %39 : vector<8x8xf32> to vector<1x8x8xf32>
    %44 = vector.shape_cast %40 : vector<8x8xf32> to vector<1x8x8xf32>
    %45 = tpu.concatenate %41, %42, %43, %44 in 0 : vector<1x8x8xf32>, vector<1x8x8xf32>, vector<1x8x8xf32>, vector<1x8x8xf32> -> vector<4x8x8xf32>
    %c0_15 = arith.constant 0 : index
    %c0_16 = arith.constant 0 : index
    %c0_17 = arith.constant 0 : index
    %46 = vector.load %arg20[%c0_15, %c0_16, %c0_17] : memref<4x16x8xf32, #tpu.memory_space<vmem>>, vector<4x16x8xf32>
    "tpu.trace_start"() <{level = 10 : i32, message = "hqd,hkd->hqk"}> : () -> ()
    %cst_18 = arith.constant dense<0.000000e+00> : vector<4x8x16xf32>
    %47 = tpu.matmul %45, %46, %cst_18 {dimension_numbers = #tpu.dot_dimension_numbers<[2], [2], [1], [1], [0, 0, 0, 1, 1, 1], [0], [0]>} : vector<4x8x8xf32>, vector<4x16x8xf32>, vector<4x8x16xf32> -> vector<4x8x16xf32>
    "tpu.trace_stop"() : () -> ()
    %cst_19 = arith.constant dense<0xFF800000> : vector<4x8xf32>
    %48 = vector.multi_reduction <maximumf>, %47, %cst_19 [2] : vector<4x8x16xf32> to vector<4x8xf32>
    %49 = vector.shape_cast %48 : vector<4x8xf32> to vector<4x8x1xf32>
    %50 = vector.broadcast %49 : vector<4x8x1xf32> to vector<4x8x16xf32>
    %51 = arith.subf %47, %50 : vector<4x8x16xf32>
    %52 = math.exp %51 : vector<4x8x16xf32>
    %cst_20 = arith.constant dense<0.000000e+00> : vector<4x8xf32>
    %53 = vector.multi_reduction <add>, %52, %cst_20 [2] : vector<4x8x16xf32> to vector<4x8xf32>
    %54 = vector.shape_cast %53 : vector<4x8xf32> to vector<4x8x1xf32>
    %c0_21 = arith.constant 0 : index
    %c0_22 = arith.constant 0 : index
    %c0_23 = arith.constant 0 : index
    %55 = vector.load %arg21[%c0_21, %c0_22, %c0_23] : memref<4x16x8xf32, #tpu.memory_space<vmem>>, vector<4x16x8xf32>
    "tpu.trace_start"() <{level = 10 : i32, message = "hqk,hkd->hqd"}> : () -> ()
    %cst_24 = arith.constant dense<0.000000e+00> : vector<4x8x8xf32>
    %56 = tpu.matmul %52, %55, %cst_24 {dimension_numbers = #tpu.dot_dimension_numbers<[2], [1], [1], [2], [0, 0, 0, 1, 1, 2], [0], [0]>} : vector<4x8x16xf32>, vector<4x16x8xf32>, vector<4x8x8xf32> -> vector<4x8x8xf32>
    "tpu.trace_stop"() : () -> ()
    %57 = tpu.reciprocal %54 {approx = true} : vector<4x8x1xf32> -> vector<4x8x1xf32>
    %58 = vector.broadcast %57 : vector<4x8x1xf32> to vector<4x8x8xf32>
    %59 = arith.mulf %56, %58 : vector<4x8x8xf32>
    %60 = vector.extract_strided_slice %59 {offsets = [0, 0, 0], sizes = [1, 8, 8], strides = [1, 1, 1]} : vector<4x8x8xf32> to vector<1x8x8xf32>
    %61 = vector.shape_cast %60 : vector<1x8x8xf32> to vector<8x8xf32>
    %c0_25 = arith.constant 0 : index
    %c0_26 = arith.constant 0 : index
    %c0_27 = arith.constant 0 : index
    %62 = vector.load %arg11[%c0_25, %c0_26, %c0_27] : memref<4x8x32xf32, #tpu.memory_space<vmem>>, vector<1x8x32xf32>
    %63 = vector.shape_cast %62 : vector<1x8x32xf32> to vector<8x32xf32>
    %cst_28 = arith.constant dense<0.000000e+00> : vector<8x32xf32>
    %64 = tpu.matmul %61, %63, %cst_28 {dimension_numbers = #tpu.dot_dimension_numbers<[1], [0], [0], [1], [0, 0, 1, 1], [], []>} : vector<8x8xf32>, vector<8x32xf32>, vector<8x32xf32> -> vector<8x32xf32>
    %65 = vector.extract_strided_slice %59 {offsets = [1, 0, 0], sizes = [1, 8, 8], strides = [1, 1, 1]} : vector<4x8x8xf32> to vector<1x8x8xf32>
    %66 = vector.shape_cast %65 : vector<1x8x8xf32> to vector<8x8xf32>
    %c1 = arith.constant 1 : index
    %c0_29 = arith.constant 0 : index
    %c0_30 = arith.constant 0 : index
    %67 = vector.load %arg11[%c1, %c0_29, %c0_30] : memref<4x8x32xf32, #tpu.memory_space<vmem>>, vector<1x8x32xf32>
    %68 = vector.shape_cast %67 : vector<1x8x32xf32> to vector<8x32xf32>
    %cst_31 = arith.constant dense<0.000000e+00> : vector<8x32xf32>
    %69 = tpu.matmul %66, %68, %cst_31 {dimension_numbers = #tpu.dot_dimension_numbers<[1], [0], [0], [1], [0, 0, 1, 1], [], []>} : vector<8x8xf32>, vector<8x32xf32>, vector<8x32xf32> -> vector<8x32xf32>
    %70 = arith.addf %64, %69 : vector<8x32xf32>
    %71 = vector.extract_strided_slice %59 {offsets = [2, 0, 0], sizes = [1, 8, 8], strides = [1, 1, 1]} : vector<4x8x8xf32> to vector<1x8x8xf32>
    %72 = vector.shape_cast %71 : vector<1x8x8xf32> to vector<8x8xf32>
    %c2 = arith.constant 2 : index
    %c0_32 = arith.constant 0 : index
    %c0_33 = arith.constant 0 : index
    %73 = vector.load %arg11[%c2, %c0_32, %c0_33] : memref<4x8x32xf32, #tpu.memory_space<vmem>>, vector<1x8x32xf32>
    %74 = vector.shape_cast %73 : vector<1x8x32xf32> to vector<8x32xf32>
    %cst_34 = arith.constant dense<0.000000e+00> : vector<8x32xf32>
    %75 = tpu.matmul %72, %74, %cst_34 {dimension_numbers = #tpu.dot_dimension_numbers<[1], [0], [0], [1], [0, 0, 1, 1], [], []>} : vector<8x8xf32>, vector<8x32xf32>, vector<8x32xf32> -> vector<8x32xf32>
    %76 = arith.addf %70, %75 : vector<8x32xf32>
    %77 = vector.extract_strided_slice %59 {offsets = [3, 0, 0], sizes = [1, 8, 8], strides = [1, 1, 1]} : vector<4x8x8xf32> to vector<1x8x8xf32>
    %78 = vector.shape_cast %77 : vector<1x8x8xf32> to vector<8x8xf32>
    %c3 = arith.constant 3 : index
    %c0_35 = arith.constant 0 : index
    %c0_36 = arith.constant 0 : index
    %79 = vector.load %arg11[%c3, %c0_35, %c0_36] : memref<4x8x32xf32, #tpu.memory_space<vmem>>, vector<1x8x32xf32>
    %80 = vector.shape_cast %79 : vector<1x8x32xf32> to vector<8x32xf32>
    %cst_37 = arith.constant dense<0.000000e+00> : vector<8x32xf32>
    %81 = tpu.matmul %78, %80, %cst_37 {dimension_numbers = #tpu.dot_dimension_numbers<[1], [0], [0], [1], [0, 0, 1, 1], [], []>} : vector<8x8xf32>, vector<8x32xf32>, vector<8x32xf32> -> vector<8x32xf32>
    %82 = arith.addf %76, %81 : vector<8x32xf32>
    %c0_38 = arith.constant 0 : index
    %c0_39 = arith.constant 0 : index
    %83 = vector.load %arg12[%c0_38, %c0_39] : memref<1x32xf32, #tpu.memory_space<vmem>>, vector<1x32xf32>
    %84 = vector.broadcast %83 : vector<1x32xf32> to vector<8x32xf32>
    %85 = arith.addf %82, %84 : vector<8x32xf32>
    %86 = arith.addf %7, %85 : vector<8x32xf32>
    %c0_40 = arith.constant 0 : index
    %c0_41 = arith.constant 0 : index
    %87 = vector.load %arg13[%c0_40, %c0_41] : memref<1x32xf32, #tpu.memory_space<vmem>>, vector<1x32xf32>
    %c0_42 = arith.constant 0 : index
    %c0_43 = arith.constant 0 : index
    %88 = vector.load %arg14[%c0_42, %c0_43] : memref<1x32xf32, #tpu.memory_space<vmem>>, vector<1x32xf32>
    %cst_44 = arith.constant dense<0.000000e+00> : vector<8xf32>
    %89 = vector.multi_reduction <add>, %86, %cst_44 [1] : vector<8x32xf32> to vector<8xf32>
    %90 = vector.shape_cast %89 : vector<8xf32> to vector<8x1xf32>
    %cst_45 = arith.constant 3.200000e+01 : f32
    %91 = vector.broadcast %cst_45 : f32 to vector<8x1xf32>
    %92 = arith.divf %90, %91 : vector<8x1xf32>
    %93 = vector.broadcast %92 : vector<8x1xf32> to vector<8x32xf32>
    %94 = arith.subf %86, %93 : vector<8x32xf32>
    %95 = arith.mulf %94, %94 : vector<8x32xf32>
    %cst_46 = arith.constant dense<0.000000e+00> : vector<8xf32>
    %96 = vector.multi_reduction <add>, %95, %cst_46 [1] : vector<8x32xf32> to vector<8xf32>
    %97 = vector.shape_cast %96 : vector<8xf32> to vector<8x1xf32>
    %cst_47 = arith.constant 3.200000e+01 : f32
    %98 = vector.broadcast %cst_47 : f32 to vector<8x1xf32>
    %99 = arith.divf %97, %98 : vector<8x1xf32>
    %100 = vector.broadcast %92 : vector<8x1xf32> to vector<8x32xf32>
    %101 = arith.subf %86, %100 : vector<8x32xf32>
    %cst_48 = arith.constant 9.99999974E-6 : f32
    %102 = vector.broadcast %cst_48 : f32 to vector<8x1xf32>
    %103 = arith.addf %99, %102 : vector<8x1xf32>
    %104 = math.rsqrt %103 : vector<8x1xf32>
    %105 = vector.broadcast %104 : vector<8x1xf32> to vector<8x32xf32>
    %106 = arith.mulf %101, %105 : vector<8x32xf32>
    %107 = vector.broadcast %87 : vector<1x32xf32> to vector<8x32xf32>
    %108 = arith.mulf %106, %107 : vector<8x32xf32>
    %109 = vector.broadcast %88 : vector<1x32xf32> to vector<8x32xf32>
    %110 = arith.addf %108, %109 : vector<8x32xf32>
    %c0_49 = arith.constant 0 : index
    %c0_50 = arith.constant 0 : index
    %111 = vector.load %arg15[%c0_49, %c0_50] : memref<32x64xf32, #tpu.memory_space<vmem>>, vector<32x64xf32>
    %cst_51 = arith.constant dense<0.000000e+00> : vector<8x64xf32>
    %112 = tpu.matmul %110, %111, %cst_51 {dimension_numbers = #tpu.dot_dimension_numbers<[1], [0], [0], [1], [0, 0, 1, 1], [], []>} : vector<8x32xf32>, vector<32x64xf32>, vector<8x64xf32> -> vector<8x64xf32>
    %c0_52 = arith.constant 0 : index
    %c0_53 = arith.constant 0 : index
    %113 = vector.load %arg16[%c0_52, %c0_53] : memref<1x64xf32, #tpu.memory_space<vmem>>, vector<1x64xf32>
    %114 = vector.broadcast %113 : vector<1x64xf32> to vector<8x64xf32>
    %115 = arith.addf %112, %114 : vector<8x64xf32>
    %cst_54 = arith.constant 0.000000e+00 : f32
    %116 = vector.broadcast %cst_54 : f32 to vector<8x64xf32>
    %117 = arith.maximumf %115, %116 : vector<8x64xf32>
    %c0_55 = arith.constant 0 : index
    %c0_56 = arith.constant 0 : index
    %118 = vector.load %arg17[%c0_55, %c0_56] : memref<64x32xf32, #tpu.memory_space<vmem>>, vector<64x32xf32>
    %cst_57 = arith.constant dense<0.000000e+00> : vector<8x32xf32>
    %119 = tpu.matmul %117, %118, %cst_57 {dimension_numbers = #tpu.dot_dimension_numbers<[1], [0], [0], [1], [0, 0, 1, 1], [], []>} : vector<8x64xf32>, vector<64x32xf32>, vector<8x32xf32> -> vector<8x32xf32>
    %c0_58 = arith.constant 0 : index
    %c0_59 = arith.constant 0 : index
    %120 = vector.load %arg18[%c0_58, %c0_59] : memref<1x32xf32, #tpu.memory_space<vmem>>, vector<1x32xf32>
    %121 = vector.broadcast %120 : vector<1x32xf32> to vector<8x32xf32>
    %122 = arith.addf %119, %121 : vector<8x32xf32>
    %123 = arith.addf %86, %122 : vector<8x32xf32>
    %c0_60 = arith.constant 0 : index
    %c0_61 = arith.constant 0 : index
    %c0_62 = arith.constant 0 : index
    %124 = vector.load %arg19[%c0_60, %c0_61, %c0_62] : memref<1x8x32xf32, #tpu.memory_space<vmem>>, vector<1x8x32xf32>
    %125 = vector.shape_cast %124 : vector<1x8x32xf32> to vector<8x32xf32>
    %126 = vector.shape_cast %123 : vector<8x32xf32> to vector<1x8x32xf32>
    tpu.vector_store %arg19[%c0_60, %c0_61, %c0_62], %126 {strides = array<i32>} : memref<1x8x32xf32, #tpu.memory_space<vmem>>, vector<1x8x32xf32>,
    return
  }
  func.func @transform_0(%arg0: i32, %arg1: i32) -> (i32, i32, i32) {
    %c0_i32 = arith.constant 0 : i32
    %c0_i32_0 = arith.constant 0 : i32
    %c0_i32_1 = arith.constant 0 : i32
    return %arg0, %c0_i32, %c0_i32_0 : i32, i32, i32
  }
  func.func @transform_1(%arg0: i32, %arg1: i32) -> (i32, i32) {
    %c0_i32 = arith.constant 0 : i32
    %c0_i32_0 = arith.constant 0 : i32
    %c0_i32_1 = arith.constant 0 : i32
    return %c0_i32, %c0_i32_0 : i32, i32
  }
  func.func @transform_2(%arg0: i32, %arg1: i32) -> (i32, i32) {
    %c0_i32 = arith.constant 0 : i32
    %c0_i32_0 = arith.constant 0 : i32
    %c0_i32_1 = arith.constant 0 : i32
    return %c0_i32, %c0_i32_0 : i32, i32
  }
  func.func @transform_3(%arg0: i32, %arg1: i32) -> (i32, i32) {
    %c0_i32 = arith.constant 0 : i32
    %c0_i32_0 = arith.constant 0 : i32
    %c0_i32_1 = arith.constant 0 : i32
    return %c0_i32, %c0_i32_0 : i32, i32
  }
  func.func @transform_4(%arg0: i32, %arg1: i32) -> (i32, i32) {
    %c0_i32 = arith.constant 0 : i32
    %c0_i32_0 = arith.constant 0 : i32
    %c0_i32_1 = arith.constant 0 : i32
    return %c0_i32, %c0_i32_0 : i32, i32
  }
  func.func @transform_5(%arg0: i32, %arg1: i32) -> (i32, i32) {
    %c0_i32 = arith.constant 0 : i32
    %c0_i32_0 = arith.constant 0 : i32
    %c0_i32_1 = arith.constant 0 : i32
    return %c0_i32, %c0_i32_0 : i32, i32
  }
  func.func @transform_6(%arg0: i32, %arg1: i32) -> (i32, i32) {
    %c0_i32 = arith.constant 0 : i32
    %c0_i32_0 = arith.constant 0 : i32
    %c0_i32_1 = arith.constant 0 : i32
    return %c0_i32, %c0_i32_0 : i32, i32
  }
  func.func @transform_7(%arg0: i32, %arg1: i32) -> (i32, i32) {
    %c0_i32 = arith.constant 0 : i32
    %c0_i32_0 = arith.constant 0 : i32
    %c0_i32_1 = arith.constant 0 : i32
    return %c0_i32, %c0_i32_0 : i32, i32
  }
  func.func @transform_8(%arg0: i32, %arg1: i32) -> (i32, i32) {
    %c0_i32 = arith.constant 0 : i32
    %c0_i32_0 = arith.constant 0 : i32
    %c0_i32_1 = arith.constant 0 : i32
    return %c0_i32, %c0_i32_0 : i32, i32
  }
  func.func @transform_9(%arg0: i32, %arg1: i32) -> (i32, i32, i32) {
    %c0_i32 = arith.constant 0 : i32
    %c0_i32_0 = arith.constant 0 : i32
    %c0_i32_1 = arith.constant 0 : i32
    %c0_i32_2 = arith.constant 0 : i32
    return %c0_i32, %c0_i32_0, %c0_i32_1 : i32, i32, i32
  }
  func.func @transform_10(%arg0: i32, %arg1: i32) -> (i32, i32) {
    %c0_i32 = arith.constant 0 : i32
    %c0_i32_0 = arith.constant 0 : i32
    %c0_i32_1 = arith.constant 0 : i32
    return %c0_i32, %c0_i32_0 : i32, i32
  }
  func.func @transform_11(%arg0: i32, %arg1: i32) -> (i32, i32) {
    %c0_i32 = arith.constant 0 : i32
    %c0_i32_0 = arith.constant 0 : i32
    %c0_i32_1 = arith.constant 0 : i32
    return %c0_i32, %c0_i32_0 : i32, i32
  }
  func.func @transform_12(%arg0: i32, %arg1: i32) -> (i32, i32) {
    %c0_i32 = arith.constant 0 : i32
    %c0_i32_0 = arith.constant 0 : i32
    %c0_i32_1 = arith.constant 0 : i32
    return %c0_i32, %c0_i32_0 : i32, i32
  }
  func.func @transform_13(%arg0: i32, %arg1: i32) -> (i32, i32) {
    %c0_i32 = arith.constant 0 : i32
    %c0_i32_0 = arith.constant 0 : i32
    %c0_i32_1 = arith.constant 0 : i32
    return %c0_i32, %c0_i32_0 : i32, i32
  }
  func.func @transform_14(%arg0: i32, %arg1: i32) -> (i32, i32) {
    %c0_i32 = arith.constant 0 : i32
    %c0_i32_0 = arith.constant 0 : i32
    %c0_i32_1 = arith.constant 0 : i32
    return %c0_i32, %c0_i32_0 : i32, i32
  }
  func.func @transform_15(%arg0: i32, %arg1: i32) -> (i32, i32) {
    %c0_i32 = arith.constant 0 : i32
    %c0_i32_0 = arith.constant 0 : i32
    %c0_i32_1 = arith.constant 0 : i32
    return %c0_i32, %c0_i32_0 : i32, i32
  }
  func.func @transform_16(%arg0: i32, %arg1: i32) -> (i32, i32) {
    %c0_i32 = arith.constant 0 : i32
    %c0_i32_0 = arith.constant 0 : i32
    %c0_i32_1 = arith.constant 0 : i32
    return %c0_i32, %c0_i32_0 : i32, i32
  }
  func.func @transform_17(%arg0: i32, %arg1: i32) -> (i32, i32, i32) {
    %c0_i32 = arith.constant 0 : i32
    %c0_i32_0 = arith.constant 0 : i32
    return %arg0, %arg1, %c0_i32 : i32, i32, i32
  }
}

</mosaic_0001>

<bundles_post_ra>
// kernel: tpu_custom_call.1
= control target key start
LH: loop header
LB: loop body
LE: loop exit
PB: predicated region body
PF: predicated region fallthrough
CT: control target
= control target key end

     0   :  { %s2415_s0 = inlined_call_operand.vmem [shape: f32[2,16,32], index: 0, kind: input, shape index: {}]   ;;  %s2416_s1 = inlined_call_operand.hbm [shape: f32[1,32], index: 1, kind: input, shape index: {}]   ;;  %s2417_s2 = inlined_call_operand.vmem [shape: f32[1,32], index: 2, kind: input, shape index: {}]   ;;  %s2418_s3 = inlined_call_operand.vmem [shape: f32[32,32], index: 3, kind: input, shape index: {}]   ;;  %s2419_s4 = inlined_call_operand.vmem [shape: f32[32,32], index: 4, kind: input, shape index: {}]   ;;  %s2420_s5 = inlined_call_operand.hbm [shape: f32[32,32], index: 5, kind: input, shape index: {}]   ;;  %s2421_s6 = inlined_call_operand.vmem [shape: f32[1,32], index: 6, kind: input, shape index: {}]   ;;  %s2422_s7 = inlined_call_operand.vmem [shape: f32[1,32], index: 7, kind: input, shape index: {}]   ;;  %s2423_s8 = inlined_call_operand.vmem [shape: f32[1,32], index: 8, kind: input, shape index: {}]   ;;  %s2424_s9 = inlined_call_operand.hbm [shape: f32[4,8,32], index: 9, kind: input, shape index: {}]   ;;  %s2425_s10 = inlined_call_operand.vmem [shape: f32[1,32], index: 10, kind: input, shape index: {}]   ;;  %s2426_s11 = inlined_call_operand.vmem [shape: f32[1,32], index: 11, kind: input, shape index: {}]   ;;  %s2427_s12 = inlined_call_operand.vmem [shape: f32[1,32], index: 12, kind: input, shape index: {}]   ;;  %s2428_s13 = inlined_call_operand.hbm [shape: f32[32,64], index: 13, kind: input, shape index: {}]   ;;  %s2429_s14 = inlined_call_operand.vmem [shape: f32[1,64], index: 14, kind: input, shape index: {}]   ;;  %s2430_s15 = inlined_call_operand.vmem [shape: f32[64,32], index: 15, kind: input, shape index: {}]   ;;  %s2431_s16 = inlined_call_operand.vmem [shape: f32[1,32], index: 16, kind: input, shape index: {}]   ;;  %s2432_s17 = inlined_call_operand.hbm [shape: f32[2,16,32], index: 17, kind: output, shape index: {}]  }
   0x1   :  { %2446 = sst [smem:[#allocation27_spill]] %s2415_s0 }
   0x2   :  { %2447 = sst [smem:[#allocation28_spill]] %s2416_s1 }
   0x3   :  { %2448 = sst [smem:[#allocation29_spill]] %s2420_s5 }
   0x4   :  { %2449 = sst [smem:[#allocation30_spill]] %s2426_s11 }
   0x5   :  { %2450 = sst [smem:[#allocation31_spill]] %s2427_s12 }
   0x6   :  { %2451 = sst [smem:[#allocation32_spill]] %s2429_s14 }
   0x7   :  { %2452 = sst [smem:[#allocation33_spill]] %s2430_s15 }
   0x8   :  { %2453 = sst [smem:[#allocation34_spill]] %s2431_s16 }
   0x9   :  { %2454 = sst [smem:[#allocation35_spill]] %s2432_s17 }
   0xa   :  { %22 = vsyncpa [#allocation5], 0 }
   0xb   :  { %23 = vsyncpa [#allocation8], 0 }
   0xc   :  { %24 = vsyncpa [#allocation11], 0 }
   0xd   :  { %25 = vsyncpa [#allocation6], 0 }
   0xe   :  { %27 = vsyncpa [#allocation6 + $0x1], 0  ;;  %s2069_s24 = smov 0   ;;  %s2071_s25 = smov 0  }
   0xf   :  { %s2073_s26 = smov 0   ;;  %s2075_s27 = smov 0  }
  0x10   :  { %s2077_s28 = smov 0   ;;  %s2079_s29 = smov 0  }
  0x11   :  { %s2081_s0 = smov 0   ;;  %s2083_s30 = smov 0  }
  0x12 LB: > { %2455 = sst [smem:[#allocation17_spill]] %s1935_s24  ;;  %s1516_s18 = sadd.s32 4294967295, %s1963_s30   ;;  %s1963_s30 = sphi %s2083_s30, %s33_s30   ;;  %s1959_s0 = sphi %s2081_s0, %s2492_s0   ;;  %s1955_s29 = sphi %s2079_s29, %s2488_s29   ;;  %s1951_s28 = sphi %s2077_s28, %s2487_s28   ;;  %s1947_s27 = sphi %s2075_s27, %s2486_s27   ;;  %s1943_s26 = sphi %s2073_s26, %s2485_s26   ;;  %s1939_s25 = sphi %s2071_s25, %s2491_s25   ;;  %s1935_s24 = sphi %s2069_s24, %s2490_s24  }
  0x13   : > { %2456 = sst [smem:[#allocation18_spill]] %s1943_s26  ;;  %s1517_s19 = sadd.s32 4294967294, %s1963_s30  }
  0x14   : > { %2457 = sst [smem:[#allocation19_spill]] %s1955_s29  ;;  %s42_s1 = sadd.s32 1, %s1955_s29 }
  0x15   : > { %2458 = sst [smem:[#allocation20_spill]] %s1959_s0  ;;  %s45_s20 = sadd.s32 1, %s1959_s0 }
  0x16   : > { %2459 = sst [smem:[#allocation21_spill]] %s1963_s30  ;;  %p43_p0 = scmp.ge.s32.totalorder %s42_s1, 2 }
  0x17   : > { %s416_s21 = sadd.s32 1, %s1943_s26  ;;  %p426_p1 = scmp.ne.s32.totalorder %s1943_s26, %s1939_s25 }
  0x18   : > { %p427_p2 = scmp.eq.s32.totalorder %s1516_s18, 3  ;;  %s2494_s1 = smov (%p43_p0, %s42_s1), 0 }
  0x19   : > { %2460 = sst [smem:[#allocation22_spill]] %s2494_s1  ;;  %s2496_s20 = smov (!%p43_p0, %s45_s20), %s1959_s0 }
  0x1a   : > { %s412_s22 = ssub.s32 %s1955_s29, %s2494_s1  ;;  %p2121_p3 = por %p427_p2, %p426_p1 }
  0x1b   : > { %p47_p4 = scmp.ge.s32.totalorder %s2496_s20, 2  ;;  %p432_p5 = scmp.ne.s32.totalorder %s1939_s25, %s1935_s24 }
  0x1c   : > { %s2461_s23 = scalar_select %p2121_p3, 1, 0 }
  0x1d   : > { %p433_p6 = scmp.eq.s32.totalorder %s1517_s19, 3  ;;  %p1518_p7 = scmp.ge.s32.totalorder %s1963_s30, 1 }
  0x1e   : > { %2462 = sst [smem:[#allocation23_spill]] %s2461_s23  ;;  %s2498_s20 = smov (%p47_p4, %s2496_s20), 0 }
  0x1f   : > { %2463 = sst [smem:[#allocation24_spill]] %s2498_s20  ;;  %p2130_p8 = por %p433_p6, %p432_p5 }
  0x20   : > { %p440_p9 = scmp.lt.s32.totalorder %s1963_s30, 5  ;;  %s411_s16 = ssub.s32 %s1959_s0, %s2498_s20 }
  0x21   : > { %s2464_s17 = scalar_select %p2130_p8, 1, 0 }
  0x22   : > { %s413_s14 = sor.u32 %s412_s22, %s411_s16  ;;  %p2137_p10 = pnand %p1518_p7, %p440_p9 }
  0x23   : > { %2465 = sst [smem:[#allocation25_spill]] %s2464_s17  ;;  %p414_p11 = scmp.eq.s32.totalorder %s413_s14, 0 }
  0x24   : > { %p2141_p12 = scmp.eq.s32.totalorder %s1516_s18, 0  ;;  %p1593_p13 = pneg %p2137_p10 }
  0x25   : > { %s2468_s5 = sld [smem:[#allocation29_spill]]  ;;  %s1965_s14 = smov [#allocation7]  }
  0x26   : > { %s2151_s30 = scalar_select %p414_p11, %s1943_s26, %s416_s21  }
  0x27   : > { %p2155_p0 = pnand %p2141_p12, %p1593_p13  ;;  %s474_s18 = sshll.u32 %s1965_s14, 4  ;;  %s475_s18 = int_to_ptr.vmem [resolvable:$true] %s474_s18 }
  0x28   : > { %2469 = sst [smem:[#allocation26_spill]] %s2151_s30  ;;  %s1966_s22 = smov 128  }
  0x29   : > { %s1967_s20 = smov 8   ;;  %s2471_s21 = sld [smem:[#allocation28_spill]] }
  0x2a   : > { %s1968_s0 = smov [#allocation4]   ;;  %s495_s12 = sshll.u32 %s2424_s9, 4  ;;  %s496_s12 = int_to_ptr.hbm [resolvable:$true] %s495_s12 }
  0x2b   : > { %s472_s17 = sshll.u32 %s2468_s5, 4  ;;  %s454_s30 = sshll.u32 %s1968_s0, 4  ;;  %s473_s17 = int_to_ptr.hbm [resolvable:$true] %s472_s17  ;;  %s455_s30 = int_to_ptr.vmem [resolvable:$true] %s454_s30 }
  0x2c   : > { %1599 = dma.hbm_to_vmem [thread:$0]  (!%p2155_p0), %s473_s17, 512, %s475_s18, [#allocation8], %s1966_s22, %s1966_s22, %s1967_s20  }
  0x2d   : > { %s1969_s14 = smov [#allocation9]   ;;  %s518_s18 = sshll.u32 %s2428_s13, 4  ;;  %s519_s18 = int_to_ptr.hbm [resolvable:$true] %s518_s18 }
  0x2e   : > { %s497_s11 = sshll.u32 %s1969_s14, 4  ;;  %s1970_s24 = smov [#allocation10]   ;;  %s498_s11 = int_to_ptr.vmem [resolvable:$true] %s497_s11 }
  0x2f   : > { %s452_s5 = sshll.u32 %s2471_s21, 4  ;;  %s520_s0 = sshll.u32 %s1970_s24, 4  ;;  %s453_s5 = int_to_ptr.hbm [resolvable:$true] %s452_s5  ;;  %s521_s0 = int_to_ptr.vmem [resolvable:$true] %s520_s0 }
  0x30   : > { %1596 = dma.hbm_to_vmem [thread:$0]  (!%p2155_p0), %s453_s5, 16, %s455_s30, [#allocation5]  }
  0x31   : > { %1602 = dma.hbm_to_vmem [thread:$0]  (!%p2155_p0), %s496_s12, 512, %s498_s11, [#allocation8], %s1966_s22, %s1966_s22, %s1967_s20  }
  0x32   : > { %1605 = dma.hbm_to_vmem [thread:$0]  (!%p2155_p0), %s519_s18, 512, %s521_s0, [#allocation11], %s1966_s22, %s1966_s22, %s1967_s20  }
  0x33   : > { %553 = sbr.rel (%p2137_p10) target bundleno = 2209 (0x8a1), region = 88 }
  0x38   : > { %1918 = dma.done.wait (%p2141_p12), [#allocation5], 16  }
  0x39   : > { %1920 = vsyncadd (%p2141_p12), [#allocation5], 4294967280 }
  0x3a   : > { %1922 = dma.done.wait (%p2141_p12), [#allocation8], 1024  }
  0x3b   : > { %1924 = vsyncadd (%p2141_p12), [#allocation8], 4294966272 }
  0x3c   : > { %1926 = dma.done.wait (%p2141_p12), [#allocation11], 512  }
  0x3d   : > { %1928 = vsyncadd (%p2141_p12), [#allocation11], 4294966784  ;;  %s618_s5 = sand.u32 1, %s1939_s25   ;;  %p621_p1 = scmp.lt.s32.totalorder %s1951_s28, 1 }
  0x3e   : > { %s2194_s11 = sshll.u32 %s618_s5, 3  ;;  %s2472_s1 = sld [smem:[#allocation27_spill]] }
  0x3f   : > { %s622_s12 = scalar_select %p621_p1, %s1951_s28, 1 }
  0x40   : > { %s620_s23 = scalar_lea.vmem [#allocation12], %s2194_s11  ;;  %p1532_p2 = scmp.ne.s32.totalorder %s1947_s27, 0 }
  0x41   : > { %s1566_s15 = sshll.u32 %s622_s12, 4  ;;  %s1973_s29 = smov (!%p1532_p2), 104  }
  0x42   : > { %629 = sbr.rel (%p1532_p2) target bundleno = 616 (0x268), region = 108  ;;  %s1974_s16 = smov (!%p1532_p2), 112  }
  0x44   : > { %s2200_s20 = scalar_lea.vmem %s2472_s1, %s1566_s15  ;;  %s1972_s1 = smov (!%p1532_p2), 120  }
  0x47   : > { %v631_v0 = vld [vmem:[%s2200_s20 + $0x8] sm:$0xff]  ;;  %vm634_vm0 = vcmask 261120   ;;  %v630_v2 = vld [vmem:[%s2200_s20] sm:$0xff]  ;;  %v1971_v4 = vmov 32.0   ;;  %v699_v21 = vld [vmem:[%s2419_s4 + $0x18] sm:$0xff]  ;;  %vm764_vm8 = vcmask 64512  }
  0x48   : > { %v638_v1 = vsel %vm634_vm0, %v631_v0, 0.0  ;;  %v635_v3 = vsel %vm634_vm0, %v630_v2, 0.0  ;;  %1701 = vrcp.f32 %v1971_v4  ;;  %v736_v22 = vld [vmem:[#allocation7 + $0x18] sm:$0xff]  ;;  %1567 = vmatpush.msra.mxu2 %v699_v21  ;;  %v698_v23 = vld [vmem:[%s2419_s4 + $0x10] sm:$0xff]  ;;  %722 = vmatpush.msra.mxu0 %v699_v21  ;;  %v697_v25 = vld [vmem:[%s2419_s4 + $0x8] sm:$0xff] }
  0x49   : > { %639 = vadd.xlane.f32.xlu0 %v638_v1  ;;  %1571 = vmatpush.msra.mxu3 %v736_v22  ;;  %v735_v24 = vld [vmem:[#allocation7 + $0x10] sm:$0xff]  ;;  %v734_v26 = vld [vmem:[#allocation7 + $0x8] sm:$0xff]  ;;  %v696_v27 = vld [vmem:[%s2419_s4] sm:$0xff] }
  0x4a   : > { %753 = vmatpush.msra.mxu1 %v736_v22  ;;  %1568 = vmatpush.msra.mxu2 %v698_v23  ;;  %v733_v28 = vld [vmem:[#allocation7] sm:$0xff]  ;;  %v1697_v43 = vld [vmem:[#allocation4] ss:$0 sm:$0xff] }
  0x4b   : > { %1572 = vmatpush.msra.mxu3 %v735_v24  ;;  %723 = vmatpush.msra.mxu0 %v698_v23  ;;  %v1698_v47 = vld [vmem:[%s2417_s2] ss:$0 sm:$0xff] }
  0x4c   : > { %754 = vmatpush.msra.mxu1 %v735_v24  ;;  %1569 = vmatpush.msra.mxu2 %v697_v25  ;;  %v1699_v57 = vld [vmem:[%s2422_s7] ss:$0 sm:$0xff] }
  0x4d   : > { %1573 = vmatpush.msra.mxu3 %v734_v26  ;;  %724 = vmatpush.msra.mxu0 %v697_v25  ;;  %v1700_v58 = vld [vmem:[%s2423_s8] ss:$0 sm:$0xff] }
  0x4e   : > { %v1702_v5 = vpop.eup %1701  ;;  %755 = vmatpush.msra.mxu1 %v734_v26  ;;  %1570 = vmatpush.msra.mxu2 %v696_v27 }
  0x4f   : > { %v642_v6 = vmul.f32 32.0, %v1702_v5  ;;  %vm646_vm1 = vweird.f32 %v1702_v5  ;;  %1574 = vmatpush.msra.mxu3 %v733_v28  ;;  %725 = vmatpush.msra.mxu0 %v696_v27 }
  0x50   : > { %756 = vmatpush.msra.mxu1 %v733_v28 }
  0x51   : > { %636 = vadd.xlane.f32.xlu0 %v635_v3  ;;  %v643_v7 = vsub.f32 1.0, %v642_v6 }
  0x53   : > { %v644_v8 = vmul.f32 %v1702_v5, %v643_v7 }
  0x55   : > { %v645_v9 = vadd.f32 %v1702_v5, %v644_v8 }
  0x57   : > { %v647_v10 = vsel %vm646_vm1, %v1702_v5, %v645_v9 }
  0xbc   : > { %v640_v11 = vpop.xlane.xlu0 %639 }
  0xbd   : > { %v649_v12 = vmul.f32 %v647_v10, %v640_v11 }
  0xbf   : > { %v651_v13 = vsub.f32 %v631_v0, %v649_v12 }
  0xc1   : > { %v653_v14 = vmul.f32 %v651_v13, %v651_v13 }
  0xc3   : > { %v657_v15 = vsel %vm634_vm0, %v653_v14, 0.0 }
  0xc4   : > { %658 = vadd.xlane.f32.xlu1 %v657_v15  ;;  %v637_v16 = vpop.xlane.xlu0 %636 }
  0xc5   : > { %v648_v17 = vmul.f32 %v647_v10, %v637_v16 }
  0xc7   : > { %v2209_v18 = vsub.f32 %v630_v2, %v648_v17 }
  0xc9   : > { %v652_v19 = vmul.f32 %v2209_v18, %v2209_v18 }
  0xcb   : > { %v654_v20 = vsel %vm634_vm0, %v652_v19, 0.0 }
  0xcc   : > { %655 = vadd.xlane.f32.xlu1 %v654_v20 }
 0x137   : > { %v659_v29 = vpop.xlane.xlu1 %658 }
 0x138   : > { %v661_v30 = vmul.f32 %v659_v29, %v647_v10 }
 0x13a   : > { %v663_v31 = vadd.f32 1e-05, %v661_v30 }
 0x13c   : > { %1703 = vrsqrt.f32 %v663_v31  ;;  %vm680_vm3 = vweird.f32 %v663_v31 }
 0x13f   : > { %v656_v32 = vpop.xlane.xlu1 %655 }
 0x140   : > { %v660_v33 = vmul.f32 %v656_v32, %v647_v10 }
 0x142   : > { %v1704_v34 = vpop.eup %1703  ;;  %v662_v35 = vadd.f32 1e-05, %v660_v33 }
 0x143   : > { %v675_v36 = vmul.f32 %v1704_v34, %v663_v31  ;;  %vm681_vm2 = vweird.f32 %v1704_v34 }
 0x144   : > { %1705 = vrsqrt.f32 %v662_v35  ;;  %vm682_vm4 = vmor %vm680_vm3, %vm681_vm2  ;;  %vm670_vm6 = vweird.f32 %v662_v35 }
 0x145   : > { %v676_v37 = vmul.f32 %v1704_v34, %v675_v36 }
 0x147   : > { %v677_v38 = vmul.f32 0.5, %v676_v37 }
 0x149   : > { %v678_v39 = vsub.f32 1.5, %v677_v38 }
 0x14a   : > { %v1706_v40 = vpop.eup %1705 }
 0x14b   : > { %v679_v41 = vmul.f32 %v1704_v34, %v678_v39  ;;  %v665_v42 = vmul.f32 %v1706_v40, %v662_v35  ;;  %vm671_vm5 = vweird.f32 %v1706_v40 }
 0x14c   : > { %vm672_vm7 = vmor %vm670_vm6, %vm671_vm5 }
 0x14d   : > { %v683_v44 = vsel %vm682_vm4, %v1704_v34, %v679_v41  ;;  %v666_v45 = vmul.f32 %v1706_v40, %v665_v42 }
 0x14e   : > { %v685_v46 = vmul.f32 %v683_v44, %v651_v13 }
 0x14f   : > { %v667_v48 = vmul.f32 0.5, %v666_v45 }
 0x150   : > { %v690_v49 = vmul.f32 %v1697_v43, %v685_v46 }
 0x151   : > { %v668_v50 = vsub.f32 1.5, %v667_v48 }
 0x152   : > { %v695_v51 = vadd.f32 %v1698_v47, %v690_v49 }
 0x153   : > { %v669_v52 = vmul.f32 %v1706_v40, %v668_v50 }
 0x154   : > { %1534 = vmatmul.msk.f32.vlgmr.msra.gmra.mxu2 %vm634_vm0, %v695_v51  ;;  %1536 = vmatmul.msk.f32.vlgmr.msra.gmra.mxu3 %vm634_vm0, %v695_v51 }
 0x155   : > { %v673_v53 = vsel %vm672_vm7, %v1706_v40, %v669_v52 }
 0x156   : > { %v684_v54 = vmul.f32 %v673_v53, %v2209_v18 }
 0x158   : > { %v689_v55 = vmul.f32 %v1697_v43, %v684_v54 }
 0x15a   : > { %v694_v56 = vadd.f32 %v1698_v47, %v689_v55 }
 0x15c   : > { %1533 = vmatmul.msk.f32.vlgmr.msra.gmra.mxu0 %vm634_vm0, %v694_v56  ;;  %1535 = vmatmul.msk.f32.vlgmr.msra.gmra.mxu1 %vm634_vm0, %v694_v56 }
 0x1d7   : > { %v730_v59 = vpop.f32.mrf.mxu2  ;;  %v761_v60 = vpop.f32.mrf.mxu3 }
 0x1d8   : > { %v731_v61 = vadd.f32 %v1699_v57, %v730_v59  ;;  %v762_v62 = vadd.f32 %v1700_v58, %v761_v60 }
 0x1d9   : > { %v727_v63 = vpop.f32.mrf.mxu0  ;;  %v758_v0 = vpop.f32.mrf.mxu1 }
 0x1da   : > { %766 = vst.msk [vmem:[#allocation2 + $0x8] sm:$0xff] %vm764_vm8, %v731_v61  ;;  %v728_v1 = vadd.f32 %v1699_v57, %v727_v63  ;;  %v759_v2 = vadd.f32 %v1700_v58, %v758_v0  ;;  %784 = vrot.lane.b32.xlu1 %v762_v62, %s1972_s1 }
 0x1db   : > { %768 = vst.msk [vmem:[#allocation3 + $0x8] sm:$0xff] %vm764_vm8, %v762_v62 }
 0x1dc   : > { %765 = vst.msk [vmem:[#allocation2] sm:$0xff] %vm764_vm8, %v728_v1  ;;  %782 = vrot.lane.b32.xlu0 %v759_v2, %s1972_s1  ;;  %771 = vrot.lane.b32.xlu2 %v728_v1, %s1972_s1 }
 0x1dd   : > { %767 = vst.msk [vmem:[#allocation3] sm:$0xff] %vm764_vm8, %v759_v2 }
 0x1e2   : > { %811 = vrot.lane.b32.xlu1 %v731_v61, %s1973_s29 }
 0x1e4   : > { %802 = vrot.lane.b32.xlu0 %v762_v62, %s1974_s16  ;;  %791 = vrot.lane.b32.xlu2 %v728_v1, %s1974_s16 }
 0x1ec   : > { %818 = vrot.lane.b32.xlu0 %v759_v2, %s1973_s29  ;;  %800 = vrot.lane.b32.xlu2 %v759_v2, %s1974_s16 }
 0x1f4   : > { %809 = vrot.lane.b32.xlu2 %v728_v1, %s1973_s29 }
 0x1fc   : > { %773 = vrot.lane.b32.xlu2 %v731_v61, %s1972_s1 }
 0x204   : > { %793 = vrot.lane.b32.xlu2 %v731_v61, %s1974_s16 }
 0x20c   : > { %820 = vrot.lane.b32.xlu2 %v762_v62, %s1973_s29 }
 0x236   : > { %v772_v3 = vpop.permute.xlu2 %771 }
 0x237   : > { %778 = vst.msk [vmem:[#allocation2 + $0x10] sm:$0xff] %vm764_vm8, %v772_v3 }
 0x23e   : > { %v792_v4 = vpop.permute.xlu2 %791 }
 0x23f   : > { %798 = vst.msk [vmem:[#allocation2 + $0x20] sm:$0xff] %vm764_vm8, %v792_v4 }
 0x246   : > { %v801_v5 = vpop.permute.xlu2 %800 }
 0x247   : > { %807 = vst.msk [vmem:[#allocation3 + $0x20] sm:$0xff] %vm764_vm8, %v801_v5 }
 0x24c   : > { %v785_v6 = vpop.permute.xlu1 %784 }
 0x24d   : > { %790 = vst.msk [vmem:[#allocation3 + $0x18] sm:$0xff] %vm764_vm8, %v785_v6 }
 0x24e   : > { %v783_v7 = vpop.permute.xlu0 %782  ;;  %v810_v8 = vpop.permute.xlu2 %809 }
 0x24f   : > { %789 = vst.msk [vmem:[#allocation3 + $0x10] sm:$0xff] %vm764_vm8, %v783_v7 }
 0x250   : > { %816 = vst.msk [vmem:[#allocation2 + $0x30] sm:$0xff] %vm764_vm8, %v810_v8 }
 0x254   : > { %v812_v9 = vpop.permute.xlu1 %811 }
 0x255   : > { %817 = vst.msk [vmem:[#allocation2 + $0x38] sm:$0xff] %vm764_vm8, %v812_v9 }
 0x256   : > { %v803_v10 = vpop.permute.xlu0 %802  ;;  %v774_v11 = vpop.permute.xlu2 %773 }
 0x257   : > { %808 = vst.msk [vmem:[#allocation3 + $0x28] sm:$0xff] %vm764_vm8, %v803_v10 }
 0x258   : > { %779 = vst.msk [vmem:[#allocation2 + $0x18] sm:$0xff] %vm764_vm8, %v774_v11 }
 0x25e   : > { %v819_v12 = vpop.permute.xlu0 %818  ;;  %v794_v13 = vpop.permute.xlu2 %793 }
 0x25f   : > { %825 = vst.msk [vmem:[#allocation3 + $0x30] sm:$0xff] %vm764_vm8, %v819_v12 }
 0x260   : > { %799 = vst.msk [vmem:[#allocation2 + $0x28] sm:$0xff] %vm764_vm8, %v794_v13 }
 0x266   : > { %v821_v14 = vpop.permute.xlu2 %820 }
 0x267   : > { %826 = vst.msk [vmem:[#allocation3 + $0x38] sm:$0xff] %vm764_vm8, %v821_v14 }
 0x268 PF: > { %s1537_s22 = sshll.u32 %s1947_s27, 3  ;;  %vm832_vm9 = vcmask 261120   ;;  %v1975_v17 = vmov 32.0   ;;  %v873_v29 = vld [vmem:[%s2418_s3 + $0x18] sm:$0xff]  ;;  %v872_v30 = vld [vmem:[%s2418_s3 + $0x10] sm:$0xff]  ;;  %v871_v31 = vld [vmem:[%s2418_s3 + $0x8] sm:$0xff] }
 0x269   : > { %s828_s19 = scalar_lea.vmem %s2200_s20, %s1537_s22  ;;  %1715 = vrcp.f32 %v1975_v17  ;;  %893 = vmatpush.msra.mxu0 %v873_v29  ;;  %v870_v32 = vld [vmem:[%s2418_s3] sm:$0xff]  ;;  %v909_v33 = vld [vmem:[#allocation2 + $0x8] sm:$0xff]  ;;  %vm916_vm11 = vcmask 64512   ;;  %v915_v50 = vld [vmem:[#allocation2 + $0x38] sm:$0xff]  ;;  %s1976_s29 = smov 104   ;;  %vm1029_vm15 = vcmask 130048  }
 0x26a   : > { %v2258_v15 = vld [vmem:[%s828_s19] sm:$0xff]  ;;  %1539 = vmatpush.xpose.msk.msra.mxu1 %vm916_vm11, %v909_v33  ;;  %v914_v51 = vld [vmem:[#allocation2 + $0x30] sm:$0xff]  ;;  %s1977_s16 = smov 120   ;;  %s1978_s22 = smov 112   ;;  %v911_v55 = vld [vmem:[#allocation2 + $0x18] sm:$0xff]  ;;  %vm1357_vm3 = vcmask 523264  }
 0x26b   : > { %v833_v16 = vsel %vm832_vm9, %v2258_v15, 0.0  ;;  %894 = vmatpush.msra.mxu0 %v872_v30  ;;  %v1707_v43 = vld [vmem:[#allocation4] ss:$0 sm:$0xff]  ;;  %1542 = vmatpush.xpose.msk.msra.mxu3 %vm916_vm11, %v911_v55  ;;  %v910_v56 = vld [vmem:[#allocation2 + $0x10] sm:$0xff]  ;;  %v913_v57 = vld [vmem:[#allocation2 + $0x28] sm:$0xff]  ;;  %s2473_s17 = sld [smem:[#allocation33_spill]] }
 0x26c   : > { %834 = vadd.xlane.f32.xlu0 %v833_v16  ;;  %v1708_v46 = vld [vmem:[%s2417_s2] ss:$0 sm:$0xff]  ;;  %v1067_v1 = vld [vmem:[#allocation3 + $0x8] sm:$0xff]  ;;  %v1072_v14 = vld [vmem:[#allocation3 + $0x30] sm:$0xff]  ;;  %s2475_s21 = sld [smem:[#allocation31_spill]]  ;;  %s1398_s26 = sshll.u32 %s620_s23, 4  ;;  %s1399_s26 = int_to_ptr.vmem [resolvable:$true] %s1398_s26 }
 0x26d   : > { %895 = vmatpush.msra.mxu0 %v871_v31  ;;  %v908_v49 = vld [vmem:[#allocation2] sm:$0xff]  ;;  %s2476_s1 = sld [smem:[#allocation32_spill]] }
 0x26e   : > { %1540 = vmatpush.xpose.msk.msra.mxu1 %vm916_vm11, %v908_v49  ;;  %v1709_v52 = vld [vmem:[%s2421_s6] ss:$0 sm:$0xff]  ;;  %v1073_v13 = vld [vmem:[#allocation3 + $0x38] sm:$0xff]  ;;  %s2479_s0 = sld [smem:[#allocation35_spill]] }
 0x26f   : > { %v1716_v18 = vpop.eup %1715  ;;  %896 = vmatpush.msra.mxu0 %v870_v32  ;;  %1543 = vmatpush.xpose.msk.msra.mxu3 %vm916_vm11, %v910_v56  ;;  %v912_v58 = vld [vmem:[#allocation2 + $0x20] sm:$0xff] }
 0x270   : > { %v837_v19 = vmul.f32 32.0, %v1716_v18  ;;  %vm841_vm10 = vweird.f32 %v1716_v18  ;;  %v1066_v2 = vld [vmem:[#allocation3] sm:$0xff] }
 0x271   : > { %1548 = vmatpush.xpose.msk.msrb.mxu0 %vm916_vm11, %v915_v50 }
 0x272   : > { %v838_v20 = vsub.f32 1.0, %v837_v19  ;;  %1091 = vmatpush.msrb.mxu1 %v1067_v1  ;;  %v1069_v19 = vld [vmem:[#allocation3 + $0x18] sm:$0xff] }
 0x273   : > { %1545 = vmatpush.xpose.msk.msrb.mxu3 %vm916_vm11, %v913_v57  ;;  %1114 = vmatpush.msra.mxu2 %v1069_v19  ;;  %v1348_v19 = vld [vmem:[%s2473_s17 + $0x18] sm:$0xff] }
 0x274   : > { %v839_v21 = vmul.f32 %v1716_v18, %v838_v20  ;;  %1092 = vmatpush.msrb.mxu1 %v1066_v2  ;;  %v1068_v20 = vld [vmem:[#allocation3 + $0x10] sm:$0xff]  ;;  %s2480_s12 = smov %s2479_s0 }
 0x275   : > { %1549 = vmatpush.xpose.msk.msrb.mxu0 %vm916_vm11, %v914_v51  ;;  %1115 = vmatpush.msra.mxu2 %v1068_v20 }
 0x276   : > { %v840_v22 = vadd.f32 %v1716_v18, %v839_v21 }
 0x277   : > { %1546 = vmatpush.xpose.msk.msrb.mxu3 %vm916_vm11, %v912_v58 }
 0x278   : > { %v2262_v23 = vsel %vm841_vm10, %v1716_v18, %v840_v22  ;;  %v1071_v22 = vld [vmem:[#allocation3 + $0x28] sm:$0xff] }
 0x2df   : > { %v835_v24 = vpop.xlane.xlu0 %834 }
 0x2e0   : > { %v843_v25 = vmul.f32 %v2262_v23, %v835_v24 }
 0x2e2   : > { %v844_v26 = vsub.f32 %v2258_v15, %v843_v25  ;;  %v1070_v25 = vld [vmem:[#allocation3 + $0x20] sm:$0xff] }
 0x2e4   : > { %v845_v27 = vmul.f32 %v844_v26, %v844_v26 }
 0x2e6   : > { %v846_v28 = vsel %vm832_vm9, %v845_v27, 0.0 }
 0x2e7   : > { %847 = vadd.xlane.f32.xlu0 %v846_v28 }
 0x35a   : > { %v848_v34 = vpop.xlane.xlu0 %847 }
 0x35b   : > { %v849_v35 = vmul.f32 %v848_v34, %v2262_v23 }
 0x35d   : > { %v850_v36 = vadd.f32 1e-05, %v849_v35 }
 0x35f   : > { %1717 = vrsqrt.f32 %v850_v36  ;;  %vm857_vm13 = vweird.f32 %v850_v36 }
 0x365   : > { %v1718_v37 = vpop.eup %1717 }
 0x366   : > { %v852_v38 = vmul.f32 %v1718_v37, %v850_v36  ;;  %vm858_vm12 = vweird.f32 %v1718_v37 }
 0x367   : > { %vm859_vm14 = vmor %vm857_vm13, %vm858_vm12 }
 0x368   : > { %v853_v39 = vmul.f32 %v1718_v37, %v852_v38 }
 0x36a   : > { %v854_v40 = vmul.f32 0.5, %v853_v39 }
 0x36c   : > { %v855_v41 = vsub.f32 1.5, %v854_v40 }
 0x36e   : > { %v856_v42 = vmul.f32 %v1718_v37, %v855_v41  ;;  %v1250_v41 = vld [vmem:[#allocation9 + $0x18] sm:$0xff] }
 0x370   : > { %v860_v44 = vsel %vm859_vm14, %v1718_v37, %v856_v42 }
 0x371   : > { %v861_v45 = vmul.f32 %v860_v44, %v844_v26  ;;  %v1174_v26 = vld [vmem:[#allocation9] sm:$0xff] }
 0x372   : > { %1218 = vmatpush.msrb.mxu2 %v1174_v26 }
 0x373   : > { %v865_v47 = vmul.f32 %v1707_v43, %v861_v45 }
 0x375   : > { %v869_v48 = vadd.f32 %v1708_v46, %v865_v47  ;;  %v1224_v46 = vld [vmem:[#allocation9 + $0x10] sm:$0xff]  ;;  %v1176_v47 = vld [vmem:[#allocation9 + $0x8] sm:$0xff] }
 0x377   : > { %1538 = vmatmul.msk.f32.vlgmr.msra.gmra.mxu0 %vm832_vm9, %v869_v48 }
 0x378   : > { %1160 = vmatpush.msra.mxu0 %v1073_v13  ;;  %v1350_v13 = vld [vmem:[%s2473_s17 + $0x28] sm:$0xff] }
 0x37a   : > { %1161 = vmatpush.msra.mxu0 %v1072_v14 }
 0x3f4   : > { %v898_v53 = vpop.f32.mrf.mxu0 }
 0x3f5   : > { %v899_v54 = vadd.f32 %v1709_v52, %v898_v53 }
 0x3f7   : > { %906 = vrot.lane.b32.xlu2 %v899_v54, %s1976_s29  ;;  %902 = vrot.lane.b32.xlu1 %v899_v54, %s1977_s16  ;;  %s1562_s29 = sshll.u32 %s1951_s28, 1 }
 0x3f8   : > { %1541 = vmatmul.msk.f32.vlgmr.msra.gmra.mxu1 %vm916_vm11, %v899_v54  ;;  %s1394_s16 = sadd.s32 %s1947_s27, %s1562_s29  ;;  %s1384_s27 = scalar_lea.sflag [#allocation6], %s618_s5 }
 0x3f9   : > { %1195 = vmatpush.msra.mxu1 %v1176_v47 }
 0x3ff   : > { %904 = vrot.lane.b32.xlu1 %v899_v54, %s1978_s22  ;;  %s2474_s22 = sld [smem:[#allocation30_spill]] }
 0x405   : > { %v1711_v26 = vld [vmem:[%s2474_s22] ss:$0 sm:$0xff]  ;;  %s1563_s22 = sshll.u32 %s1394_s16, 3 }
 0x406   : > { %s1396_s15 = scalar_lea.hbm %s2479_s0, %s1563_s22  ;;  %s1877_s22 = scalar_lea.hbm %s2480_s12, 32 }
 0x407   : > { %s1400_s30 = sshll.u32 %s1396_s15, 4  ;;  %s1401_s30 = int_to_ptr.hbm [resolvable:$true] %s1400_s30 }
 0x408   : > { %s1871_s28 = sshra.s32 %s1401_s30, 4  ;;  %s1872_s28 = int_to_ptr.hbm [resolvable:$true] %s1871_s28 }
 0x409   : > { %p1878_p7 = scmp.lt.s32.totalorder %s1872_s28, %s2480_s12 }
 0x451   : > { %v907_v59 = vpop.permute.xlu2 %906 }
 0x452   : > { %1550 = vmatmul.msk.f32.vlgmr.msrb.gmra.mxu0 %vm916_vm11, %v907_v59 }
 0x453   : > { %1269 = vmatpush.msrb.mxu0 %v1250_v41 }
 0x469   : > { %v903_v60 = vpop.permute.xlu1 %902 }
 0x46a   : > { %1544 = vmatmul.msk.f32.vlgmr.msra.gmra.mxu3 %vm916_vm11, %v903_v60 }
 0x46b   : > { %1137 = vmatpush.msra.mxu3 %v1071_v22 }
 0x46d   : > { %1138 = vmatpush.msra.mxu3 %v1070_v25 }
 0x471   : > { %v905_v61 = vpop.permute.xlu1 %904 }
 0x472   : > { %1547 = vmatmul.msk.f32.vlgmr.msrb.gmra.mxu3 %vm916_vm11, %v905_v61  ;;  %v1710_v61 = vld [vmem:[%s2425_s10] ss:$0 sm:$0xff] }
 0x473   : > { %1243 = vmatpush.msrb.mxu3 %v1224_v46 }
 0x475   : > { %v942_v62 = vpop.f32.mrf.mxu1 }
 0x476   : > { %v1030_v63 = vsel %vm1029_vm15, %v942_v62, -inf }
 0x477   : > { %1031 = vmax.xlane.f32.xlu0 %v1030_v63 }
 0x4cf   : > { %v1026_v0 = vpop.f32.mrf.mxu0 }
 0x4d0   : > { %v1039_v3 = vsel %vm1029_vm15, %v1026_v0, -inf }
 0x4d1   : > { %1040 = vmax.xlane.f32.xlu0 %v1039_v3 }
 0x4ea   : > { %v1032_v4 = vpop.xlane.xlu0 %1031 }
 0x4eb   : > { %v1042_v5 = vsub.f32 %v942_v62, %v1032_v4 }
 0x4ed   : > { %v1046_v6 = vmul.f32 1.442695, %v1042_v5  ;;  %v970_v7 = vpop.f32.mrf.mxu3 }
 0x4ee   : > { %v1033_v8 = vsel %vm1029_vm15, %v970_v7, -inf }
 0x4ef   : > { %1719 = vpow2.f32 %v1046_v6  ;;  %1034 = vmax.xlane.f32.xlu1 %v1033_v8  ;;  %v1316_v8 = vld [vmem:[#allocation10 + $0x18] sm:$0xff] }
 0x4f5   : > { %v1720_v9 = vpop.eup %1719  ;;  %v998_v10 = vpop.f32.mrf.mxu3 }
 0x4f6   : > { %1551 = vmatmul.msk.f32.vlgmr.msrb.gmra.mxu1 %vm1029_vm15, %v1720_v9  ;;  %v1054_v11 = vsel %vm1029_vm15, %v1720_v9, 0.0  ;;  %v1036_v12 = vsel %vm1029_vm15, %v998_v10, -inf  ;;  %v1315_v9 = vld [vmem:[#allocation10 + $0x10] sm:$0xff] }
 0x4f7   : > { %1055 = vadd.xlane.f32.xlu0 %v1054_v11  ;;  %1037 = vmax.xlane.f32.xlu2 %v1036_v12  ;;  %v1352_v11 = vld [vmem:[%s2473_s17 + $0x38] sm:$0xff]  ;;  %v1351_v12 = vld [vmem:[%s2473_s17 + $0x30] sm:$0xff] }
 0x4f8   : > { %1336 = vmatpush.msrb.mxu1 %v1316_v8 }
 0x4fa   : > { %1337 = vmatpush.msrb.mxu1 %v1315_v9 }
 0x544   : > { %v1041_v16 = vpop.xlane.xlu0 %1040 }
 0x545   : > { %v1045_v17 = vsub.f32 %v1026_v0, %v1041_v16 }
 0x547   : > { %v1052_v18 = vmul.f32 1.442695, %v1045_v17  ;;  %v1349_v17 = vld [vmem:[%s2473_s17 + $0x20] sm:$0xff] }
 0x549   : > { %1721 = vpow2.f32 %v1052_v18 }
 0x54f   : > { %v1722_v21 = vpop.eup %1721 }
 0x550   : > { %1554 = vmatmul.msk.f32.vlgmr.msra.gmra.mxu0 %vm1029_vm15, %v1722_v21  ;;  %v1063_v24 = vsel %vm1029_vm15, %v1722_v21, 0.0 }
 0x551   : > { %1064 = vadd.xlane.f32.xlu2 %v1063_v24 }
 0x562   : > { %v1035_v27 = vpop.xlane.xlu1 %1034 }
 0x563   : > { %v1043_v28 = vsub.f32 %v970_v7, %v1035_v27 }
 0x565   : > { %v1048_v29 = vmul.f32 1.442695, %v1043_v28 }
 0x567   : > { %1723 = vpow2.f32 %v1048_v29  ;;  %v1712_v29 = vld [vmem:[%s2475_s21] ss:$0 sm:$0xff]  ;;  %s2477_s21 = sld [smem:[#allocation34_spill]] }
 0x56a   : > { %v1056_v30 = vpop.xlane.xlu0 %1055  ;;  %v1038_v31 = vpop.xlane.xlu2 %1037 }
 0x56b   : > { %v1044_v32 = vsub.f32 %v998_v10, %v1038_v31  ;;  %1725 = vrcp.f32 %v1056_v30  ;;  %v1314_v10 = vld [vmem:[#allocation10 + $0x8] sm:$0xff] }
 0x56c   : > { %1338 = vmatpush.msrb.mxu1 %v1314_v10 }
 0x56d   : > { %v1724_v33 = vpop.eup %1723  ;;  %v1050_v34 = vmul.f32 1.442695, %v1044_v32  ;;  %v1347_v32 = vld [vmem:[%s2473_s17 + $0x10] sm:$0xff] }
 0x56e   : > { %1552 = vmatmul.msk.f32.vlgmr.msra.gmra.mxu2 %vm1029_vm15, %v1724_v33  ;;  %v1057_v40 = vsel %vm1029_vm15, %v1724_v33, 0.0  ;;  %v1346_v33 = vld [vmem:[%s2473_s17 + $0x8] sm:$0xff] }
 0x56f   : > { %1727 = vpow2.f32 %v1050_v34  ;;  %1369 = vmatpush.msra.mxu2 %v1352_v11  ;;  %v1345_v34 = vld [vmem:[%s2473_s17] sm:$0xff] }
 0x571   : > { %v1726_v35 = vpop.eup %1725  ;;  %1370 = vmatpush.msra.mxu2 %v1351_v12 }
 0x573   : > { %v1094_v36 = vpop.f32.mrf.mxu1  ;;  %1371 = vmatpush.msra.mxu2 %v1350_v13 }
 0x574   : > { %v1170_v37 = vmul.f32 %v1726_v35, %v1094_v36  ;;  %v1713_v35 = vld [vmem:[%s2476_s1] ss:$0 sm:$0xff]  ;;  %s1873_s1 = scalar_lea.hbm %s1872_s28, 8 }
 0x575   : > { %v1728_v38 = vpop.eup %1727  ;;  %1372 = vmatpush.msra.mxu2 %v1349_v17  ;;  %p1874_p4 = scmp.ne.s32.totalorder %s1872_s28, %s1873_s1  ;;  %p1879_p9 = scmp.lt.s32.totalorder %s1877_s22, %s1873_s1 }
 0x576   : > { %1553 = vmatmul.msk.f32.vlgmr.msra.gmra.mxu3 %vm1029_vm15, %v1728_v38  ;;  %1556 = vmatmul.msk.f32.vlgmr.msrb.gmra.mxu2 %vm916_vm11, %v1170_v37  ;;  %v1060_v39 = vsel %vm1029_vm15, %v1728_v38, 0.0 }
 0x577   : > { %1061 = vadd.xlane.f32.xlu0 %v1060_v39  ;;  %1373 = vmatpush.msra.mxu2 %v1348_v19  ;;  %v1714_v39 = vld [vmem:[%s2477_s21] ss:$0 sm:$0xff]  ;;  %p1875_p5 = pnand %p1874_p4, %p2121_p3  ;;  %p1880_p10 = por %p1879_p9, %p1878_p7 }
 0x579   : > { %1374 = vmatpush.msra.mxu2 %v1347_v32  ;;  %p1876_p6 = pneg %p1875_p5 }
 0x57b   : > { %1375 = vmatpush.msra.mxu2 %v1346_v33  ;;  %p1881_p11 = pnand %p1880_p10, %p1876_p6 }
 0x57d   : > { %1376 = vmatpush.msra.mxu2 %v1345_v34 }
 0x57f   : > { %1058 = vadd.xlane.f32.xlu0 %v1057_v40 }
 0x5c4   : > { %v1065_v42 = vpop.xlane.xlu2 %1064 }
 0x5c5   : > { %1729 = vrcp.f32 %v1065_v42 }
 0x5cb   : > { %v1730_v43 = vpop.eup %1729 }
 0x5cd   : > { %v1163_v44 = vpop.f32.mrf.mxu0 }
 0x5ce   : > { %v1173_v45 = vmul.f32 %v1730_v43, %v1163_v44 }
 0x5d0   : > { %1558 = vmatmul.msk.f32.vlgmr.msrb.gmra.mxu0 %vm916_vm11, %v1173_v45 }
 0x5ea   : > { %v1062_v48 = vpop.xlane.xlu0 %1061 }
 0x5eb   : > { %1731 = vrcp.f32 %v1062_v48 }
 0x5f1   : > { %v1732_v50 = vpop.eup %1731  ;;  %v1117_v52 = vpop.f32.mrf.mxu2 }
 0x5f2   : > { %v1059_v49 = vpop.xlane.xlu0 %1058 }
 0x5f3   : > { %1733 = vrcp.f32 %v1059_v49 }
 0x5f9   : > { %v1734_v51 = vpop.eup %1733  ;;  %v1140_v53 = vpop.f32.mrf.mxu3 }
 0x5fa   : > { %v1171_v54 = vmul.f32 %v1734_v51, %v1117_v52  ;;  %v1172_v55 = vmul.f32 %v1732_v50, %v1140_v53  ;;  %v1220_v57 = vpop.f32.mrf.mxu2 }
 0x5fc   : > { %1555 = vmatmul.msk.f32.vlgmr.msra.gmra.mxu1 %vm916_vm11, %v1171_v54  ;;  %1557 = vmatmul.msk.f32.vlgmr.msrb.gmra.mxu3 %vm916_vm11, %v1172_v55 }
 0x64d   : > { %v1271_v62 = vpop.f32.mrf.mxu0 }
 0x679   : > { %v1197_v56 = vpop.f32.mrf.mxu1 }
 0x67a   : > { %v1221_v58 = vadd.f32 %v1220_v57, %v1197_v56 }
 0x67f   : > { %v1245_v59 = vpop.f32.mrf.mxu3 }
 0x680   : > { %v1248_v60 = vadd.f32 %v1245_v59, %v1221_v58 }
 0x682   : > { %v1274_v63 = vadd.f32 %v1271_v62, %v1248_v60 }
 0x684   : > { %v1279_v0 = vadd.f32 %v1710_v61, %v1274_v63 }
 0x686   : > { %v2319_v1 = vadd.f32 %v1279_v0, %v2258_v15  ;;  %v1313_v15 = vld [vmem:[#allocation10] sm:$0xff] }
 0x687   : > { %1339 = vmatpush.msrb.mxu1 %v1313_v15 }
 0x688   : > { %v1283_v2 = vsel %vm832_vm9, %v2319_v1, 0.0 }
 0x689   : > { %1284 = vadd.xlane.f32.xlu0 %v1283_v2 }
 0x6fc   : > { %v1285_v3 = vpop.xlane.xlu0 %1284 }
 0x6fd   : > { %v1286_v4 = vmul.f32 %v1285_v3, %v2262_v23 }
 0x6ff   : > { %v1287_v5 = vsub.f32 %v2319_v1, %v1286_v4 }
 0x701   : > { %v1288_v6 = vmul.f32 %v1287_v5, %v1287_v5 }
 0x703   : > { %v1289_v7 = vsel %vm832_vm9, %v1288_v6, 0.0 }
 0x704   : > { %1290 = vadd.xlane.f32.xlu2 %v1289_v7 }
 0x777   : > { %v1291_v14 = vpop.xlane.xlu2 %1290 }
 0x778   : > { %v1292_v16 = vmul.f32 %v1291_v14, %v2262_v23 }
 0x77a   : > { %v1293_v18 = vadd.f32 1e-05, %v1292_v16 }
 0x77c   : > { %1735 = vrsqrt.f32 %v1293_v18  ;;  %vm1300_vm1 = vweird.f32 %v1293_v18 }
 0x782   : > { %v1736_v20 = vpop.eup %1735 }
 0x783   : > { %v1295_v21 = vmul.f32 %v1736_v20, %v1293_v18  ;;  %vm1301_vm0 = vweird.f32 %v1736_v20 }
 0x784   : > { %vm1302_vm2 = vmor %vm1300_vm1, %vm1301_vm0 }
 0x785   : > { %v1296_v22 = vmul.f32 %v1736_v20, %v1295_v21 }
 0x787   : > { %v1297_v24 = vmul.f32 0.5, %v1296_v22 }
 0x789   : > { %v1298_v25 = vsub.f32 1.5, %v1297_v24 }
 0x78b   : > { %v1299_v23 = vmul.f32 %v1736_v20, %v1298_v25 }
 0x78d   : > { %v1303_v27 = vsel %vm1302_vm2, %v1736_v20, %v1299_v23 }
 0x78e   : > { %v1304_v28 = vmul.f32 %v1303_v27, %v1287_v5 }
 0x790   : > { %v1308_v30 = vmul.f32 %v1711_v26, %v1304_v28 }
 0x792   : > { %v1312_v31 = vadd.f32 %v1712_v29, %v1308_v30 }
 0x794   : > { %1559 = vmatmul.msk.f32.vlgmr.msrb.gmra.mxu1 %vm832_vm9, %v1312_v31 }
 0x811   : > { %v1341_v36 = vpop.f32.mrf.mxu1 }
 0x812   : > { %v1342_v37 = vadd.f32 %v1713_v35, %v1341_v36 }
 0x814   : > { %v1344_v38 = vmax.f32 %v1342_v37, 0.0 }
 0x816   : > { %1560 = vmatmul.msk.f32.vlgmr.msra.gmra.mxu2 %vm1357_vm3, %v1344_v38 }
 0x899   : > { %v1378_v40 = vpop.f32.mrf.mxu2 }
 0x89a   : > { %v1379_v41 = vadd.f32 %v1714_v39, %v1378_v40 }
 0x89c   : > { %v1381_v42 = vadd.f32 %v1379_v41, %v2319_v1 }
 0x89e   : > { %1382 = vst.msk [vmem:[%s620_s23] sm:$0xff] %vm832_vm9, %v1381_v42 }
 0x89f   : > { %1884 = shalt.err (!%p1881_p11)
}
 0x8a0   : > { %1591 = dma.vmem_to_hbm [thread:$0]  (%p2121_p3), %s1399_s26, 128, %s1401_s30, %s1384_s27  }
 0x8a1 PF: > { %s2481_s5 = sld [smem:[#allocation21_spill]] }
 0x8a2   : > { %s2482_s11 = sld [smem:[#allocation17_spill]] }
 0x8a7   : > { %p1618_p12 = scmp.ge.s32.totalorder %s2481_s5, 2 }
 0x8a8   : > { %s1412_s21 = sand.u32 1, %s2482_s11  }
 0x8a9   : > { %p1607_p13 = pnand %p1618_p12, %p2130_p8  ;;  %s1413_s18 = scalar_lea.sflag [#allocation6], %s1412_s21 }
 0x8ab   : > { %p1608_p0 = pneg %p1607_p13 }
 0x8ad   : > { %1930 = dma.done.wait (%p1608_p0), %s1413_s18, 128  }
 0x8ae   : > { %1932 = vsyncadd (%p1608_p0), %s1413_s18, 4294967168  ;;  %s33_s30 = sadd.s32 1, %s2481_s5   ;;  %s2484_s0 = sld [smem:[#allocation18_spill]] }
 0x8af   : > { %p30_p1 = scmp.ge.s32.totalorder %s33_s30, 6   ;;  %s2485_s26 = sld [smem:[#allocation26_spill]] }
 0x8b0   : > { %s2486_s27 = sld [smem:[#allocation19_spill]]  ;;  %s2490_s24 = smov %s1939_s25 }
 0x8b1   : > { %s2487_s28 = sld [smem:[#allocation20_spill]] }
 0x8b2   : > { %s2488_s29 = sld [smem:[#allocation22_spill]] }
 0x8b3   : > { %s2489_s14 = sld [smem:[#allocation24_spill]] }
 0x8b4   : > { %s2491_s25 = smov %s2484_s0 }
 0x8b5   :  { %32 = sbr.rel (!%p30_p1) target bundleno = 18 (0x12), region = 154 }
 0x8b9   : > { %s2492_s0 = smov %s2489_s14 }
 0x8ba   :  { %1419 = vsyncpa [#allocation5], 1 }
 0x8bb   :  { %1421 = vsyncpa [#allocation5 + $0x1], 1 }
 0x8bc   :  { %1422 = vsyncpa [#allocation8], 1 }
 0x8bd   :  { %1423 = vsyncpa [#allocation11], 1 }
 0x8be   :  { %1424 = vsyncpa [#allocation6], 1 }
 0x8bf   :  { %1426 = vsyncpa [#allocation6 + $0x1], 1 }

// kernel: tpu_custom_call.1
= control target key start
LH: loop header
LB: loop body
LE: loop exit
PB: predicated region body
PF: predicated region fallthrough
CT: control target
= control target key end

     0   :  { %s2415_s0 = inlined_call_operand.vmem [shape: f32[2,16,32], index: 0, kind: input, shape index: {}]   ;;  %s2416_s1 = inlined_call_operand.hbm [shape: f32[1,32], index: 1, kind: input, shape index: {}]   ;;  %s2417_s2 = inlined_call_operand.vmem [shape: f32[1,32], index: 2, kind: input, shape index: {}]   ;;  %s2418_s3 = inlined_call_operand.vmem [shape: f32[32,32], index: 3, kind: input, shape index: {}]   ;;  %s2419_s4 = inlined_call_operand.vmem [shape: f32[32,32], index: 4, kind: input, shape index: {}]   ;;  %s2420_s5 = inlined_call_operand.hbm [shape: f32[32,32], index: 5, kind: input, shape index: {}]   ;;  %s2421_s6 = inlined_call_operand.vmem [shape: f32[1,32], index: 6, kind: input, shape index: {}]   ;;  %s2422_s7 = inlined_call_operand.vmem [shape: f32[1,32], index: 7, kind: input, shape index: {}]   ;;  %s2423_s8 = inlined_call_operand.vmem [shape: f32[1,32], index: 8, kind: input, shape index: {}]   ;;  %s2424_s9 = inlined_call_operand.hbm [shape: f32[4,8,32], index: 9, kind: input, shape index: {}]   ;;  %s2425_s10 = inlined_call_operand.vmem [shape: f32[1,32], index: 10, kind: input, shape index: {}]   ;;  %s2426_s11 = inlined_call_operand.vmem [shape: f32[1,32], index: 11, kind: input, shape index: {}]   ;;  %s2427_s12 = inlined_call_operand.vmem [shape: f32[1,32], index: 12, kind: input, shape index: {}]   ;;  %s2428_s13 = inlined_call_operand.hbm [shape: f32[32,64], index: 13, kind: input, shape index: {}]   ;;  %s2429_s14 = inlined_call_operand.vmem [shape: f32[1,64], index: 14, kind: input, shape index: {}]   ;;  %s2430_s15 = inlined_call_operand.vmem [shape: f32[64,32], index: 15, kind: input, shape index: {}]   ;;  %s2431_s16 = inlined_call_operand.vmem [shape: f32[1,32], index: 16, kind: input, shape index: {}]   ;;  %s2432_s17 = inlined_call_operand.hbm [shape: f32[2,16,32], index: 17, kind: output, shape index: {}]  }
   0x1   :  { %2446 = sst [smem:[#allocation27_spill]] %s2415_s0 }
   0x2   :  { %2447 = sst [smem:[#allocation28_spill]] %s2416_s1 }
   0x3   :  { %2448 = sst [smem:[#allocation29_spill]] %s2420_s5 }
   0x4   :  { %2449 = sst [smem:[#allocation30_spill]] %s2426_s11 }
   0x5   :  { %2450 = sst [smem:[#allocation31_spill]] %s2427_s12 }
   0x6   :  { %2451 = sst [smem:[#allocation32_spill]] %s2429_s14 }
   0x7   :  { %2452 = sst [smem:[#allocation33_spill]] %s2430_s15 }
   0x8   :  { %2453 = sst [smem:[#allocation34_spill]] %s2431_s16 }
   0x9   :  { %2454 = sst [smem:[#allocation35_spill]] %s2432_s17 }
   0xa   :  { %22 = vsyncpa [#allocation5], 0 }
   0xb   :  { %23 = vsyncpa [#allocation8], 0 }
   0xc   :  { %24 = vsyncpa [#allocation11], 0 }
   0xd   :  { %25 = vsyncpa [#allocation6], 0 }
   0xe   :  { %27 = vsyncpa [#allocation6 + $0x1], 0  ;;  %s2069_s24 = smov 0   ;;  %s2071_s25 = smov 0  }
   0xf   :  { %s2073_s26 = smov 0   ;;  %s2075_s27 = smov 0  }
  0x10   :  { %s2077_s28 = smov 0   ;;  %s2079_s29 = smov 0  }
  0x11   :  { %s2081_s0 = smov 0   ;;  %s2083_s30 = smov 0  }
  0x12 LB: > { %2455 = sst [smem:[#allocation17_spill]] %s1935_s24  ;;  %s1516_s18 = sadd.s32 4294967295, %s1963_s30   ;;  %s1963_s30 = sphi %s2083_s30, %s33_s30   ;;  %s1959_s0 = sphi %s2081_s0, %s2492_s0   ;;  %s1955_s29 = sphi %s2079_s29, %s2488_s29   ;;  %s1951_s28 = sphi %s2077_s28, %s2487_s28   ;;  %s1947_s27 = sphi %s2075_s27, %s2486_s27   ;;  %s1943_s26 = sphi %s2073_s26, %s2485_s26   ;;  %s1939_s25 = sphi %s2071_s25, %s2491_s25   ;;  %s1935_s24 = sphi %s2069_s24, %s2490_s24  }
  0x13   : > { %2456 = sst [smem:[#allocation18_spill]] %s1943_s26  ;;  %s1517_s19 = sadd.s32 4294967294, %s1963_s30  }
  0x14   : > { %2457 = sst [smem:[#allocation19_spill]] %s1955_s29  ;;  %s42_s1 = sadd.s32 1, %s1955_s29 }
  0x15   : > { %2458 = sst [smem:[#allocation20_spill]] %s1959_s0  ;;  %s45_s20 = sadd.s32 1, %s1959_s0 }
  0x16   : > { %2459 = sst [smem:[#allocation21_spill]] %s1963_s30  ;;  %p43_p0 = scmp.ge.s32.totalorder %s42_s1, 2 }
  0x17   : > { %s416_s21 = sadd.s32 1, %s1943_s26  ;;  %p426_p1 = scmp.ne.s32.totalorder %s1943_s26, %s1939_s25 }
  0x18   : > { %p427_p2 = scmp.eq.s32.totalorder %s1516_s18, 3  ;;  %s2494_s1 = smov (%p43_p0, %s42_s1), 0 }
  0x19   : > { %2460 = sst [smem:[#allocation22_spill]] %s2494_s1  ;;  %s2496_s20 = smov (!%p43_p0, %s45_s20), %s1959_s0 }
  0x1a   : > { %s412_s22 = ssub.s32 %s1955_s29, %s2494_s1  ;;  %p2121_p3 = por %p427_p2, %p426_p1 }
  0x1b   : > { %p47_p4 = scmp.ge.s32.totalorder %s2496_s20, 2  ;;  %p432_p5 = scmp.ne.s32.totalorder %s1939_s25, %s1935_s24 }
  0x1c   : > { %s2461_s23 = scalar_select %p2121_p3, 1, 0 }
  0x1d   : > { %p433_p6 = scmp.eq.s32.totalorder %s1517_s19, 3  ;;  %p1518_p7 = scmp.ge.s32.totalorder %s1963_s30, 1 }
  0x1e   : > { %2462 = sst [smem:[#allocation23_spill]] %s2461_s23  ;;  %s2498_s20 = smov (%p47_p4, %s2496_s20), 0 }
  0x1f   : > { %2463 = sst [smem:[#allocation24_spill]] %s2498_s20  ;;  %p2130_p8 = por %p433_p6, %p432_p5 }
  0x20   : > { %p440_p9 = scmp.lt.s32.totalorder %s1963_s30, 5  ;;  %s411_s16 = ssub.s32 %s1959_s0, %s2498_s20 }
  0x21   : > { %s2464_s17 = scalar_select %p2130_p8, 1, 0 }
  0x22   : > { %s413_s14 = sor.u32 %s412_s22, %s411_s16  ;;  %p2137_p10 = pnand %p1518_p7, %p440_p9 }
  0x23   : > { %2465 = sst [smem:[#allocation25_spill]] %s2464_s17  ;;  %p414_p11 = scmp.eq.s32.totalorder %s413_s14, 0 }
  0x24   : > { %p2141_p12 = scmp.eq.s32.totalorder %s1516_s18, 0  ;;  %p1593_p13 = pneg %p2137_p10 }
  0x25   : > { %s2468_s5 = sld [smem:[#allocation29_spill]]  ;;  %s1965_s14 = smov [#allocation7]  }
  0x26   : > { %s2151_s30 = scalar_select %p414_p11, %s1943_s26, %s416_s21  }
  0x27   : > { %p2155_p0 = pnand %p2141_p12, %p1593_p13  ;;  %s474_s18 = sshll.u32 %s1965_s14, 4  ;;  %s475_s18 = int_to_ptr.vmem [resolvable:$true] %s474_s18 }
  0x28   : > { %2469 = sst [smem:[#allocation26_spill]] %s2151_s30  ;;  %s1966_s22 = smov 128  }
  0x29   : > { %s1967_s20 = smov 8   ;;  %s2471_s21 = sld [smem:[#allocation28_spill]] }
  0x2a   : > { %s1968_s0 = smov [#allocation4]   ;;  %s495_s12 = sshll.u32 %s2424_s9, 4  ;;  %s496_s12 = int_to_ptr.hbm [resolvable:$true] %s495_s12 }
  0x2b   : > { %s472_s17 = sshll.u32 %s2468_s5, 4  ;;  %s454_s30 = sshll.u32 %s1968_s0, 4  ;;  %s473_s17 = int_to_ptr.hbm [resolvable:$true] %s472_s17  ;;  %s455_s30 = int_to_ptr.vmem [resolvable:$true] %s454_s30 }
  0x2c   : > { %1599 = dma.hbm_to_vmem [thread:$0]  (!%p2155_p0), %s473_s17, 512, %s475_s18, [#allocation8], %s1966_s22, %s1966_s22, %s1967_s20  }
  0x2d   : > { %s1969_s14 = smov [#allocation9]   ;;  %s518_s18 = sshll.u32 %s2428_s13, 4  ;;  %s519_s18 = int_to_ptr.hbm [resolvable:$true] %s518_s18 }
  0x2e   : > { %s497_s11 = sshll.u32 %s1969_s14, 4  ;;  %s1970_s24 = smov [#allocation10]   ;;  %s498_s11 = int_to_ptr.vmem [resolvable:$true] %s497_s11 }
  0x2f   : > { %s452_s5 = sshll.u32 %s2471_s21, 4  ;;  %s520_s0 = sshll.u32 %s1970_s24, 4  ;;  %s453_s5 = int_to_ptr.hbm [resolvable:$true] %s452_s5  ;;  %s521_s0 = int_to_ptr.vmem [resolvable:$true] %s520_s0 }
  0x30   : > { %1596 = dma.hbm_to_vmem [thread:$0]  (!%p2155_p0), %s453_s5, 16, %s455_s30, [#allocation5]  }
  0x31   : > { %1602 = dma.hbm_to_vmem [thread:$0]  (!%p2155_p0), %s496_s12, 512, %s498_s11, [#allocation8], %s1966_s22, %s1966_s22, %s1967_s20  }
  0x32   : > { %1605 = dma.hbm_to_vmem [thread:$0]  (!%p2155_p0), %s519_s18, 512, %s521_s0, [#allocation11], %s1966_s22, %s1966_s22, %s1967_s20  }
  0x33   : > { %553 = sbr.rel (%p2137_p10) target bundleno = 2209 (0x8a1), region = 88 }
  0x38   : > { %1918 = dma.done.wait (%p2141_p12), [#allocation5], 16  }
  0x39   : > { %1920 = vsyncadd (%p2141_p12), [#allocation5], 4294967280 }
  0x3a   : > { %1922 = dma.done.wait (%p2141_p12), [#allocation8], 1024  }
  0x3b   : > { %1924 = vsyncadd (%p2141_p12), [#allocation8], 4294966272 }
  0x3c   : > { %1926 = dma.done.wait (%p2141_p12), [#allocation11], 512  }
  0x3d   : > { %1928 = vsyncadd (%p2141_p12), [#allocation11], 4294966784  ;;  %s618_s5 = sand.u32 1, %s1939_s25   ;;  %p621_p1 = scmp.lt.s32.totalorder %s1951_s28, 1 }
  0x3e   : > { %s2194_s11 = sshll.u32 %s618_s5, 3  ;;  %s2472_s1 = sld [smem:[#allocation27_spill]] }
  0x3f   : > { %s622_s12 = scalar_select %p621_p1, %s1951_s28, 1 }
  0x40   : > { %s620_s23 = scalar_lea.vmem [#allocation12], %s2194_s11  ;;  %p1532_p2 = scmp.ne.s32.totalorder %s1947_s27, 0 }
  0x41   : > { %s1566_s15 = sshll.u32 %s622_s12, 4  ;;  %s1973_s29 = smov (!%p1532_p2), 104  }
  0x42   : > { %629 = sbr.rel (%p1532_p2) target bundleno = 616 (0x268), region = 108  ;;  %s1974_s16 = smov (!%p1532_p2), 112  }
  0x44   : > { %s2200_s20 = scalar_lea.vmem %s2472_s1, %s1566_s15  ;;  %s1972_s1 = smov (!%p1532_p2), 120  }
  0x47   : > { %v631_v0 = vld [vmem:[%s2200_s20 + $0x8] sm:$0xff]  ;;  %vm634_vm0 = vcmask 261120   ;;  %v630_v2 = vld [vmem:[%s2200_s20] sm:$0xff]  ;;  %v1971_v4 = vmov 32.0   ;;  %v699_v21 = vld [vmem:[%s2419_s4 + $0x18] sm:$0xff]  ;;  %vm764_vm8 = vcmask 64512  }
  0x48   : > { %v638_v1 = vsel %vm634_vm0, %v631_v0, 0.0  ;;  %v635_v3 = vsel %vm634_vm0, %v630_v2, 0.0  ;;  %1701 = vrcp.f32 %v1971_v4  ;;  %v736_v22 = vld [vmem:[#allocation7 + $0x18] sm:$0xff]  ;;  %1567 = vmatpush.msra.mxu2 %v699_v21  ;;  %v698_v23 = vld [vmem:[%s2419_s4 + $0x10] sm:$0xff]  ;;  %722 = vmatpush.msra.mxu0 %v699_v21  ;;  %v697_v25 = vld [vmem:[%s2419_s4 + $0x8] sm:$0xff] }
  0x49   : > { %639 = vadd.xlane.f32.xlu0 %v638_v1  ;;  %1571 = vmatpush.msra.mxu3 %v736_v22  ;;  %v735_v24 = vld [vmem:[#allocation7 + $0x10] sm:$0xff]  ;;  %v734_v26 = vld [vmem:[#allocation7 + $0x8] sm:$0xff]  ;;  %v696_v27 = vld [vmem:[%s2419_s4] sm:$0xff] }
  0x4a   : > { %753 = vmatpush.msra.mxu1 %v736_v22  ;;  %1568 = vmatpush.msra.mxu2 %v698_v23  ;;  %v733_v28 = vld [vmem:[#allocation7] sm:$0xff]  ;;  %v1697_v43 = vld [vmem:[#allocation4] ss:$0 sm:$0xff] }
  0x4b   : > { %1572 = vmatpush.msra.mxu3 %v735_v24  ;;  %723 = vmatpush.msra.mxu0 %v698_v23  ;;  %v1698_v47 = vld [vmem:[%s2417_s2] ss:$0 sm:$0xff] }
  0x4c   : > { %754 = vmatpush.msra.mxu1 %v735_v24  ;;  %1569 = vmatpush.msra.mxu2 %v697_v25  ;;  %v1699_v57 = vld [vmem:[%s2422_s7] ss:$0 sm:$0xff] }
  0x4d   : > { %1573 = vmatpush.msra.mxu3 %v734_v26  ;;  %724 = vmatpush.msra.mxu0 %v697_v25  ;;  %v1700_v58 = vld [vmem:[%s2423_s8] ss:$0 sm:$0xff] }
  0x4e   : > { %v1702_v5 = vpop.eup %1701  ;;  %755 = vmatpush.msra.mxu1 %v734_v26  ;;  %1570 = vmatpush.msra.mxu2 %v696_v27 }
  0x4f   : > { %v642_v6 = vmul.f32 32.0, %v1702_v5  ;;  %vm646_vm1 = vweird.f32 %v1702_v5  ;;  %1574 = vmatpush.msra.mxu3 %v733_v28  ;;  %725 = vmatpush.msra.mxu0 %v696_v27 }
  0x50   : > { %756 = vmatpush.msra.mxu1 %v733_v28 }
  0x51   : > { %636 = vadd.xlane.f32.xlu0 %v635_v3  ;;  %v643_v7 = vsub.f32 1.0, %v642_v6 }
  0x53   : > { %v644_v8 = vmul.f32 %v1702_v5, %v643_v7 }
  0x55   : > { %v645_v9 = vadd.f32 %v1702_v5, %v644_v8 }
  0x57   : > { %v647_v10 = vsel %vm646_vm1, %v1702_v5, %v645_v9 }
  0xbc   : > { %v640_v11 = vpop.xlane.xlu0 %639 }
  0xbd   : > { %v649_v12 = vmul.f32 %v647_v10, %v640_v11 }
  0xbf   : > { %v651_v13 = vsub.f32 %v631_v0, %v649_v12 }
  0xc1   : > { %v653_v14 = vmul.f32 %v651_v13, %v651_v13 }
  0xc3   : > { %v657_v15 = vsel %vm634_vm0, %v653_v14, 0.0 }
  0xc4   : > { %658 = vadd.xlane.f32.xlu1 %v657_v15  ;;  %v637_v16 = vpop.xlane.xlu0 %636 }
  0xc5   : > { %v648_v17 = vmul.f32 %v647_v10, %v637_v16 }
  0xc7   : > { %v2209_v18 = vsub.f32 %v630_v2, %v648_v17 }
  0xc9   : > { %v652_v19 = vmul.f32 %v2209_v18, %v2209_v18 }
  0xcb   : > { %v654_v20 = vsel %vm634_vm0, %v652_v19, 0.0 }
  0xcc   : > { %655 = vadd.xlane.f32.xlu1 %v654_v20 }
 0x137   : > { %v659_v29 = vpop.xlane.xlu1 %658 }
 0x138   : > { %v661_v30 = vmul.f32 %v659_v29, %v647_v10 }
 0x13a   : > { %v663_v31 = vadd.f32 1e-05, %v661_v30 }
 0x13c   : > { %1703 = vrsqrt.f32 %v663_v31  ;;  %vm680_vm3 = vweird.f32 %v663_v31 }
 0x13f   : > { %v656_v32 = vpop.xlane.xlu1 %655 }
 0x140   : > { %v660_v33 = vmul.f32 %v656_v32, %v647_v10 }
 0x142   : > { %v1704_v34 = vpop.eup %1703  ;;  %v662_v35 = vadd.f32 1e-05, %v660_v33 }
 0x143   : > { %v675_v36 = vmul.f32 %v1704_v34, %v663_v31  ;;  %vm681_vm2 = vweird.f32 %v1704_v34 }
 0x144   : > { %1705 = vrsqrt.f32 %v662_v35  ;;  %vm682_vm4 = vmor %vm680_vm3, %vm681_vm2  ;;  %vm670_vm6 = vweird.f32 %v662_v35 }
 0x145   : > { %v676_v37 = vmul.f32 %v1704_v34, %v675_v36 }
 0x147   : > { %v677_v38 = vmul.f32 0.5, %v676_v37 }
 0x149   : > { %v678_v39 = vsub.f32 1.5, %v677_v38 }
 0x14a   : > { %v1706_v40 = vpop.eup %1705 }
 0x14b   : > { %v679_v41 = vmul.f32 %v1704_v34, %v678_v39  ;;  %v665_v42 = vmul.f32 %v1706_v40, %v662_v35  ;;  %vm671_vm5 = vweird.f32 %v1706_v40 }
 0x14c   : > { %vm672_vm7 = vmor %vm670_vm6, %vm671_vm5 }
 0x14d   : > { %v683_v44 = vsel %vm682_vm4, %v1704_v34, %v679_v41  ;;  %v666_v45 = vmul.f32 %v1706_v40, %v665_v42 }
 0x14e   : > { %v685_v46 = vmul.f32 %v683_v44, %v651_v13 }
 0x14f   : > { %v667_v48 = vmul.f32 0.5, %v666_v45 }
 0x150   : > { %v690_v49 = vmul.f32 %v1697_v43, %v685_v46 }
 0x151   : > { %v668_v50 = vsub.f32 1.5, %v667_v48 }
 0x152   : > { %v695_v51 = vadd.f32 %v1698_v47, %v690_v49 }
 0x153   : > { %v669_v52 = vmul.f32 %v1706_v40, %v668_v50 }
 0x154   : > { %1534 = vmatmul.msk.f32.vlgmr.msra.gmra.mxu2 %vm634_vm0, %v695_v51  ;;  %1536 = vmatmul.msk.f32.vlgmr.msra.gmra.mxu3 %vm634_vm0, %v695_v51 }
 0x155   : > { %v673_v53 = vsel %vm672_vm7, %v1706_v40, %v669_v52 }
 0x156   : > { %v684_v54 = vmul.f32 %v673_v53, %v2209_v18 }
 0x158   : > { %v689_v55 = vmul.f32 %v1697_v43, %v684_v54 }
 0x15a   : > { %v694_v56 = vadd.f32 %v1698_v47, %v689_v55 }
 0x15c   : > { %1533 = vmatmul.msk.f32.vlgmr.msra.gmra.mxu0 %vm634_vm0, %v694_v56  ;;  %1535 = vmatmul.msk.f32.vlgmr.msra.gmra.mxu1 %vm634_vm0, %v694_v56 }
 0x1d7   : > { %v730_v59 = vpop.f32.mrf.mxu2  ;;  %v761_v60 = vpop.f32.mrf.mxu3 }
 0x1d8   : > { %v731_v61 = vadd.f32 %v1699_v57, %v730_v59  ;;  %v762_v62 = vadd.f32 %v1700_v58, %v761_v60 }
 0x1d9   : > { %v727_v63 = vpop.f32.mrf.mxu0  ;;  %v758_v0 = vpop.f32.mrf.mxu1 }
 0x1da   : > { %766 = vst.msk [vmem:[#allocation2 + $0x8] sm:$0xff] %vm764_vm8, %v731_v61  ;;  %v728_v1 = vadd.f32 %v1699_v57, %v727_v63  ;;  %v759_v2 = vadd.f32 %v1700_v58, %v758_v0  ;;  %784 = vrot.lane.b32.xlu1 %v762_v62, %s1972_s1 }
 0x1db   : > { %768 = vst.msk [vmem:[#allocation3 + $0x8] sm:$0xff] %vm764_vm8, %v762_v62 }
 0x1dc   : > { %765 = vst.msk [vmem:[#allocation2] sm:$0xff] %vm764_vm8, %v728_v1  ;;  %782 = vrot.lane.b32.xlu0 %v759_v2, %s1972_s1  ;;  %771 = vrot.lane.b32.xlu2 %v728_v1, %s1972_s1 }
 0x1dd   : > { %767 = vst.msk [vmem:[#allocation3] sm:$0xff] %vm764_vm8, %v759_v2 }
 0x1e2   : > { %811 = vrot.lane.b32.xlu1 %v731_v61, %s1973_s29 }
 0x1e4   : > { %802 = vrot.lane.b32.xlu0 %v762_v62, %s1974_s16  ;;  %791 = vrot.lane.b32.xlu2 %v728_v1, %s1974_s16 }
 0x1ec   : > { %818 = vrot.lane.b32.xlu0 %v759_v2, %s1973_s29  ;;  %800 = vrot.lane.b32.xlu2 %v759_v2, %s1974_s16 }
 0x1f4   : > { %809 = vrot.lane.b32.xlu2 %v728_v1, %s1973_s29 }
 0x1fc   : > { %773 = vrot.lane.b32.xlu2 %v731_v61, %s1972_s1 }
 0x204   : > { %793 = vrot.lane.b32.xlu2 %v731_v61, %s1974_s16 }
 0x20c   : > { %820 = vrot.lane.b32.xlu2 %v762_v62, %s1973_s29 }
 0x236   : > { %v772_v3 = vpop.permute.xlu2 %771 }
 0x237   : > { %778 = vst.msk [vmem:[#allocation2 + $0x10] sm:$0xff] %vm764_vm8, %v772_v3 }
 0x23e   : > { %v792_v4 = vpop.permute.xlu2 %791 }
 0x23f   : > { %798 = vst.msk [vmem:[#allocation2 + $0x20] sm:$0xff] %vm764_vm8, %v792_v4 }
 0x246   : > { %v801_v5 = vpop.permute.xlu2 %800 }
 0x247   : > { %807 = vst.msk [vmem:[#allocation3 + $0x20] sm:$0xff] %vm764_vm8, %v801_v5 }
 0x24c   : > { %v785_v6 = vpop.permute.xlu1 %784 }
 0x24d   : > { %790 = vst.msk [vmem:[#allocation3 + $0x18] sm:$0xff] %vm764_vm8, %v785_v6 }
 0x24e   : > { %v783_v7 = vpop.permute.xlu0 %782  ;;  %v810_v8 = vpop.permute.xlu2 %809 }
 0x24f   : > { %789 = vst.msk [vmem:[#allocation3 + $0x10] sm:$0xff] %vm764_vm8, %v783_v7 }
 0x250   : > { %816 = vst.msk [vmem:[#allocation2 + $0x30] sm:$0xff] %vm764_vm8, %v810_v8 }
 0x254   : > { %v812_v9 = vpop.permute.xlu1 %811 }
 0x255   : > { %817 = vst.msk [vmem:[#allocation2 + $0x38] sm:$0xff] %vm764_vm8, %v812_v9 }
 0x256   : > { %v803_v10 = vpop.permute.xlu0 %802  ;;  %v774_v11 = vpop.permute.xlu2 %773 }
 0x257   : > { %808 = vst.msk [vmem:[#allocation3 + $0x28] sm:$0xff] %vm764_vm8, %v803_v10 }
 0x258   : > { %779 = vst.msk [vmem:[#allocation2 + $0x18] sm:$0xff] %vm764_vm8, %v774_v11 }
 0x25e   : > { %v819_v12 = vpop.permute.xlu0 %818  ;;  %v794_v13 = vpop.permute.xlu2 %793 }
 0x25f   : > { %825 = vst.msk [vmem:[#allocation3 + $0x30] sm:$0xff] %vm764_vm8, %v819_v12 }
 0x260   : > { %799 = vst.msk [vmem:[#allocation2 + $0x28] sm:$0xff] %vm764_vm8, %v794_v13 }
 0x266   : > { %v821_v14 = vpop.permute.xlu2 %820 }
 0x267   : > { %826 = vst.msk [vmem:[#allocation3 + $0x38] sm:$0xff] %vm764_vm8, %v821_v14 }
 0x268 PF: > { %s1537_s22 = sshll.u32 %s1947_s27, 3  ;;  %vm832_vm9 = vcmask 261120   ;;  %v1975_v17 = vmov 32.0   ;;  %v873_v29 = vld [vmem:[%s2418_s3 + $0x18] sm:$0xff]  ;;  %v872_v30 = vld [vmem:[%s2418_s3 + $0x10] sm:$0xff]  ;;  %v871_v31 = vld [vmem:[%s2418_s3 + $0x8] sm:$0xff] }
 0x269   : > { %s828_s19 = scalar_lea.vmem %s2200_s20, %s1537_s22  ;;  %1715 = vrcp.f32 %v1975_v17  ;;  %893 = vmatpush.msra.mxu0 %v873_v29  ;;  %v870_v32 = vld [vmem:[%s2418_s3] sm:$0xff]  ;;  %v909_v33 = vld [vmem:[#allocation2 + $0x8] sm:$0xff]  ;;  %vm916_vm11 = vcmask 64512   ;;  %v915_v50 = vld [vmem:[#allocation2 + $0x38] sm:$0xff]  ;;  %s1976_s29 = smov 104   ;;  %vm1029_vm15 = vcmask 130048  }
 0x26a   : > { %v2258_v15 = vld [vmem:[%s828_s19] sm:$0xff]  ;;  %1539 = vmatpush.xpose.msk.msra.mxu1 %vm916_vm11, %v909_v33  ;;  %v914_v51 = vld [vmem:[#allocation2 + $0x30] sm:$0xff]  ;;  %s1977_s16 = smov 120   ;;  %s1978_s22 = smov 112   ;;  %v911_v55 = vld [vmem:[#allocation2 + $0x18] sm:$0xff]  ;;  %vm1357_vm3 = vcmask 523264  }
 0x26b   : > { %v833_v16 = vsel %vm832_vm9, %v2258_v15, 0.0  ;;  %894 = vmatpush.msra.mxu0 %v872_v30  ;;  %v1707_v43 = vld [vmem:[#allocation4] ss:$0 sm:$0xff]  ;;  %1542 = vmatpush.xpose.msk.msra.mxu3 %vm916_vm11, %v911_v55  ;;  %v910_v56 = vld [vmem:[#allocation2 + $0x10] sm:$0xff]  ;;  %v913_v57 = vld [vmem:[#allocation2 + $0x28] sm:$0xff]  ;;  %s2473_s17 = sld [smem:[#allocation33_spill]] }
 0x26c   : > { %834 = vadd.xlane.f32.xlu0 %v833_v16  ;;  %v1708_v46 = vld [vmem:[%s2417_s2] ss:$0 sm:$0xff]  ;;  %v1067_v1 = vld [vmem:[#allocation3 + $0x8] sm:$0xff]  ;;  %v1072_v14 = vld [vmem:[#allocation3 + $0x30] sm:$0xff]  ;;  %s2475_s21 = sld [smem:[#allocation31_spill]]  ;;  %s1398_s26 = sshll.u32 %s620_s23, 4  ;;  %s1399_s26 = int_to_ptr.vmem [resolvable:$true] %s1398_s26 }
 0x26d   : > { %895 = vmatpush.msra.mxu0 %v871_v31  ;;  %v908_v49 = vld [vmem:[#allocation2] sm:$0xff]  ;;  %s2476_s1 = sld [smem:[#allocation32_spill]] }
 0x26e   : > { %1540 = vmatpush.xpose.msk.msra.mxu1 %vm916_vm11, %v908_v49  ;;  %v1709_v52 = vld [vmem:[%s2421_s6] ss:$0 sm:$0xff]  ;;  %v1073_v13 = vld [vmem:[#allocation3 + $0x38] sm:$0xff]  ;;  %s2479_s0 = sld [smem:[#allocation35_spill]] }
 0x26f   : > { %v1716_v18 = vpop.eup %1715  ;;  %896 = vmatpush.msra.mxu0 %v870_v32  ;;  %1543 = vmatpush.xpose.msk.msra.mxu3 %vm916_vm11, %v910_v56  ;;  %v912_v58 = vld [vmem:[#allocation2 + $0x20] sm:$0xff] }
 0x270   : > { %v837_v19 = vmul.f32 32.0, %v1716_v18  ;;  %vm841_vm10 = vweird.f32 %v1716_v18  ;;  %v1066_v2 = vld [vmem:[#allocation3] sm:$0xff] }
 0x271   : > { %1548 = vmatpush.xpose.msk.msrb.mxu0 %vm916_vm11, %v915_v50 }
 0x272   : > { %v838_v20 = vsub.f32 1.0, %v837_v19  ;;  %1091 = vmatpush.msrb.mxu1 %v1067_v1  ;;  %v1069_v19 = vld [vmem:[#allocation3 + $0x18] sm:$0xff] }
 0x273   : > { %1545 = vmatpush.xpose.msk.msrb.mxu3 %vm916_vm11, %v913_v57  ;;  %1114 = vmatpush.msra.mxu2 %v1069_v19  ;;  %v1348_v19 = vld [vmem:[%s2473_s17 + $0x18] sm:$0xff] }
 0x274   : > { %v839_v21 = vmul.f32 %v1716_v18, %v838_v20  ;;  %1092 = vmatpush.msrb.mxu1 %v1066_v2  ;;  %v1068_v20 = vld [vmem:[#allocation3 + $0x10] sm:$0xff]  ;;  %s2480_s12 = smov %s2479_s0 }
 0x275   : > { %1549 = vmatpush.xpose.msk.msrb.mxu0 %vm916_vm11, %v914_v51  ;;  %1115 = vmatpush.msra.mxu2 %v1068_v20 }
 0x276   : > { %v840_v22 = vadd.f32 %v1716_v18, %v839_v21 }
 0x277   : > { %1546 = vmatpush.xpose.msk.msrb.mxu3 %vm916_vm11, %v912_v58 }
 0x278   : > { %v2262_v23 = vsel %vm841_vm10, %v1716_v18, %v840_v22  ;;  %v1071_v22 = vld [vmem:[#allocation3 + $0x28] sm:$0xff] }
 0x2df   : > { %v835_v24 = vpop.xlane.xlu0 %834 }
 0x2e0   : > { %v843_v25 = vmul.f32 %v2262_v23, %v835_v24 }
 0x2e2   : > { %v844_v26 = vsub.f32 %v2258_v15, %v843_v25  ;;  %v1070_v25 = vld [vmem:[#allocation3 + $0x20] sm:$0xff] }
 0x2e4   : > { %v845_v27 = vmul.f32 %v844_v26, %v844_v26 }
 0x2e6   : > { %v846_v28 = vsel %vm832_vm9, %v845_v27, 0.0 }
 0x2e7   : > { %847 = vadd.xlane.f32.xlu0 %v846_v28 }
 0x35a   : > { %v848_v34 = vpop.xlane.xlu0 %847 }
 0x35b   : > { %v849_v35 = vmul.f32 %v848_v34, %v2262_v23 }
 0x35d   : > { %v850_v36 = vadd.f32 1e-05, %v849_v35 }
 0x35f   : > { %1717 = vrsqrt.f32 %v850_v36  ;;  %vm857_vm13 = vweird.f32 %v850_v36 }
 0x365   : > { %v1718_v37 = vpop.eup %1717 }
 0x366   : > { %v852_v38 = vmul.f32 %v1718_v37, %v850_v36  ;;  %vm858_vm12 = vweird.f32 %v1718_v37 }
 0x367   : > { %vm859_vm14 = vmor %vm857_vm13, %vm858_vm12 }
 0x368   : > { %v853_v39 = vmul.f32 %v1718_v37, %v852_v38 }
 0x36a   : > { %v854_v40 = vmul.f32 0.5, %v853_v39 }
 0x36c   : > { %v855_v41 = vsub.f32 1.5, %v854_v40 }
 0x36e   : > { %v856_v42 = vmul.f32 %v1718_v37, %v855_v41  ;;  %v1250_v41 = vld [vmem:[#allocation9 + $0x18] sm:$0xff] }
 0x370   : > { %v860_v44 = vsel %vm859_vm14, %v1718_v37, %v856_v42 }
 0x371   : > { %v861_v45 = vmul.f32 %v860_v44, %v844_v26  ;;  %v1174_v26 = vld [vmem:[#allocation9] sm:$0xff] }
 0x372   : > { %1218 = vmatpush.msrb.mxu2 %v1174_v26 }
 0x373   : > { %v865_v47 = vmul.f32 %v1707_v43, %v861_v45 }
 0x375   : > { %v869_v48 = vadd.f32 %v1708_v46, %v865_v47  ;;  %v1224_v46 = vld [vmem:[#allocation9 + $0x10] sm:$0xff]  ;;  %v1176_v47 = vld [vmem:[#allocation9 + $0x8] sm:$0xff] }
 0x377   : > { %1538 = vmatmul.msk.f32.vlgmr.msra.gmra.mxu0 %vm832_vm9, %v869_v48 }
 0x378   : > { %1160 = vmatpush.msra.mxu0 %v1073_v13  ;;  %v1350_v13 = vld [vmem:[%s2473_s17 + $0x28] sm:$0xff] }
 0x37a   : > { %1161 = vmatpush.msra.mxu0 %v1072_v14 }
 0x3f4   : > { %v898_v53 = vpop.f32.mrf.mxu0 }
 0x3f5   : > { %v899_v54 = vadd.f32 %v1709_v52, %v898_v53 }
 0x3f7   : > { %906 = vrot.lane.b32.xlu2 %v899_v54, %s1976_s29  ;;  %902 = vrot.lane.b32.xlu1 %v899_v54, %s1977_s16  ;;  %s1562_s29 = sshll.u32 %s1951_s28, 1 }
 0x3f8   : > { %1541 = vmatmul.msk.f32.vlgmr.msra.gmra.mxu1 %vm916_vm11, %v899_v54  ;;  %s1394_s16 = sadd.s32 %s1947_s27, %s1562_s29  ;;  %s1384_s27 = scalar_lea.sflag [#allocation6], %s618_s5 }
 0x3f9   : > { %1195 = vmatpush.msra.mxu1 %v1176_v47 }
 0x3ff   : > { %904 = vrot.lane.b32.xlu1 %v899_v54, %s1978_s22  ;;  %s2474_s22 = sld [smem:[#allocation30_spill]] }
 0x405   : > { %v1711_v26 = vld [vmem:[%s2474_s22] ss:$0 sm:$0xff]  ;;  %s1563_s22 = sshll.u32 %s1394_s16, 3 }
 0x406   : > { %s1396_s15 = scalar_lea.hbm %s2479_s0, %s1563_s22  ;;  %s1877_s22 = scalar_lea.hbm %s2480_s12, 32 }
 0x407   : > { %s1400_s30 = sshll.u32 %s1396_s15, 4  ;;  %s1401_s30 = int_to_ptr.hbm [resolvable:$true] %s1400_s30 }
 0x408   : > { %s1871_s28 = sshra.s32 %s1401_s30, 4  ;;  %s1872_s28 = int_to_ptr.hbm [resolvable:$true] %s1871_s28 }
 0x409   : > { %p1878_p7 = scmp.lt.s32.totalorder %s1872_s28, %s2480_s12 }
 0x451   : > { %v907_v59 = vpop.permute.xlu2 %906 }
 0x452   : > { %1550 = vmatmul.msk.f32.vlgmr.msrb.gmra.mxu0 %vm916_vm11, %v907_v59 }
 0x453   : > { %1269 = vmatpush.msrb.mxu0 %v1250_v41 }
 0x469   : > { %v903_v60 = vpop.permute.xlu1 %902 }
 0x46a   : > { %1544 = vmatmul.msk.f32.vlgmr.msra.gmra.mxu3 %vm916_vm11, %v903_v60 }
 0x46b   : > { %1137 = vmatpush.msra.mxu3 %v1071_v22 }
 0x46d   : > { %1138 = vmatpush.msra.mxu3 %v1070_v25 }
 0x471   : > { %v905_v61 = vpop.permute.xlu1 %904 }
 0x472   : > { %1547 = vmatmul.msk.f32.vlgmr.msrb.gmra.mxu3 %vm916_vm11, %v905_v61  ;;  %v1710_v61 = vld [vmem:[%s2425_s10] ss:$0 sm:$0xff] }
 0x473   : > { %1243 = vmatpush.msrb.mxu3 %v1224_v46 }
 0x475   : > { %v942_v62 = vpop.f32.mrf.mxu1 }
 0x476   : > { %v1030_v63 = vsel %vm1029_vm15, %v942_v62, -inf }
 0x477   : > { %1031 = vmax.xlane.f32.xlu0 %v1030_v63 }
 0x4cf   : > { %v1026_v0 = vpop.f32.mrf.mxu0 }
 0x4d0   : > { %v1039_v3 = vsel %vm1029_vm15, %v1026_v0, -inf }
 0x4d1   : > { %1040 = vmax.xlane.f32.xlu0 %v1039_v3 }
 0x4ea   : > { %v1032_v4 = vpop.xlane.xlu0 %1031 }
 0x4eb   : > { %v1042_v5 = vsub.f32 %v942_v62, %v1032_v4 }
 0x4ed   : > { %v1046_v6 = vmul.f32 1.442695, %v1042_v5  ;;  %v970_v7 = vpop.f32.mrf.mxu3 }
 0x4ee   : > { %v1033_v8 = vsel %vm1029_vm15, %v970_v7, -inf }
 0x4ef   : > { %1719 = vpow2.f32 %v1046_v6  ;;  %1034 = vmax.xlane.f32.xlu1 %v1033_v8  ;;  %v1316_v8 = vld [vmem:[#allocation10 + $0x18] sm:$0xff] }
 0x4f5   : > { %v1720_v9 = vpop.eup %1719  ;;  %v998_v10 = vpop.f32.mrf.mxu3 }
 0x4f6   : > { %1551 = vmatmul.msk.f32.vlgmr.msrb.gmra.mxu1 %vm1029_vm15, %v1720_v9  ;;  %v1054_v11 = vsel %vm1029_vm15, %v1720_v9, 0.0  ;;  %v1036_v12 = vsel %vm1029_vm15, %v998_v10, -inf  ;;  %v1315_v9 = vld [vmem:[#allocation10 + $0x10] sm:$0xff] }
 0x4f7   : > { %1055 = vadd.xlane.f32.xlu0 %v1054_v11  ;;  %1037 = vmax.xlane.f32.xlu2 %v1036_v12  ;;  %v1352_v11 = vld [vmem:[%s2473_s17 + $0x38] sm:$0xff]  ;;  %v1351_v12 = vld [vmem:[%s2473_s17 + $0x30] sm:$0xff] }
 0x4f8   : > { %1336 = vmatpush.msrb.mxu1 %v1316_v8 }
 0x4fa   : > { %1337 = vmatpush.msrb.mxu1 %v1315_v9 }
 0x544   : > { %v1041_v16 = vpop.xlane.xlu0 %1040 }
 0x545   : > { %v1045_v17 = vsub.f32 %v1026_v0, %v1041_v16 }
 0x547   : > { %v1052_v18 = vmul.f32 1.442695, %v1045_v17  ;;  %v1349_v17 = vld [vmem:[%s2473_s17 + $0x20] sm:$0xff] }
 0x549   : > { %1721 = vpow2.f32 %v1052_v18 }
 0x54f   : > { %v1722_v21 = vpop.eup %1721 }
 0x550   : > { %1554 = vmatmul.msk.f32.vlgmr.msra.gmra.mxu0 %vm1029_vm15, %v1722_v21  ;;  %v1063_v24 = vsel %vm1029_vm15, %v1722_v21, 0.0 }
 0x551   : > { %1064 = vadd.xlane.f32.xlu2 %v1063_v24 }
 0x562   : > { %v1035_v27 = vpop.xlane.xlu1 %1034 }
 0x563   : > { %v1043_v28 = vsub.f32 %v970_v7, %v1035_v27 }
 0x565   : > { %v1048_v29 = vmul.f32 1.442695, %v1043_v28 }
 0x567   : > { %1723 = vpow2.f32 %v1048_v29  ;;  %v1712_v29 = vld [vmem:[%s2475_s21] ss:$0 sm:$0xff]  ;;  %s2477_s21 = sld [smem:[#allocation34_spill]] }
 0x56a   : > { %v1056_v30 = vpop.xlane.xlu0 %1055  ;;  %v1038_v31 = vpop.xlane.xlu2 %1037 }
 0x56b   : > { %v1044_v32 = vsub.f32 %v998_v10, %v1038_v31  ;;  %1725 = vrcp.f32 %v1056_v30  ;;  %v1314_v10 = vld [vmem:[#allocation10 + $0x8] sm:$0xff] }
 0x56c   : > { %1338 = vmatpush.msrb.mxu1 %v1314_v10 }
 0x56d   : > { %v1724_v33 = vpop.eup %1723  ;;  %v1050_v34 = vmul.f32 1.442695, %v1044_v32  ;;  %v1347_v32 = vld [vmem:[%s2473_s17 + $0x10] sm:$0xff] }
 0x56e   : > { %1552 = vmatmul.msk.f32.vlgmr.msra.gmra.mxu2 %vm1029_vm15, %v1724_v33  ;;  %v1057_v40 = vsel %vm1029_vm15, %v1724_v33, 0.0  ;;  %v1346_v33 = vld [vmem:[%s2473_s17 + $0x8] sm:$0xff] }
 0x56f   : > { %1727 = vpow2.f32 %v1050_v34  ;;  %1369 = vmatpush.msra.mxu2 %v1352_v11  ;;  %v1345_v34 = vld [vmem:[%s2473_s17] sm:$0xff] }
 0x571   : > { %v1726_v35 = vpop.eup %1725  ;;  %1370 = vmatpush.msra.mxu2 %v1351_v12 }
 0x573   : > { %v1094_v36 = vpop.f32.mrf.mxu1  ;;  %1371 = vmatpush.msra.mxu2 %v1350_v13 }
 0x574   : > { %v1170_v37 = vmul.f32 %v1726_v35, %v1094_v36  ;;  %v1713_v35 = vld [vmem:[%s2476_s1] ss:$0 sm:$0xff]  ;;  %s1873_s1 = scalar_lea.hbm %s1872_s28, 8 }
 0x575   : > { %v1728_v38 = vpop.eup %1727  ;;  %1372 = vmatpush.msra.mxu2 %v1349_v17  ;;  %p1874_p4 = scmp.ne.s32.totalorder %s1872_s28, %s1873_s1  ;;  %p1879_p9 = scmp.lt.s32.totalorder %s1877_s22, %s1873_s1 }
 0x576   : > { %1553 = vmatmul.msk.f32.vlgmr.msra.gmra.mxu3 %vm1029_vm15, %v1728_v38  ;;  %1556 = vmatmul.msk.f32.vlgmr.msrb.gmra.mxu2 %vm916_vm11, %v1170_v37  ;;  %v1060_v39 = vsel %vm1029_vm15, %v1728_v38, 0.0 }
 0x577   : > { %1061 = vadd.xlane.f32.xlu0 %v1060_v39  ;;  %1373 = vmatpush.msra.mxu2 %v1348_v19  ;;  %v1714_v39 = vld [vmem:[%s2477_s21] ss:$0 sm:$0xff]  ;;  %p1875_p5 = pnand %p1874_p4, %p2121_p3  ;;  %p1880_p10 = por %p1879_p9, %p1878_p7 }
 0x579   : > { %1374 = vmatpush.msra.mxu2 %v1347_v32  ;;  %p1876_p6 = pneg %p1875_p5 }
 0x57b   : > { %1375 = vmatpush.msra.mxu2 %v1346_v33  ;;  %p1881_p11 = pnand %p1880_p10, %p1876_p6 }
 0x57d   : > { %1376 = vmatpush.msra.mxu2 %v1345_v34 }
 0x57f   : > { %1058 = vadd.xlane.f32.xlu0 %v1057_v40 }
 0x5c4   : > { %v1065_v42 = vpop.xlane.xlu2 %1064 }
 0x5c5   : > { %1729 = vrcp.f32 %v1065_v42 }
 0x5cb   : > { %v1730_v43 = vpop.eup %1729 }
 0x5cd   : > { %v1163_v44 = vpop.f32.mrf.mxu0 }
 0x5ce   : > { %v1173_v45 = vmul.f32 %v1730_v43, %v1163_v44 }
 0x5d0   : > { %1558 = vmatmul.msk.f32.vlgmr.msrb.gmra.mxu0 %vm916_vm11, %v1173_v45 }
 0x5ea   : > { %v1062_v48 = vpop.xlane.xlu0 %1061 }
 0x5eb   : > { %1731 = vrcp.f32 %v1062_v48 }
 0x5f1   : > { %v1732_v50 = vpop.eup %1731  ;;  %v1117_v52 = vpop.f32.mrf.mxu2 }
 0x5f2   : > { %v1059_v49 = vpop.xlane.xlu0 %1058 }
 0x5f3   : > { %1733 = vrcp.f32 %v1059_v49 }
 0x5f9   : > { %v1734_v51 = vpop.eup %1733  ;;  %v1140_v53 = vpop.f32.mrf.mxu3 }
 0x5fa   : > { %v1171_v54 = vmul.f32 %v1734_v51, %v1117_v52  ;;  %v1172_v55 = vmul.f32 %v1732_v50, %v1140_v53  ;;  %v1220_v57 = vpop.f32.mrf.mxu2 }
 0x5fc   : > { %1555 = vmatmul.msk.f32.vlgmr.msra.gmra.mxu1 %vm916_vm11, %v1171_v54  ;;  %1557 = vmatmul.msk.f32.vlgmr.msrb.gmra.mxu3 %vm916_vm11, %v1172_v55 }
 0x64d   : > { %v1271_v62 = vpop.f32.mrf.mxu0 }
 0x679   : > { %v1197_v56 = vpop.f32.mrf.mxu1 }
 0x67a   : > { %v1221_v58 = vadd.f32 %v1220_v57, %v1197_v56 }
 0x67f   : > { %v1245_v59 = vpop.f32.mrf.mxu3 }
 0x680   : > { %v1248_v60 = vadd.f32 %v1245_v59, %v1221_v58 }
 0x682   : > { %v1274_v63 = vadd.f32 %v1271_v62, %v1248_v60 }
 0x684   : > { %v1279_v0 = vadd.f32 %v1710_v61, %v1274_v63 }
 0x686   : > { %v2319_v1 = vadd.f32 %v1279_v0, %v2258_v15  ;;  %v1313_v15 = vld [vmem:[#allocation10] sm:$0xff] }
 0x687   : > { %1339 = vmatpush.msrb.mxu1 %v1313_v15 }
 0x688   : > { %v1283_v2 = vsel %vm832_vm9, %v2319_v1, 0.0 }
 0x689   : > { %1284 = vadd.xlane.f32.xlu0 %v1283_v2 }
 0x6fc   : > { %v1285_v3 = vpop.xlane.xlu0 %1284 }
 0x6fd   : > { %v1286_v4 = vmul.f32 %v1285_v3, %v2262_v23 }
 0x6ff   : > { %v1287_v5 = vsub.f32 %v2319_v1, %v1286_v4 }
 0x701   : > { %v1288_v6 = vmul.f32 %v1287_v5, %v1287_v5 }
 0x703   : > { %v1289_v7 = vsel %vm832_vm9, %v1288_v6, 0.0 }
 0x704   : > { %1290 = vadd.xlane.f32.xlu2 %v1289_v7 }
 0x777   : > { %v1291_v14 = vpop.xlane.xlu2 %1290 }
 0x778   : > { %v1292_v16 = vmul.f32 %v1291_v14, %v2262_v23 }
 0x77a   : > { %v1293_v18 = vadd.f32 1e-05, %v1292_v16 }
 0x77c   : > { %1735 = vrsqrt.f32 %v1293_v18  ;;  %vm1300_vm1 = vweird.f32 %v1293_v18 }
 0x782   : > { %v1736_v20 = vpop.eup %1735 }
 0x783   : > { %v1295_v21 = vmul.f32 %v1736_v20, %v1293_v18  ;;  %vm1301_vm0 = vweird.f32 %v1736_v20 }
 0x784   : > { %vm1302_vm2 = vmor %vm1300_vm1, %vm1301_vm0 }
 0x785   : > { %v1296_v22 = vmul.f32 %v1736_v20, %v1295_v21 }
 0x787   : > { %v1297_v24 = vmul.f32 0.5, %v1296_v22 }
 0x789   : > { %v1298_v25 = vsub.f32 1.5, %v1297_v24 }
 0x78b   : > { %v1299_v23 = vmul.f32 %v1736_v20, %v1298_v25 }
 0x78d   : > { %v1303_v27 = vsel %vm1302_vm2, %v1736_v20, %v1299_v23 }
 0x78e   : > { %v1304_v28 = vmul.f32 %v1303_v27, %v1287_v5 }
 0x790   : > { %v1308_v30 = vmul.f32 %v1711_v26, %v1304_v28 }
 0x792   : > { %v1312_v31 = vadd.f32 %v1712_v29, %v1308_v30 }
 0x794   : > { %1559 = vmatmul.msk.f32.vlgmr.msrb.gmra.mxu1 %vm832_vm9, %v1312_v31 }
 0x811   : > { %v1341_v36 = vpop.f32.mrf.mxu1 }
 0x812   : > { %v1342_v37 = vadd.f32 %v1713_v35, %v1341_v36 }
 0x814   : > { %v1344_v38 = vmax.f32 %v1342_v37, 0.0 }
 0x816   : > { %1560 = vmatmul.msk.f32.vlgmr.msra.gmra.mxu2 %vm1357_vm3, %v1344_v38 }
 0x899   : > { %v1378_v40 = vpop.f32.mrf.mxu2 }
 0x89a   : > { %v1379_v41 = vadd.f32 %v1714_v39, %v1378_v40 }
 0x89c   : > { %v1381_v42 = vadd.f32 %v1379_v41, %v2319_v1 }
 0x89e   : > { %1382 = vst.msk [vmem:[%s620_s23] sm:$0xff] %vm832_vm9, %v1381_v42 }
 0x89f   : > { %1884 = shalt.err (!%p1881_p11)
}
 0x8a0   : > { %1591 = dma.vmem_to_hbm [thread:$0]  (%p2121_p3), %s1399_s26, 128, %s1401_s30, %s1384_s27  }
 0x8a1 PF: > { %s2481_s5 = sld [smem:[#allocation21_spill]] }
 0x8a2   : > { %s2482_s11 = sld [smem:[#allocation17_spill]] }
 0x8a7   : > { %p1618_p12 = scmp.ge.s32.totalorder %s2481_s5, 2 }
 0x8a8   : > { %s1412_s21 = sand.u32 1, %s2482_s11  }
 0x8a9   : > { %p1607_p13 = pnand %p1618_p12, %p2130_p8  ;;  %s1413_s18 = scalar_lea.sflag [#allocation6], %s1412_s21 }
 0x8ab   : > { %p1608_p0 = pneg %p1607_p13 }
 0x8ad   : > { %1930 = dma.done.wait (%p1608_p0), %s1413_s18, 128  }
 0x8ae   : > { %1932 = vsyncadd (%p1608_p0), %s1413_s18, 4294967168  ;;  %s33_s30 = sadd.s32 1, %s2481_s5   ;;  %s2484_s0 = sld [smem:[#allocation18_spill]] }
 0x8af   : > { %p30_p1 = scmp.ge.s32.totalorder %s33_s30, 6   ;;  %s2485_s26 = sld [smem:[#allocation26_spill]] }
 0x8b0   : > { %s2486_s27 = sld [smem:[#allocation19_spill]]  ;;  %s2490_s24 = smov %s1939_s25 }
 0x8b1   : > { %s2487_s28 = sld [smem:[#allocation20_spill]] }
 0x8b2   : > { %s2488_s29 = sld [smem:[#allocation22_spill]] }
 0x8b3   : > { %s2489_s14 = sld [smem:[#allocation24_spill]] }
 0x8b4   : > { %s2491_s25 = smov %s2484_s0 }
 0x8b5   :  { %32 = sbr.rel (!%p30_p1) target bundleno = 18 (0x12), region = 154 }
 0x8b9   : > { %s2492_s0 = smov %s2489_s14 }
 0x8ba   :  { %1419 = vsyncpa [#allocation5], 1 }
 0x8bb   :  { %1421 = vsyncpa [#allocation5 + $0x1], 1 }
 0x8bc   :  { %1422 = vsyncpa [#allocation8], 1 }
 0x8bd   :  { %1423 = vsyncpa [#allocation11], 1 }
 0x8be   :  { %1424 = vsyncpa [#allocation6], 1 }
 0x8bf   :  { %1426 = vsyncpa [#allocation6 + $0x1], 1 }

</bundles_post_ra>
